<compile_context>
chip_gen: v6e
topology: v6e:2x2x1
jax: 0.10.0
libtpu: 0.0.40
codegen_flags: <defaults>
</compile_context>

<pallas_src>
import numpy as np
import jax
import jax.numpy as jnp
from jax.experimental import pallas as pl
from jax.experimental.pallas import tpu as pltpu

BP = 16  # batch padded to one bf16 sublane tile; every spatial position owns 16 lanes


# ------------------------------ Pallas kernel -------------------------------

def _clf_img_kernel(a1t_ref, w1m_ref, w2m_ref, b2_ref, wf1_ref, bf1_ref,
                    wf2_ref, bf2_ref, o_ref, h1t_ref, a2t_ref, xf_ref):
    """Fused ClfImg forward (transposed activation layout).

    a1t_ref : (64, 4096) bf16  conv1 patches^T: rows = (tap(kh,kw), cin) [48] +
                               valid flag [row 48] + zeros; lanes = (g,u,v,b)
                               over the zero-padded 16x16 conv1 grid split by
                               parity g = 2*(i%2) + (j%2), i=2u+?, j=2v+?.
    w1m_ref : (16, 64)  bf16   conv1 weight^T (out-ch padded 10->16); col 48 = bias.
    w2m_ref : (20, 256) bf16   conv2 weight^T; col = tap*16 + cin (cin 10..15 zero).
    wf1_ref : (128,1568) bf16  fc1 weight; col = pos*32 + cin (cin 20..31 zero).
    wf2_ref : (16, 128) bf16   fc2 weight (out padded 10->16).
    b*_ref  : (*, 1) f32       per-channel biases (column vectors).
    o_ref   : (16, 16) f32     logits^T: rows = out-features (10 valid),
                               lanes = batch (B valid).
    h1t_ref : (16, 4352) bf16  conv1 output^T; lanes (g,u,v,b) + 256 zero slack.
    a2t_ref : (256, 1024) bf16 conv2 im2col^T; rows (tap, cin), lanes (y,x∈0..7,b).
    xf_ref  : (1568, 16) bf16  fc1 input^T; rows (pos, cin padded to 32), lanes b.
    """
    # ---- conv1: one K=64 matmul; bias + pad-ring handled via the valid row ----
    # chunked over lanes so the f32 intermediate stays small in vregs
    for n0 in range(0, 4096, 1024):
        h1c = jnp.dot(w1m_ref[...], a1t_ref[:, n0:n0 + 1024],
                      preferred_element_type=jnp.float32)
        h1t_ref[:, n0:n0 + 1024] = jnp.maximum(h1c, 0.0).astype(jnp.bfloat16)
    # zero the slack lanes that the edge taps of parity grid g=3 read
    h1t_ref[:, 4096:4352] = jnp.zeros((16, 256), jnp.bfloat16)

    # ---- conv2 im2col: 16 lane-shifted, tile-aligned copies (no RMW, no masks) ----
    for kh in range(4):
        for kw in range(4):
            t = kh * 4 + kw
            g = 2 * (kh % 2) + (kw % 2)
            off = g * 1024 + (kh // 2) * 128 + (kw // 2) * 16
            a2t_ref[t * 16:(t + 1) * 16, :] = h1t_ref[:, off:off + 1024]

    # ---- conv2: one K=256 matmul ----
    h2 = jnp.dot(w2m_ref[...], a2t_ref[...], preferred_element_type=jnp.float32)
    h2 = jnp.maximum(h2 + b2_ref[...], 0.0).astype(jnp.bfloat16)   # (20, 1024)

    # ---- fc1 input: 49 aligned position-block copies into a (1568,16) scratch ----
    xf_ref[...] = jnp.zeros((1568, BP), jnp.bfloat16)   # zero the 20..31 pad rows
    for p in range(49):
        y, xx = p // 7, p % 7
        c0 = (y * 8 + xx) * 16
        xf_ref[p * 32:p * 32 + 20, :] = h2[:, c0:c0 + 16]

    # ---- fc1: one K=1568 matmul ----
    h3 = jnp.dot(wf1_ref[...], xf_ref[...], preferred_element_type=jnp.float32)
    h3 = jnp.maximum(h3 + bf1_ref[...], 0.0).astype(jnp.bfloat16)  # (128, 16)

    # ---- fc2 ----
    out = jnp.dot(wf2_ref[...], h3, preferred_element_type=jnp.float32)
    o_ref[...] = out + bf2_ref[...]


# ------------------------------ JAX-side glue --------------------------------

def _conv1_patches_T(x, bp):
    """conv1 im2col, transposed: (64, 4*8*8*bp) bf16.

    Rows: 48 patch features ordered (kh,kw,cin), row 48 = valid flag (1 on the
    real 14x14 conv1 output, 0 on the conv2 zero-padding ring), rows 49..63 = 0.
    Lanes: (g, u, v, b) with g = parity of the padded 16x16 conv1 grid.
    Ring lanes have zero patches AND valid=0, so relu(matmul) is exactly 0 there
    (this emulates conv2's zero padding with no in-kernel masking).
    """
    B = x.shape[0]
    xp = jnp.pad(x.astype(jnp.float32), ((0, bp - B), (0, 0), (3, 3), (3, 3)))
    # taps[t][b, c, i, j] = xp[b, c, 2i+kh, 2j+kw] over the padded 16x16 grid
    taps = jnp.stack([xp[:, :, kh:kh + 31:2, kw:kw + 31:2]
                      for kh in range(4) for kw in range(4)], axis=0)  # (16,bp,3,16,16)
    tt = taps.reshape(16, bp, 3, 8, 2, 8, 2)            # [t, b, c, u, r, v, s]
    tt = tt.transpose(0, 2, 4, 6, 3, 5, 1)              # [t, c, r, s, u, v, b]
    a48 = tt.reshape(48, 4 * 8 * 8 * bp)                # rows (t,c); lanes (g,u,v,b)

    iu = jnp.arange(8)
    vi = jnp.stack([iu >= 1, iu <= 6], axis=0).astype(jnp.float32)      # [r, u]
    valid = vi[:, None, :, None, None] * vi[None, :, None, :, None]     # [r,s,u,v,1]
    valid = jnp.broadcast_to(valid, (2, 2, 8, 8, bp)).reshape(1, -1)    # (1, 4096)

    a48 = a48 * valid                                    # zero the padding-ring patches
    a1t = jnp.concatenate(
        [a48, valid, jnp.zeros((15, a48.shape[1]), jnp.float32)], axis=0)
    return a1t.astype(jnp.bfloat16)                      # (64, 4096)


def init_params(key):
    """Deterministic synthetic parameters with the PyTorch ClfImg shapes."""
    ks = jax.random.split(key, 8)
    scale = 0.05
    return {
        "conv1_w": scale * jax.random.normal(ks[0], (10, 3, 4, 4), jnp.float32),
        "conv1_b": scale * jax.random.normal(ks[1], (10,), jnp.float32),
        "conv2_w": scale * jax.random.normal(ks[2], (20, 10, 4, 4), jnp.float32),
        "conv2_b": scale * jax.random.normal(ks[3], (20,), jnp.float32),
        "fc1_w": scale * jax.random.normal(ks[4], (128, 980), jnp.float32),
        "fc1_b": scale * jax.random.normal(ks[5], (128,), jnp.float32),
        "fc2_w": scale * jax.random.normal(ks[6], (10, 128), jnp.float32),
        "fc2_b": scale * jax.random.normal(ks[7], (10,), jnp.float32),
    }


def prep_params(p):
    """Fold every layout difference into compile-time weight transforms (bf16)."""
    # conv1: rows = out-ch padded to 16, col (kh*4+kw)*3 + cin, col 48 = bias
    w1m = jnp.zeros((16, 64), jnp.float32)
    w1m = w1m.at[:10, :48].set(p["conv1_w"].transpose(0, 2, 3, 1).reshape(10, 48))
    w1m = w1m.at[:10, 48].set(p["conv1_b"])
    # conv2: col = (kh*4+kw)*16 + cin, cin padded 10->16 with zeros
    w2m = jnp.pad(p["conv2_w"].transpose(0, 2, 3, 1),
                  ((0, 0), (0, 0), (0, 0), (0, 6))).reshape(20, 256)
    # fc1: col = pos*32 + cin (pos = y*7+x), cin padded 20->32 with zeros
    wf1m = p["fc1_w"].reshape(128, 20, 49).transpose(0, 2, 1)           # (128,49,20)
    wf1m = jnp.pad(wf1m, ((0, 0), (0, 0), (0, 12))).reshape(128, 1568)
    # fc2: out-ch padded 10->16
    wf2m = jnp.zeros((16, 128), jnp.float32).at[:10, :].set(p["fc2_w"])
    bf2 = jnp.zeros((16, 1), jnp.float32).at[:10, 0].set(p["fc2_b"])
    return {
        "w1m": w1m.astype(jnp.bfloat16),
        "w2m": w2m.astype(jnp.bfloat16),
        "b2": p["conv2_b"].reshape(20, 1).astype(jnp.float32),
        "wf1m": wf1m.astype(jnp.bfloat16),
        "bf1": p["fc1_b"].reshape(128, 1).astype(jnp.float32),
        "wf2m": wf2m.astype(jnp.bfloat16),
        "bf2": bf2,
    }


def clf_img_forward(x, kp):
    """x: (B, 3, 28, 28) NCHW float32 -> logits (B, 10). Whole net = 1 pallas_call."""
    B = x.shape[0]
    assert B <= BP, "this kernel bakes batch <= 16 into its lane layout"
    a1t = _conv1_patches_T(x, BP)

    out = pl.pallas_call(
        _clf_img_kernel,
        out_shape=jax.ShapeDtypeStruct((16, BP), jnp.float32),
        scratch_shapes=[
            pltpu.VMEM((16, 4352), jnp.bfloat16),    # h1^T : conv1 out + slack
            pltpu.VMEM((256, 1024), jnp.bfloat16),   # A2^T : conv2 im2col
            pltpu.VMEM((1568, BP), jnp.bfloat16),    # Xf   : fc1 input
        ],
    )(a1t, kp["w1m"], kp["w2m"], kp["b2"], kp["wf1m"], kp["bf1"],
      kp["wf2m"], kp["bf2"])
    # raw output is (padded out-features, padded batch); only this view is valid
    return out[:10, :B].T


def clf_img_reference(x, p):
    """Pure-JAX f32 reference with PyTorch ClfImg eval-mode semantics."""
    dn = ("NCHW", "OIHW", "NCHW")
    h = jax.lax.conv_general_dilated(x, p["conv1_w"], (2, 2), ((1, 1), (1, 1)),
                                     dimension_numbers=dn)
    h = jnp.maximum(h + p["conv1_b"][None, :, None, None], 0.0)
    h = jax.lax.conv_general_dilated(h, p["conv2_w"], (2, 2), ((1, 1), (1, 1)),
                                     dimension_numbers=dn)
    h = jnp.maximum(h + p["conv2_b"][None, :, None, None], 0.0)
    h = h.reshape(x.shape[0], -1)                                 # NCHW flatten
    h = jnp.maximum(h @ p["fc1_w"].T + p["fc1_b"], 0.0)
    return h @ p["fc2_w"].T + p["fc2_b"]


if __name__ == "__main__":
    key = jax.random.PRNGKey(0)
    k_param, k_x = jax.random.split(key)
    params = init_params(k_param)
    kparams = prep_params(params)
    # Input must be 28x28 so the flatten produces 20*7*7 = 980 features.
    x = jax.random.normal(k_x, (2, 3, 28, 28), jnp.float32)

    fwd = jax.jit(clf_img_forward)
    logits = jax.block_until_ready(fwd(x, kparams))

    assert logits.shape == (2, 10), logits.shape
    assert logits.dtype == jnp.float32

    # Cross-check against a plain-JAX reference (bf16 MXU operands => loose tol).
    ref = jax.block_until_ready(clf_img_reference(x, params))
    np.testing.assert_allclose(np.asarray(logits), np.asarray(ref),
                               rtol=0.1, atol=0.02)

    print("KERNEL_OK")
</pallas_src>

<mosaic_0001>
module attributes {stable_mosaic.version = 11 : i64} {
  func.func @_clf_img_kernel(%arg0: memref<64x4096xbf16, #tpu.memory_space<vmem>>, %arg1: memref<16x64xbf16, #tpu.memory_space<vmem>>, %arg2: memref<20x256xbf16, #tpu.memory_space<vmem>>, %arg3: memref<20x1xf32, #tpu.memory_space<vmem>>, %arg4: memref<128x1568xbf16, #tpu.memory_space<vmem>>, %arg5: memref<128x1xf32, #tpu.memory_space<vmem>>, %arg6: memref<16x128xbf16, #tpu.memory_space<vmem>>, %arg7: memref<16x1xf32, #tpu.memory_space<vmem>>, %arg8: memref<16x16xf32, #tpu.memory_space<vmem>>, %arg9: memref<16x4352xbf16, #tpu.memory_space<vmem>>, %arg10: memref<256x1024xbf16, #tpu.memory_space<vmem>>, %arg11: memref<1568x16xbf16, #tpu.memory_space<vmem>>) attributes {dimension_semantics = [], scalar_prefetch = 0 : i64, scratch_operands = 3 : i64, tpu.core_type = #tpu.core_type<tc>} {
    %c0 = arith.constant 0 : index
    %c0_0 = arith.constant 0 : index
    %0 = vector.load %arg1[%c0, %c0_0] : memref<16x64xbf16, #tpu.memory_space<vmem>>, vector<16x64xbf16>
    %c0_1 = arith.constant 0 : index
    %c0_2 = arith.constant 0 : index
    %1 = vector.load %arg0[%c0_1, %c0_2] : memref<64x4096xbf16, #tpu.memory_space<vmem>>, vector<64x1024xbf16>
    %cst = arith.constant dense<0.000000e+00> : vector<16x1024xf32>
    %2 = tpu.matmul %0, %1, %cst {dimension_numbers = #tpu.dot_dimension_numbers<[1], [0], [0], [1], [0, 0, 1, 1], [], []>} : vector<16x64xbf16>, vector<64x1024xbf16>, vector<16x1024xf32> -> vector<16x1024xf32>
    %cst_3 = arith.constant 0.000000e+00 : f32
    %3 = vector.broadcast %cst_3 : f32 to vector<16x1024xf32>
    %4 = arith.maximumf %2, %3 : vector<16x1024xf32>
    %5 = arith.truncf %4 : vector<16x1024xf32> to vector<16x1024xbf16>
    %c0_4 = arith.constant 0 : index
    %c0_5 = arith.constant 0 : index
    %6 = vector.load %arg9[%c0_4, %c0_5] : memref<16x4352xbf16, #tpu.memory_space<vmem>>, vector<16x1024xbf16>
    tpu.vector_store %arg9[%c0_4, %c0_5], %5 {strides = array<i32>} : memref<16x4352xbf16, #tpu.memory_space<vmem>>, vector<16x1024xbf16>,
    %c0_6 = arith.constant 0 : index
    %c0_7 = arith.constant 0 : index
    %7 = vector.load %arg1[%c0_6, %c0_7] : memref<16x64xbf16, #tpu.memory_space<vmem>>, vector<16x64xbf16>
    %c0_8 = arith.constant 0 : index
    %c1024 = arith.constant 1024 : index
    %8 = vector.load %arg0[%c0_8, %c1024] : memref<64x4096xbf16, #tpu.memory_space<vmem>>, vector<64x1024xbf16>
    %cst_9 = arith.constant dense<0.000000e+00> : vector<16x1024xf32>
    %9 = tpu.matmul %7, %8, %cst_9 {dimension_numbers = #tpu.dot_dimension_numbers<[1], [0], [0], [1], [0, 0, 1, 1], [], []>} : vector<16x64xbf16>, vector<64x1024xbf16>, vector<16x1024xf32> -> vector<16x1024xf32>
    %cst_10 = arith.constant 0.000000e+00 : f32
    %10 = vector.broadcast %cst_10 : f32 to vector<16x1024xf32>
    %11 = arith.maximumf %9, %10 : vector<16x1024xf32>
    %12 = arith.truncf %11 : vector<16x1024xf32> to vector<16x1024xbf16>
    %c0_11 = arith.constant 0 : index
    %c1024_12 = arith.constant 1024 : index
    %13 = vector.load %arg9[%c0_11, %c1024_12] : memref<16x4352xbf16, #tpu.memory_space<vmem>>, vector<16x1024xbf16>
    tpu.vector_store %arg9[%c0_11, %c1024_12], %12 {strides = array<i32>} : memref<16x4352xbf16, #tpu.memory_space<vmem>>, vector<16x1024xbf16>,
    %c0_13 = arith.constant 0 : index
    %c0_14 = arith.constant 0 : index
    %14 = vector.load %arg1[%c0_13, %c0_14] : memref<16x64xbf16, #tpu.memory_space<vmem>>, vector<16x64xbf16>
    %c0_15 = arith.constant 0 : index
    %c2048 = arith.constant 2048 : index
    %15 = vector.load %arg0[%c0_15, %c2048] : memref<64x4096xbf16, #tpu.memory_space<vmem>>, vector<64x1024xbf16>
    %cst_16 = arith.constant dense<0.000000e+00> : vector<16x1024xf32>
    %16 = tpu.matmul %14, %15, %cst_16 {dimension_numbers = #tpu.dot_dimension_numbers<[1], [0], [0], [1], [0, 0, 1, 1], [], []>} : vector<16x64xbf16>, vector<64x1024xbf16>, vector<16x1024xf32> -> vector<16x1024xf32>
    %cst_17 = arith.constant 0.000000e+00 : f32
    %17 = vector.broadcast %cst_17 : f32 to vector<16x1024xf32>
    %18 = arith.maximumf %16, %17 : vector<16x1024xf32>
    %19 = arith.truncf %18 : vector<16x1024xf32> to vector<16x1024xbf16>
    %c0_18 = arith.constant 0 : index
    %c2048_19 = arith.constant 2048 : index
    %20 = vector.load %arg9[%c0_18, %c2048_19] : memref<16x4352xbf16, #tpu.memory_space<vmem>>, vector<16x1024xbf16>
    tpu.vector_store %arg9[%c0_18, %c2048_19], %19 {strides = array<i32>} : memref<16x4352xbf16, #tpu.memory_space<vmem>>, vector<16x1024xbf16>,
    %c0_20 = arith.constant 0 : index
    %c0_21 = arith.constant 0 : index
    %21 = vector.load %arg1[%c0_20, %c0_21] : memref<16x64xbf16, #tpu.memory_space<vmem>>, vector<16x64xbf16>
    %c0_22 = arith.constant 0 : index
    %c3072 = arith.constant 3072 : index
    %22 = vector.load %arg0[%c0_22, %c3072] : memref<64x4096xbf16, #tpu.memory_space<vmem>>, vector<64x1024xbf16>
    %cst_23 = arith.constant dense<0.000000e+00> : vector<16x1024xf32>
    %23 = tpu.matmul %21, %22, %cst_23 {dimension_numbers = #tpu.dot_dimension_numbers<[1], [0], [0], [1], [0, 0, 1, 1], [], []>} : vector<16x64xbf16>, vector<64x1024xbf16>, vector<16x1024xf32> -> vector<16x1024xf32>
    %cst_24 = arith.constant 0.000000e+00 : f32
    %24 = vector.broadcast %cst_24 : f32 to vector<16x1024xf32>
    %25 = arith.maximumf %23, %24 : vector<16x1024xf32>
    %26 = arith.truncf %25 : vector<16x1024xf32> to vector<16x1024xbf16>
    %c0_25 = arith.constant 0 : index
    %c3072_26 = arith.constant 3072 : index
    %27 = vector.load %arg9[%c0_25, %c3072_26] : memref<16x4352xbf16, #tpu.memory_space<vmem>>, vector<16x1024xbf16>
    tpu.vector_store %arg9[%c0_25, %c3072_26], %26 {strides = array<i32>} : memref<16x4352xbf16, #tpu.memory_space<vmem>>, vector<16x1024xbf16>,
    %cst_27 = arith.constant 0.000000e+00 : bf16
    %28 = vector.broadcast %cst_27 : bf16 to vector<16x256xbf16>
    %c0_28 = arith.constant 0 : index
    %c4096 = arith.constant 4096 : index
    %29 = vector.load %arg9[%c0_28, %c4096] : memref<16x4352xbf16, #tpu.memory_space<vmem>>, vector<16x256xbf16>
    tpu.vector_store %arg9[%c0_28, %c4096], %28 {strides = array<i32>} : memref<16x4352xbf16, #tpu.memory_space<vmem>>, vector<16x256xbf16>,
    %c0_29 = arith.constant 0 : index
    %c0_30 = arith.constant 0 : index
    %30 = vector.load %arg9[%c0_29, %c0_30] : memref<16x4352xbf16, #tpu.memory_space<vmem>>, vector<16x1024xbf16>
    %c0_31 = arith.constant 0 : index
    %c0_32 = arith.constant 0 : index
    %31 = vector.load %arg10[%c0_31, %c0_32] : memref<256x1024xbf16, #tpu.memory_space<vmem>>, vector<16x1024xbf16>
    tpu.vector_store %arg10[%c0_31, %c0_32], %30 {strides = array<i32>} : memref<256x1024xbf16, #tpu.memory_space<vmem>>, vector<16x1024xbf16>,
    %c0_33 = arith.constant 0 : index
    %c1024_34 = arith.constant 1024 : index
    %32 = vector.load %arg9[%c0_33, %c1024_34] : memref<16x4352xbf16, #tpu.memory_space<vmem>>, vector<16x1024xbf16>
    %c16 = arith.constant 16 : index
    %c0_35 = arith.constant 0 : index
    %33 = vector.load %arg10[%c16, %c0_35] : memref<256x1024xbf16, #tpu.memory_space<vmem>>, vector<16x1024xbf16>
    tpu.vector_store %arg10[%c16, %c0_35], %32 {strides = array<i32>} : memref<256x1024xbf16, #tpu.memory_space<vmem>>, vector<16x1024xbf16>,
    %c0_36 = arith.constant 0 : index
    %c16_37 = arith.constant 16 : index
    %34 = vector.load %arg9[%c0_36, %c16_37] : memref<16x4352xbf16, #tpu.memory_space<vmem>>, vector<16x1024xbf16>
    %c32 = arith.constant 32 : index
    %c0_38 = arith.constant 0 : index
    %35 = vector.load %arg10[%c32, %c0_38] : memref<256x1024xbf16, #tpu.memory_space<vmem>>, vector<16x1024xbf16>
    tpu.vector_store %arg10[%c32, %c0_38], %34 {strides = array<i32>} : memref<256x1024xbf16, #tpu.memory_space<vmem>>, vector<16x1024xbf16>,
    %c0_39 = arith.constant 0 : index
    %c1040 = arith.constant 1040 : index
    %36 = vector.load %arg9[%c0_39, %c1040] : memref<16x4352xbf16, #tpu.memory_space<vmem>>, vector<16x1024xbf16>
    %c48 = arith.constant 48 : index
    %c0_40 = arith.constant 0 : index
    %37 = vector.load %arg10[%c48, %c0_40] : memref<256x1024xbf16, #tpu.memory_space<vmem>>, vector<16x1024xbf16>
    tpu.vector_store %arg10[%c48, %c0_40], %36 {strides = array<i32>} : memref<256x1024xbf16, #tpu.memory_space<vmem>>, vector<16x1024xbf16>,
    %c0_41 = arith.constant 0 : index
    %c2048_42 = arith.constant 2048 : index
    %38 = vector.load %arg9[%c0_41, %c2048_42] : memref<16x4352xbf16, #tpu.memory_space<vmem>>, vector<16x1024xbf16>
    %c64 = arith.constant 64 : index
    %c0_43 = arith.constant 0 : index
    %39 = vector.load %arg10[%c64, %c0_43] : memref<256x1024xbf16, #tpu.memory_space<vmem>>, vector<16x1024xbf16>
    tpu.vector_store %arg10[%c64, %c0_43], %38 {strides = array<i32>} : memref<256x1024xbf16, #tpu.memory_space<vmem>>, vector<16x1024xbf16>,
    %c0_44 = arith.constant 0 : index
    %c3072_45 = arith.constant 3072 : index
    %40 = vector.load %arg9[%c0_44, %c3072_45] : memref<16x4352xbf16, #tpu.memory_space<vmem>>, vector<16x1024xbf16>
    %c80 = arith.constant 80 : index
    %c0_46 = arith.constant 0 : index
    %41 = vector.load %arg10[%c80, %c0_46] : memref<256x1024xbf16, #tpu.memory_space<vmem>>, vector<16x1024xbf16>
    tpu.vector_store %arg10[%c80, %c0_46], %40 {strides = array<i32>} : memref<256x1024xbf16, #tpu.memory_space<vmem>>, vector<16x1024xbf16>,
    %c0_47 = arith.constant 0 : index
    %c2064 = arith.constant 2064 : index
    %42 = vector.load %arg9[%c0_47, %c2064] : memref<16x4352xbf16, #tpu.memory_space<vmem>>, vector<16x1024xbf16>
    %c96 = arith.constant 96 : index
    %c0_48 = arith.constant 0 : index
    %43 = vector.load %arg10[%c96, %c0_48] : memref<256x1024xbf16, #tpu.memory_space<vmem>>, vector<16x1024xbf16>
    tpu.vector_store %arg10[%c96, %c0_48], %42 {strides = array<i32>} : memref<256x1024xbf16, #tpu.memory_space<vmem>>, vector<16x1024xbf16>,
    %c0_49 = arith.constant 0 : index
    %c3088 = arith.constant 3088 : index
    %44 = vector.load %arg9[%c0_49, %c3088] : memref<16x4352xbf16, #tpu.memory_space<vmem>>, vector<16x1024xbf16>
    %c112 = arith.constant 112 : index
    %c0_50 = arith.constant 0 : index
    %45 = vector.load %arg10[%c112, %c0_50] : memref<256x1024xbf16, #tpu.memory_space<vmem>>, vector<16x1024xbf16>
    tpu.vector_store %arg10[%c112, %c0_50], %44 {strides = array<i32>} : memref<256x1024xbf16, #tpu.memory_space<vmem>>, vector<16x1024xbf16>,
    %c0_51 = arith.constant 0 : index
    %c128 = arith.constant 128 : index
    %46 = vector.load %arg9[%c0_51, %c128] : memref<16x4352xbf16, #tpu.memory_space<vmem>>, vector<16x1024xbf16>
    %c128_52 = arith.constant 128 : index
    %c0_53 = arith.constant 0 : index
    %47 = vector.load %arg10[%c128_52, %c0_53] : memref<256x1024xbf16, #tpu.memory_space<vmem>>, vector<16x1024xbf16>
    tpu.vector_store %arg10[%c128_52, %c0_53], %46 {strides = array<i32>} : memref<256x1024xbf16, #tpu.memory_space<vmem>>, vector<16x1024xbf16>,
    %c0_54 = arith.constant 0 : index
    %c1152 = arith.constant 1152 : index
    %48 = vector.load %arg9[%c0_54, %c1152] : memref<16x4352xbf16, #tpu.memory_space<vmem>>, vector<16x1024xbf16>
    %c144 = arith.constant 144 : index
    %c0_55 = arith.constant 0 : index
    %49 = vector.load %arg10[%c144, %c0_55] : memref<256x1024xbf16, #tpu.memory_space<vmem>>, vector<16x1024xbf16>
    tpu.vector_store %arg10[%c144, %c0_55], %48 {strides = array<i32>} : memref<256x1024xbf16, #tpu.memory_space<vmem>>, vector<16x1024xbf16>,
    %c0_56 = arith.constant 0 : index
    %c144_57 = arith.constant 144 : index
    %50 = vector.load %arg9[%c0_56, %c144_57] : memref<16x4352xbf16, #tpu.memory_space<vmem>>, vector<16x1024xbf16>
    %c160 = arith.constant 160 : index
    %c0_58 = arith.constant 0 : index
    %51 = vector.load %arg10[%c160, %c0_58] : memref<256x1024xbf16, #tpu.memory_space<vmem>>, vector<16x1024xbf16>
    tpu.vector_store %arg10[%c160, %c0_58], %50 {strides = array<i32>} : memref<256x1024xbf16, #tpu.memory_space<vmem>>, vector<16x1024xbf16>,
    %c0_59 = arith.constant 0 : index
    %c1168 = arith.constant 1168 : index
    %52 = vector.load %arg9[%c0_59, %c1168] : memref<16x4352xbf16, #tpu.memory_space<vmem>>, vector<16x1024xbf16>
    %c176 = arith.constant 176 : index
    %c0_60 = arith.constant 0 : index
    %53 = vector.load %arg10[%c176, %c0_60] : memref<256x1024xbf16, #tpu.memory_space<vmem>>, vector<16x1024xbf16>
    tpu.vector_store %arg10[%c176, %c0_60], %52 {strides = array<i32>} : memref<256x1024xbf16, #tpu.memory_space<vmem>>, vector<16x1024xbf16>,
    %c0_61 = arith.constant 0 : index
    %c2176 = arith.constant 2176 : index
    %54 = vector.load %arg9[%c0_61, %c2176] : memref<16x4352xbf16, #tpu.memory_space<vmem>>, vector<16x1024xbf16>
    %c192 = arith.constant 192 : index
    %c0_62 = arith.constant 0 : index
    %55 = vector.load %arg10[%c192, %c0_62] : memref<256x1024xbf16, #tpu.memory_space<vmem>>, vector<16x1024xbf16>
    tpu.vector_store %arg10[%c192, %c0_62], %54 {strides = array<i32>} : memref<256x1024xbf16, #tpu.memory_space<vmem>>, vector<16x1024xbf16>,
    %c0_63 = arith.constant 0 : index
    %c3200 = arith.constant 3200 : index
    %56 = vector.load %arg9[%c0_63, %c3200] : memref<16x4352xbf16, #tpu.memory_space<vmem>>, vector<16x1024xbf16>
    %c208 = arith.constant 208 : index
    %c0_64 = arith.constant 0 : index
    %57 = vector.load %arg10[%c208, %c0_64] : memref<256x1024xbf16, #tpu.memory_space<vmem>>, vector<16x1024xbf16>
    tpu.vector_store %arg10[%c208, %c0_64], %56 {strides = array<i32>} : memref<256x1024xbf16, #tpu.memory_space<vmem>>, vector<16x1024xbf16>,
    %c0_65 = arith.constant 0 : index
    %c2192 = arith.constant 2192 : index
    %58 = vector.load %arg9[%c0_65, %c2192] : memref<16x4352xbf16, #tpu.memory_space<vmem>>, vector<16x1024xbf16>
    %c224 = arith.constant 224 : index
    %c0_66 = arith.constant 0 : index
    %59 = vector.load %arg10[%c224, %c0_66] : memref<256x1024xbf16, #tpu.memory_space<vmem>>, vector<16x1024xbf16>
    tpu.vector_store %arg10[%c224, %c0_66], %58 {strides = array<i32>} : memref<256x1024xbf16, #tpu.memory_space<vmem>>, vector<16x1024xbf16>,
    %c0_67 = arith.constant 0 : index
    %c3216 = arith.constant 3216 : index
    %60 = vector.load %arg9[%c0_67, %c3216] : memref<16x4352xbf16, #tpu.memory_space<vmem>>, vector<16x1024xbf16>
    %c240 = arith.constant 240 : index
    %c0_68 = arith.constant 0 : index
    %61 = vector.load %arg10[%c240, %c0_68] : memref<256x1024xbf16, #tpu.memory_space<vmem>>, vector<16x1024xbf16>
    tpu.vector_store %arg10[%c240, %c0_68], %60 {strides = array<i32>} : memref<256x1024xbf16, #tpu.memory_space<vmem>>, vector<16x1024xbf16>,
    %c0_69 = arith.constant 0 : index
    %c0_70 = arith.constant 0 : index
    %62 = vector.load %arg2[%c0_69, %c0_70] : memref<20x256xbf16, #tpu.memory_space<vmem>>, vector<20x256xbf16>
    %c0_71 = arith.constant 0 : index
    %c0_72 = arith.constant 0 : index
    %63 = vector.load %arg10[%c0_71, %c0_72] : memref<256x1024xbf16, #tpu.memory_space<vmem>>, vector<256x1024xbf16>
    %cst_73 = arith.constant dense<0.000000e+00> : vector<20x1024xf32>
    %64 = tpu.matmul %62, %63, %cst_73 {dimension_numbers = #tpu.dot_dimension_numbers<[1], [0], [0], [1], [0, 0, 1, 1], [], []>} : vector<20x256xbf16>, vector<256x1024xbf16>, vector<20x1024xf32> -> vector<20x1024xf32>
    %c0_74 = arith.constant 0 : index
    %c0_75 = arith.constant 0 : index
    %65 = vector.load %arg3[%c0_74, %c0_75] : memref<20x1xf32, #tpu.memory_space<vmem>>, vector<20x1xf32>
    %66 = vector.broadcast %65 : vector<20x1xf32> to vector<20x1024xf32>
    %67 = arith.addf %64, %66 : vector<20x1024xf32>
    %cst_76 = arith.constant 0.000000e+00 : f32
    %68 = vector.broadcast %cst_76 : f32 to vector<20x1024xf32>
    %69 = arith.maximumf %67, %68 : vector<20x1024xf32>
    %70 = arith.truncf %69 : vector<20x1024xf32> to vector<20x1024xbf16>
    %cst_77 = arith.constant 0.000000e+00 : bf16
    %71 = vector.broadcast %cst_77 : bf16 to vector<1568x16xbf16>
    %c0_78 = arith.constant 0 : index
    %c0_79 = arith.constant 0 : index
    %72 = vector.load %arg11[%c0_78, %c0_79] : memref<1568x16xbf16, #tpu.memory_space<vmem>>, vector<1568x16xbf16>
    tpu.vector_store %arg11[%c0_78, %c0_79], %71 {strides = array<i32>} : memref<1568x16xbf16, #tpu.memory_space<vmem>>, vector<1568x16xbf16>,
    %73 = vector.extract_strided_slice %70 {offsets = [0, 0], sizes = [20, 16], strides = [1, 1]} : vector<20x1024xbf16> to vector<20x16xbf16>
    %c0_80 = arith.constant 0 : index
    %c0_81 = arith.constant 0 : index
    %74 = vector.load %arg11[%c0_80, %c0_81] : memref<1568x16xbf16, #tpu.memory_space<vmem>>, vector<20x16xbf16>
    tpu.vector_store %arg11[%c0_80, %c0_81], %73 {strides = array<i32>} : memref<1568x16xbf16, #tpu.memory_space<vmem>>, vector<20x16xbf16>,
    %75 = vector.extract_strided_slice %70 {offsets = [0, 16], sizes = [20, 16], strides = [1, 1]} : vector<20x1024xbf16> to vector<20x16xbf16>
    %c32_82 = arith.constant 32 : index
    %c0_83 = arith.constant 0 : index
    %76 = vector.load %arg11[%c32_82, %c0_83] : memref<1568x16xbf16, #tpu.memory_space<vmem>>, vector<20x16xbf16>
    tpu.vector_store %arg11[%c32_82, %c0_83], %75 {strides = array<i32>} : memref<1568x16xbf16, #tpu.memory_space<vmem>>, vector<20x16xbf16>,
    %77 = vector.extract_strided_slice %70 {offsets = [0, 32], sizes = [20, 16], strides = [1, 1]} : vector<20x1024xbf16> to vector<20x16xbf16>
    %c64_84 = arith.constant 64 : index
    %c0_85 = arith.constant 0 : index
    %78 = vector.load %arg11[%c64_84, %c0_85] : memref<1568x16xbf16, #tpu.memory_space<vmem>>, vector<20x16xbf16>
    tpu.vector_store %arg11[%c64_84, %c0_85], %77 {strides = array<i32>} : memref<1568x16xbf16, #tpu.memory_space<vmem>>, vector<20x16xbf16>,
    %79 = vector.extract_strided_slice %70 {offsets = [0, 48], sizes = [20, 16], strides = [1, 1]} : vector<20x1024xbf16> to vector<20x16xbf16>
    %c96_86 = arith.constant 96 : index
    %c0_87 = arith.constant 0 : index
    %80 = vector.load %arg11[%c96_86, %c0_87] : memref<1568x16xbf16, #tpu.memory_space<vmem>>, vector<20x16xbf16>
    tpu.vector_store %arg11[%c96_86, %c0_87], %79 {strides = array<i32>} : memref<1568x16xbf16, #tpu.memory_space<vmem>>, vector<20x16xbf16>,
    %81 = vector.extract_strided_slice %70 {offsets = [0, 64], sizes = [20, 16], strides = [1, 1]} : vector<20x1024xbf16> to vector<20x16xbf16>
    %c128_88 = arith.constant 128 : index
    %c0_89 = arith.constant 0 : index
    %82 = vector.load %arg11[%c128_88, %c0_89] : memref<1568x16xbf16, #tpu.memory_space<vmem>>, vector<20x16xbf16>
    tpu.vector_store %arg11[%c128_88, %c0_89], %81 {strides = array<i32>} : memref<1568x16xbf16, #tpu.memory_space<vmem>>, vector<20x16xbf16>,
    %83 = vector.extract_strided_slice %70 {offsets = [0, 80], sizes = [20, 16], strides = [1, 1]} : vector<20x1024xbf16> to vector<20x16xbf16>
    %c160_90 = arith.constant 160 : index
    %c0_91 = arith.constant 0 : index
    %84 = vector.load %arg11[%c160_90, %c0_91] : memref<1568x16xbf16, #tpu.memory_space<vmem>>, vector<20x16xbf16>
    tpu.vector_store %arg11[%c160_90, %c0_91], %83 {strides = array<i32>} : memref<1568x16xbf16, #tpu.memory_space<vmem>>, vector<20x16xbf16>,
    %85 = vector.extract_strided_slice %70 {offsets = [0, 96], sizes = [20, 16], strides = [1, 1]} : vector<20x1024xbf16> to vector<20x16xbf16>
    %c192_92 = arith.constant 192 : index
    %c0_93 = arith.constant 0 : index
    %86 = vector.load %arg11[%c192_92, %c0_93] : memref<1568x16xbf16, #tpu.memory_space<vmem>>, vector<20x16xbf16>
    tpu.vector_store %arg11[%c192_92, %c0_93], %85 {strides = array<i32>} : memref<1568x16xbf16, #tpu.memory_space<vmem>>, vector<20x16xbf16>,
    %87 = vector.extract_strided_slice %70 {offsets = [0, 128], sizes = [20, 16], strides = [1, 1]} : vector<20x1024xbf16> to vector<20x16xbf16>
    %c224_94 = arith.constant 224 : index
    %c0_95 = arith.constant 0 : index
    %88 = vector.load %arg11[%c224_94, %c0_95] : memref<1568x16xbf16, #tpu.memory_space<vmem>>, vector<20x16xbf16>
    tpu.vector_store %arg11[%c224_94, %c0_95], %87 {strides = array<i32>} : memref<1568x16xbf16, #tpu.memory_space<vmem>>, vector<20x16xbf16>,
    %89 = vector.extract_strided_slice %70 {offsets = [0, 144], sizes = [20, 16], strides = [1, 1]} : vector<20x1024xbf16> to vector<20x16xbf16>
    %c256 = arith.constant 256 : index
    %c0_96 = arith.constant 0 : index
    %90 = vector.load %arg11[%c256, %c0_96] : memref<1568x16xbf16, #tpu.memory_space<vmem>>, vector<20x16xbf16>
    tpu.vector_store %arg11[%c256, %c0_96], %89 {strides = array<i32>} : memref<1568x16xbf16, #tpu.memory_space<vmem>>, vector<20x16xbf16>,
    %91 = vector.extract_strided_slice %70 {offsets = [0, 160], sizes = [20, 16], strides = [1, 1]} : vector<20x1024xbf16> to vector<20x16xbf16>
    %c288 = arith.constant 288 : index
    %c0_97 = arith.constant 0 : index
    %92 = vector.load %arg11[%c288, %c0_97] : memref<1568x16xbf16, #tpu.memory_space<vmem>>, vector<20x16xbf16>
    tpu.vector_store %arg11[%c288, %c0_97], %91 {strides = array<i32>} : memref<1568x16xbf16, #tpu.memory_space<vmem>>, vector<20x16xbf16>,
    %93 = vector.extract_strided_slice %70 {offsets = [0, 176], sizes = [20, 16], strides = [1, 1]} : vector<20x1024xbf16> to vector<20x16xbf16>
    %c320 = arith.constant 320 : index
    %c0_98 = arith.constant 0 : index
    %94 = vector.load %arg11[%c320, %c0_98] : memref<1568x16xbf16, #tpu.memory_space<vmem>>, vector<20x16xbf16>
    tpu.vector_store %arg11[%c320, %c0_98], %93 {strides = array<i32>} : memref<1568x16xbf16, #tpu.memory_space<vmem>>, vector<20x16xbf16>,
    %95 = vector.extract_strided_slice %70 {offsets = [0, 192], sizes = [20, 16], strides = [1, 1]} : vector<20x1024xbf16> to vector<20x16xbf16>
    %c352 = arith.constant 352 : index
    %c0_99 = arith.constant 0 : index
    %96 = vector.load %arg11[%c352, %c0_99] : memref<1568x16xbf16, #tpu.memory_space<vmem>>, vector<20x16xbf16>
    tpu.vector_store %arg11[%c352, %c0_99], %95 {strides = array<i32>} : memref<1568x16xbf16, #tpu.memory_space<vmem>>, vector<20x16xbf16>,
    %97 = vector.extract_strided_slice %70 {offsets = [0, 208], sizes = [20, 16], strides = [1, 1]} : vector<20x1024xbf16> to vector<20x16xbf16>
    %c384 = arith.constant 384 : index
    %c0_100 = arith.constant 0 : index
    %98 = vector.load %arg11[%c384, %c0_100] : memref<1568x16xbf16, #tpu.memory_space<vmem>>, vector<20x16xbf16>
    tpu.vector_store %arg11[%c384, %c0_100], %97 {strides = array<i32>} : memref<1568x16xbf16, #tpu.memory_space<vmem>>, vector<20x16xbf16>,
    %99 = vector.extract_strided_slice %70 {offsets = [0, 224], sizes = [20, 16], strides = [1, 1]} : vector<20x1024xbf16> to vector<20x16xbf16>
    %c416 = arith.constant 416 : index
    %c0_101 = arith.constant 0 : index
    %100 = vector.load %arg11[%c416, %c0_101] : memref<1568x16xbf16, #tpu.memory_space<vmem>>, vector<20x16xbf16>
    tpu.vector_store %arg11[%c416, %c0_101], %99 {strides = array<i32>} : memref<1568x16xbf16, #tpu.memory_space<vmem>>, vector<20x16xbf16>,
    %101 = vector.extract_strided_slice %70 {offsets = [0, 256], sizes = [20, 16], strides = [1, 1]} : vector<20x1024xbf16> to vector<20x16xbf16>
    %c448 = arith.constant 448 : index
    %c0_102 = arith.constant 0 : index
    %102 = vector.load %arg11[%c448, %c0_102] : memref<1568x16xbf16, #tpu.memory_space<vmem>>, vector<20x16xbf16>
    tpu.vector_store %arg11[%c448, %c0_102], %101 {strides = array<i32>} : memref<1568x16xbf16, #tpu.memory_space<vmem>>, vector<20x16xbf16>,
    %103 = vector.extract_strided_slice %70 {offsets = [0, 272], sizes = [20, 16], strides = [1, 1]} : vector<20x1024xbf16> to vector<20x16xbf16>
    %c480 = arith.constant 480 : index
    %c0_103 = arith.constant 0 : index
    %104 = vector.load %arg11[%c480, %c0_103] : memref<1568x16xbf16, #tpu.memory_space<vmem>>, vector<20x16xbf16>
    tpu.vector_store %arg11[%c480, %c0_103], %103 {strides = array<i32>} : memref<1568x16xbf16, #tpu.memory_space<vmem>>, vector<20x16xbf16>,
    %105 = vector.extract_strided_slice %70 {offsets = [0, 288], sizes = [20, 16], strides = [1, 1]} : vector<20x1024xbf16> to vector<20x16xbf16>
    %c512 = arith.constant 512 : index
    %c0_104 = arith.constant 0 : index
    %106 = vector.load %arg11[%c512, %c0_104] : memref<1568x16xbf16, #tpu.memory_space<vmem>>, vector<20x16xbf16>
    tpu.vector_store %arg11[%c512, %c0_104], %105 {strides = array<i32>} : memref<1568x16xbf16, #tpu.memory_space<vmem>>, vector<20x16xbf16>,
    %107 = vector.extract_strided_slice %70 {offsets = [0, 304], sizes = [20, 16], strides = [1, 1]} : vector<20x1024xbf16> to vector<20x16xbf16>
    %c544 = arith.constant 544 : index
    %c0_105 = arith.constant 0 : index
    %108 = vector.load %arg11[%c544, %c0_105] : memref<1568x16xbf16, #tpu.memory_space<vmem>>, vector<20x16xbf16>
    tpu.vector_store %arg11[%c544, %c0_105], %107 {strides = array<i32>} : memref<1568x16xbf16, #tpu.memory_space<vmem>>, vector<20x16xbf16>,
    %109 = vector.extract_strided_slice %70 {offsets = [0, 320], sizes = [20, 16], strides = [1, 1]} : vector<20x1024xbf16> to vector<20x16xbf16>
    %c576 = arith.constant 576 : index
    %c0_106 = arith.constant 0 : index
    %110 = vector.load %arg11[%c576, %c0_106] : memref<1568x16xbf16, #tpu.memory_space<vmem>>, vector<20x16xbf16>
    tpu.vector_store %arg11[%c576, %c0_106], %109 {strides = array<i32>} : memref<1568x16xbf16, #tpu.memory_space<vmem>>, vector<20x16xbf16>,
    %111 = vector.extract_strided_slice %70 {offsets = [0, 336], sizes = [20, 16], strides = [1, 1]} : vector<20x1024xbf16> to vector<20x16xbf16>
    %c608 = arith.constant 608 : index
    %c0_107 = arith.constant 0 : index
    %112 = vector.load %arg11[%c608, %c0_107] : memref<1568x16xbf16, #tpu.memory_space<vmem>>, vector<20x16xbf16>
    tpu.vector_store %arg11[%c608, %c0_107], %111 {strides = array<i32>} : memref<1568x16xbf16, #tpu.memory_space<vmem>>, vector<20x16xbf16>,
    %113 = vector.extract_strided_slice %70 {offsets = [0, 352], sizes = [20, 16], strides = [1, 1]} : vector<20x1024xbf16> to vector<20x16xbf16>
    %c640 = arith.constant 640 : index
    %c0_108 = arith.constant 0 : index
    %114 = vector.load %arg11[%c640, %c0_108] : memref<1568x16xbf16, #tpu.memory_space<vmem>>, vector<20x16xbf16>
    tpu.vector_store %arg11[%c640, %c0_108], %113 {strides = array<i32>} : memref<1568x16xbf16, #tpu.memory_space<vmem>>, vector<20x16xbf16>,
    %115 = vector.extract_strided_slice %70 {offsets = [0, 384], sizes = [20, 16], strides = [1, 1]} : vector<20x1024xbf16> to vector<20x16xbf16>
    %c672 = arith.constant 672 : index
    %c0_109 = arith.constant 0 : index
    %116 = vector.load %arg11[%c672, %c0_109] : memref<1568x16xbf16, #tpu.memory_space<vmem>>, vector<20x16xbf16>
    tpu.vector_store %arg11[%c672, %c0_109], %115 {strides = array<i32>} : memref<1568x16xbf16, #tpu.memory_space<vmem>>, vector<20x16xbf16>,
    %117 = vector.extract_strided_slice %70 {offsets = [0, 400], sizes = [20, 16], strides = [1, 1]} : vector<20x1024xbf16> to vector<20x16xbf16>
    %c704 = arith.constant 704 : index
    %c0_110 = arith.constant 0 : index
    %118 = vector.load %arg11[%c704, %c0_110] : memref<1568x16xbf16, #tpu.memory_space<vmem>>, vector<20x16xbf16>
    tpu.vector_store %arg11[%c704, %c0_110], %117 {strides = array<i32>} : memref<1568x16xbf16, #tpu.memory_space<vmem>>, vector<20x16xbf16>,
    %119 = vector.extract_strided_slice %70 {offsets = [0, 416], sizes = [20, 16], strides = [1, 1]} : vector<20x1024xbf16> to vector<20x16xbf16>
    %c736 = arith.constant 736 : index
    %c0_111 = arith.constant 0 : index
    %120 = vector.load %arg11[%c736, %c0_111] : memref<1568x16xbf16, #tpu.memory_space<vmem>>, vector<20x16xbf16>
    tpu.vector_store %arg11[%c736, %c0_111], %119 {strides = array<i32>} : memref<1568x16xbf16, #tpu.memory_space<vmem>>, vector<20x16xbf16>,
    %121 = vector.extract_strided_slice %70 {offsets = [0, 432], sizes = [20, 16], strides = [1, 1]} : vector<20x1024xbf16> to vector<20x16xbf16>
    %c768 = arith.constant 768 : index
    %c0_112 = arith.constant 0 : index
    %122 = vector.load %arg11[%c768, %c0_112] : memref<1568x16xbf16, #tpu.memory_space<vmem>>, vector<20x16xbf16>
    tpu.vector_store %arg11[%c768, %c0_112], %121 {strides = array<i32>} : memref<1568x16xbf16, #tpu.memory_space<vmem>>, vector<20x16xbf16>,
    %123 = vector.extract_strided_slice %70 {offsets = [0, 448], sizes = [20, 16], strides = [1, 1]} : vector<20x1024xbf16> to vector<20x16xbf16>
    %c800 = arith.constant 800 : index
    %c0_113 = arith.constant 0 : index
    %124 = vector.load %arg11[%c800, %c0_113] : memref<1568x16xbf16, #tpu.memory_space<vmem>>, vector<20x16xbf16>
    tpu.vector_store %arg11[%c800, %c0_113], %123 {strides = array<i32>} : memref<1568x16xbf16, #tpu.memory_space<vmem>>, vector<20x16xbf16>,
    %125 = vector.extract_strided_slice %70 {offsets = [0, 464], sizes = [20, 16], strides = [1, 1]} : vector<20x1024xbf16> to vector<20x16xbf16>
    %c832 = arith.constant 832 : index
    %c0_114 = arith.constant 0 : index
    %126 = vector.load %arg11[%c832, %c0_114] : memref<1568x16xbf16, #tpu.memory_space<vmem>>, vector<20x16xbf16>
    tpu.vector_store %arg11[%c832, %c0_114], %125 {strides = array<i32>} : memref<1568x16xbf16, #tpu.memory_space<vmem>>, vector<20x16xbf16>,
    %127 = vector.extract_strided_slice %70 {offsets = [0, 480], sizes = [20, 16], strides = [1, 1]} : vector<20x1024xbf16> to vector<20x16xbf16>
    %c864 = arith.constant 864 : index
    %c0_115 = arith.constant 0 : index
    %128 = vector.load %arg11[%c864, %c0_115] : memref<1568x16xbf16, #tpu.memory_space<vmem>>, vector<20x16xbf16>
    tpu.vector_store %arg11[%c864, %c0_115], %127 {strides = array<i32>} : memref<1568x16xbf16, #tpu.memory_space<vmem>>, vector<20x16xbf16>,
    %129 = vector.extract_strided_slice %70 {offsets = [0, 512], sizes = [20, 16], strides = [1, 1]} : vector<20x1024xbf16> to vector<20x16xbf16>
    %c896 = arith.constant 896 : index
    %c0_116 = arith.constant 0 : index
    %130 = vector.load %arg11[%c896, %c0_116] : memref<1568x16xbf16, #tpu.memory_space<vmem>>, vector<20x16xbf16>
    tpu.vector_store %arg11[%c896, %c0_116], %129 {strides = array<i32>} : memref<1568x16xbf16, #tpu.memory_space<vmem>>, vector<20x16xbf16>,
    %131 = vector.extract_strided_slice %70 {offsets = [0, 528], sizes = [20, 16], strides = [1, 1]} : vector<20x1024xbf16> to vector<20x16xbf16>
    %c928 = arith.constant 928 : index
    %c0_117 = arith.constant 0 : index
    %132 = vector.load %arg11[%c928, %c0_117] : memref<1568x16xbf16, #tpu.memory_space<vmem>>, vector<20x16xbf16>
    tpu.vector_store %arg11[%c928, %c0_117], %131 {strides = array<i32>} : memref<1568x16xbf16, #tpu.memory_space<vmem>>, vector<20x16xbf16>,
    %133 = vector.extract_strided_slice %70 {offsets = [0, 544], sizes = [20, 16], strides = [1, 1]} : vector<20x1024xbf16> to vector<20x16xbf16>
    %c960 = arith.constant 960 : index
    %c0_118 = arith.constant 0 : index
    %134 = vector.load %arg11[%c960, %c0_118] : memref<1568x16xbf16, #tpu.memory_space<vmem>>, vector<20x16xbf16>
    tpu.vector_store %arg11[%c960, %c0_118], %133 {strides = array<i32>} : memref<1568x16xbf16, #tpu.memory_space<vmem>>, vector<20x16xbf16>,
    %135 = vector.extract_strided_slice %70 {offsets = [0, 560], sizes = [20, 16], strides = [1, 1]} : vector<20x1024xbf16> to vector<20x16xbf16>
    %c992 = arith.constant 992 : index
    %c0_119 = arith.constant 0 : index
    %136 = vector.load %arg11[%c992, %c0_119] : memref<1568x16xbf16, #tpu.memory_space<vmem>>, vector<20x16xbf16>
    tpu.vector_store %arg11[%c992, %c0_119], %135 {strides = array<i32>} : memref<1568x16xbf16, #tpu.memory_space<vmem>>, vector<20x16xbf16>,
    %137 = vector.extract_strided_slice %70 {offsets = [0, 576], sizes = [20, 16], strides = [1, 1]} : vector<20x1024xbf16> to vector<20x16xbf16>
    %c1024_120 = arith.constant 1024 : index
    %c0_121 = arith.constant 0 : index
    %138 = vector.load %arg11[%c1024_120, %c0_121] : memref<1568x16xbf16, #tpu.memory_space<vmem>>, vector<20x16xbf16>
    tpu.vector_store %arg11[%c1024_120, %c0_121], %137 {strides = array<i32>} : memref<1568x16xbf16, #tpu.memory_space<vmem>>, vector<20x16xbf16>,
    %139 = vector.extract_strided_slice %70 {offsets = [0, 592], sizes = [20, 16], strides = [1, 1]} : vector<20x1024xbf16> to vector<20x16xbf16>
    %c1056 = arith.constant 1056 : index
    %c0_122 = arith.constant 0 : index
    %140 = vector.load %arg11[%c1056, %c0_122] : memref<1568x16xbf16, #tpu.memory_space<vmem>>, vector<20x16xbf16>
    tpu.vector_store %arg11[%c1056, %c0_122], %139 {strides = array<i32>} : memref<1568x16xbf16, #tpu.memory_space<vmem>>, vector<20x16xbf16>,
    %141 = vector.extract_strided_slice %70 {offsets = [0, 608], sizes = [20, 16], strides = [1, 1]} : vector<20x1024xbf16> to vector<20x16xbf16>
    %c1088 = arith.constant 1088 : index
    %c0_123 = arith.constant 0 : index
    %142 = vector.load %arg11[%c1088, %c0_123] : memref<1568x16xbf16, #tpu.memory_space<vmem>>, vector<20x16xbf16>
    tpu.vector_store %arg11[%c1088, %c0_123], %141 {strides = array<i32>} : memref<1568x16xbf16, #tpu.memory_space<vmem>>, vector<20x16xbf16>,
    %143 = vector.extract_strided_slice %70 {offsets = [0, 640], sizes = [20, 16], strides = [1, 1]} : vector<20x1024xbf16> to vector<20x16xbf16>
    %c1120 = arith.constant 1120 : index
    %c0_124 = arith.constant 0 : index
    %144 = vector.load %arg11[%c1120, %c0_124] : memref<1568x16xbf16, #tpu.memory_space<vmem>>, vector<20x16xbf16>
    tpu.vector_store %arg11[%c1120, %c0_124], %143 {strides = array<i32>} : memref<1568x16xbf16, #tpu.memory_space<vmem>>, vector<20x16xbf16>,
    %145 = vector.extract_strided_slice %70 {offsets = [0, 656], sizes = [20, 16], strides = [1, 1]} : vector<20x1024xbf16> to vector<20x16xbf16>
    %c1152_125 = arith.constant 1152 : index
    %c0_126 = arith.constant 0 : index
    %146 = vector.load %arg11[%c1152_125, %c0_126] : memref<1568x16xbf16, #tpu.memory_space<vmem>>, vector<20x16xbf16>
    tpu.vector_store %arg11[%c1152_125, %c0_126], %145 {strides = array<i32>} : memref<1568x16xbf16, #tpu.memory_space<vmem>>, vector<20x16xbf16>,
    %147 = vector.extract_strided_slice %70 {offsets = [0, 672], sizes = [20, 16], strides = [1, 1]} : vector<20x1024xbf16> to vector<20x16xbf16>
    %c1184 = arith.constant 1184 : index
    %c0_127 = arith.constant 0 : index
    %148 = vector.load %arg11[%c1184, %c0_127] : memref<1568x16xbf16, #tpu.memory_space<vmem>>, vector<20x16xbf16>
    tpu.vector_store %arg11[%c1184, %c0_127], %147 {strides = array<i32>} : memref<1568x16xbf16, #tpu.memory_space<vmem>>, vector<20x16xbf16>,
    %149 = vector.extract_strided_slice %70 {offsets = [0, 688], sizes = [20, 16], strides = [1, 1]} : vector<20x1024xbf16> to vector<20x16xbf16>
    %c1216 = arith.constant 1216 : index
    %c0_128 = arith.constant 0 : index
    %150 = vector.load %arg11[%c1216, %c0_128] : memref<1568x16xbf16, #tpu.memory_space<vmem>>, vector<20x16xbf16>
    tpu.vector_store %arg11[%c1216, %c0_128], %149 {strides = array<i32>} : memref<1568x16xbf16, #tpu.memory_space<vmem>>, vector<20x16xbf16>,
    %151 = vector.extract_strided_slice %70 {offsets = [0, 704], sizes = [20, 16], strides = [1, 1]} : vector<20x1024xbf16> to vector<20x16xbf16>
    %c1248 = arith.constant 1248 : index
    %c0_129 = arith.constant 0 : index
    %152 = vector.load %arg11[%c1248, %c0_129] : memref<1568x16xbf16, #tpu.memory_space<vmem>>, vector<20x16xbf16>
    tpu.vector_store %arg11[%c1248, %c0_129], %151 {strides = array<i32>} : memref<1568x16xbf16, #tpu.memory_space<vmem>>, vector<20x16xbf16>,
    %153 = vector.extract_strided_slice %70 {offsets = [0, 720], sizes = [20, 16], strides = [1, 1]} : vector<20x1024xbf16> to vector<20x16xbf16>
    %c1280 = arith.constant 1280 : index
    %c0_130 = arith.constant 0 : index
    %154 = vector.load %arg11[%c1280, %c0_130] : memref<1568x16xbf16, #tpu.memory_space<vmem>>, vector<20x16xbf16>
    tpu.vector_store %arg11[%c1280, %c0_130], %153 {strides = array<i32>} : memref<1568x16xbf16, #tpu.memory_space<vmem>>, vector<20x16xbf16>,
    %155 = vector.extract_strided_slice %70 {offsets = [0, 736], sizes = [20, 16], strides = [1, 1]} : vector<20x1024xbf16> to vector<20x16xbf16>
    %c1312 = arith.constant 1312 : index
    %c0_131 = arith.constant 0 : index
    %156 = vector.load %arg11[%c1312, %c0_131] : memref<1568x16xbf16, #tpu.memory_space<vmem>>, vector<20x16xbf16>
    tpu.vector_store %arg11[%c1312, %c0_131], %155 {strides = array<i32>} : memref<1568x16xbf16, #tpu.memory_space<vmem>>, vector<20x16xbf16>,
    %157 = vector.extract_strided_slice %70 {offsets = [0, 768], sizes = [20, 16], strides = [1, 1]} : vector<20x1024xbf16> to vector<20x16xbf16>
    %c1344 = arith.constant 1344 : index
    %c0_132 = arith.constant 0 : index
    %158 = vector.load %arg11[%c1344, %c0_132] : memref<1568x16xbf16, #tpu.memory_space<vmem>>, vector<20x16xbf16>
    tpu.vector_store %arg11[%c1344, %c0_132], %157 {strides = array<i32>} : memref<1568x16xbf16, #tpu.memory_space<vmem>>, vector<20x16xbf16>,
    %159 = vector.extract_strided_slice %70 {offsets = [0, 784], sizes = [20, 16], strides = [1, 1]} : vector<20x1024xbf16> to vector<20x16xbf16>
    %c1376 = arith.constant 1376 : index
    %c0_133 = arith.constant 0 : index
    %160 = vector.load %arg11[%c1376, %c0_133] : memref<1568x16xbf16, #tpu.memory_space<vmem>>, vector<20x16xbf16>
    tpu.vector_store %arg11[%c1376, %c0_133], %159 {strides = array<i32>} : memref<1568x16xbf16, #tpu.memory_space<vmem>>, vector<20x16xbf16>,
    %161 = vector.extract_strided_slice %70 {offsets = [0, 800], sizes = [20, 16], strides = [1, 1]} : vector<20x1024xbf16> to vector<20x16xbf16>
    %c1408 = arith.constant 1408 : index
    %c0_134 = arith.constant 0 : index
    %162 = vector.load %arg11[%c1408, %c0_134] : memref<1568x16xbf16, #tpu.memory_space<vmem>>, vector<20x16xbf16>
    tpu.vector_store %arg11[%c1408, %c0_134], %161 {strides = array<i32>} : memref<1568x16xbf16, #tpu.memory_space<vmem>>, vector<20x16xbf16>,
    %163 = vector.extract_strided_slice %70 {offsets = [0, 816], sizes = [20, 16], strides = [1, 1]} : vector<20x1024xbf16> to vector<20x16xbf16>
    %c1440 = arith.constant 1440 : index
    %c0_135 = arith.constant 0 : index
    %164 = vector.load %arg11[%c1440, %c0_135] : memref<1568x16xbf16, #tpu.memory_space<vmem>>, vector<20x16xbf16>
    tpu.vector_store %arg11[%c1440, %c0_135], %163 {strides = array<i32>} : memref<1568x16xbf16, #tpu.memory_space<vmem>>, vector<20x16xbf16>,
    %165 = vector.extract_strided_slice %70 {offsets = [0, 832], sizes = [20, 16], strides = [1, 1]} : vector<20x1024xbf16> to vector<20x16xbf16>
    %c1472 = arith.constant 1472 : index
    %c0_136 = arith.constant 0 : index
    %166 = vector.load %arg11[%c1472, %c0_136] : memref<1568x16xbf16, #tpu.memory_space<vmem>>, vector<20x16xbf16>
    tpu.vector_store %arg11[%c1472, %c0_136], %165 {strides = array<i32>} : memref<1568x16xbf16, #tpu.memory_space<vmem>>, vector<20x16xbf16>,
    %167 = vector.extract_strided_slice %70 {offsets = [0, 848], sizes = [20, 16], strides = [1, 1]} : vector<20x1024xbf16> to vector<20x16xbf16>
    %c1504 = arith.constant 1504 : index
    %c0_137 = arith.constant 0 : index
    %168 = vector.load %arg11[%c1504, %c0_137] : memref<1568x16xbf16, #tpu.memory_space<vmem>>, vector<20x16xbf16>
    tpu.vector_store %arg11[%c1504, %c0_137], %167 {strides = array<i32>} : memref<1568x16xbf16, #tpu.memory_space<vmem>>, vector<20x16xbf16>,
    %169 = vector.extract_strided_slice %70 {offsets = [0, 864], sizes = [20, 16], strides = [1, 1]} : vector<20x1024xbf16> to vector<20x16xbf16>
    %c1536 = arith.constant 1536 : index
    %c0_138 = arith.constant 0 : index
    %170 = vector.load %arg11[%c1536, %c0_138] : memref<1568x16xbf16, #tpu.memory_space<vmem>>, vector<20x16xbf16>
    tpu.vector_store %arg11[%c1536, %c0_138], %169 {strides = array<i32>} : memref<1568x16xbf16, #tpu.memory_space<vmem>>, vector<20x16xbf16>,
    %c0_139 = arith.constant 0 : index
    %c0_140 = arith.constant 0 : index
    %171 = vector.load %arg4[%c0_139, %c0_140] : memref<128x1568xbf16, #tpu.memory_space<vmem>>, vector<128x1568xbf16>
    %c0_141 = arith.constant 0 : index
    %c0_142 = arith.constant 0 : index
    %172 = vector.load %arg11[%c0_141, %c0_142] : memref<1568x16xbf16, #tpu.memory_space<vmem>>, vector<1568x16xbf16>
    %cst_143 = arith.constant dense<0.000000e+00> : vector<128x16xf32>
    %173 = tpu.matmul %171, %172, %cst_143 {dimension_numbers = #tpu.dot_dimension_numbers<[1], [0], [0], [1], [0, 0, 1, 1], [], []>} : vector<128x1568xbf16>, vector<1568x16xbf16>, vector<128x16xf32> -> vector<128x16xf32>
    %c0_144 = arith.constant 0 : index
    %c0_145 = arith.constant 0 : index
    %174 = vector.load %arg5[%c0_144, %c0_145] : memref<128x1xf32, #tpu.memory_space<vmem>>, vector<128x1xf32>
    %175 = vector.broadcast %174 : vector<128x1xf32> to vector<128x16xf32>
    %176 = arith.addf %173, %175 : vector<128x16xf32>
    %cst_146 = arith.constant 0.000000e+00 : f32
    %177 = vector.broadcast %cst_146 : f32 to vector<128x16xf32>
    %178 = arith.maximumf %176, %177 : vector<128x16xf32>
    %179 = arith.truncf %178 : vector<128x16xf32> to vector<128x16xbf16>
    %c0_147 = arith.constant 0 : index
    %c0_148 = arith.constant 0 : index
    %180 = vector.load %arg6[%c0_147, %c0_148] : memref<16x128xbf16, #tpu.memory_space<vmem>>, vector<16x128xbf16>
    %cst_149 = arith.constant dense<0.000000e+00> : vector<16x16xf32>
    %181 = tpu.matmul %180, %179, %cst_149 {dimension_numbers = #tpu.dot_dimension_numbers<[1], [0], [0], [1], [0, 0, 1, 1], [], []>} : vector<16x128xbf16>, vector<128x16xbf16>, vector<16x16xf32> -> vector<16x16xf32>
    %c0_150 = arith.constant 0 : index
    %c0_151 = arith.constant 0 : index
    %182 = vector.load %arg7[%c0_150, %c0_151] : memref<16x1xf32, #tpu.memory_space<vmem>>, vector<16x1xf32>
    %183 = vector.broadcast %182 : vector<16x1xf32> to vector<16x16xf32>
    %184 = arith.addf %181, %183 : vector<16x16xf32>
    %c0_152 = arith.constant 0 : index
    %c0_153 = arith.constant 0 : index
    %185 = vector.load %arg8[%c0_152, %c0_153] : memref<16x16xf32, #tpu.memory_space<vmem>>, vector<16x16xf32>
    tpu.vector_store %arg8[%c0_152, %c0_153], %184 {strides = array<i32>} : memref<16x16xf32, #tpu.memory_space<vmem>>, vector<16x16xf32>,
    return
  }
}

</mosaic_0001>

<bundles_post_ra>
// kernel: mul.19
= control target key start
LH: loop header
LB: loop body
LE: loop exit
PB: predicated region body
PF: predicated region fallthrough
CT: control target
= control target key end

     0   :  { %vm4_vm0 = vcmask 1047556   ;;  %s429_s14 = smov 112   ;;  %s430_s10 = smov 96   ;;  %vm6_vm1 = vcmask 130048   ;;  %vm43_vm2 = vcmask 1048448   ;;  %vm86_vm3 = vcmask 917248   ;;  %s770_s0 = inlined_call_operand.vmem [shape: f32[2,2,8,8,16], index: 0, kind: input, shape index: {}]   ;;  %s771_s1 = inlined_call_operand.vmem [shape: f32[4096], index: 1, kind: output, shape index: {}]  }
   0x1   :  { %v350_v0 = vld [vmem:[%s770_s0 + $0x87] ss:$8 sm:$0xf]   ;;  %v358_v12 = vld [vmem:[%s770_s0 + $0x46] ss:$8 sm:$0xf]  }
   0x2   :  { %v351_v1 = vld [vmem:[%s770_s0 + $0x87] ss:$8 sm:$0xf0]   ;;  %v359_v13 = vld [vmem:[%s770_s0 + $0x46] ss:$8 sm:$0xf0]  }
   0x3   :  { %v61_v2 = vsel %vm4_vm0, %v351_v1, %v350_v0  ;;  %v345_v3 = vld [vmem:[%s770_s0 + $0x7] ss:$8 sm:$0xf]   ;;  %v356_v14 = vld [vmem:[%s770_s0 + $0x6] ss:$8 sm:$0xf]   ;;  %v93_v16 = vsel %vm4_vm0, %v359_v13, %v358_v12 }
   0x4   :  { %v346_v4 = vld [vmem:[%s770_s0 + $0x7] ss:$8 sm:$0xf0]   ;;  %62 = vrot.lane.b32.xlu1 %v61_v2, %s429_s14  ;;  %v357_v15 = vld [vmem:[%s770_s0 + $0x6] ss:$8 sm:$0xf0]  }
   0x5   :  { %v40_v5 = vsel %vm4_vm0, %v346_v4, %v345_v3  ;;  %v353_v6 = vld [vmem:[%s770_s0 + $0xc7] ss:$8 sm:$0xf]   ;;  %v83_v17 = vsel %vm4_vm0, %v357_v15, %v356_v14  ;;  %v364_v18 = vld [vmem:[%s770_s0 + $0xc6] ss:$8 sm:$0xf]  }
   0x6   :  { %v354_v7 = vld [vmem:[%s770_s0 + $0xc7] ss:$8 sm:$0xf0]   ;;  %41 = vrot.lane.b32.xlu0 %v40_v5, %s429_s14  ;;  %v365_v19 = vld [vmem:[%s770_s0 + $0xc6] ss:$8 sm:$0xf0]  }
   0x7   :  { %v72_v8 = vsel %vm4_vm0, %v354_v7, %v353_v6  ;;  %v347_v9 = vld [vmem:[%s770_s0 + $0x47] ss:$8 sm:$0xf]   ;;  %v361_v20 = vld [vmem:[%s770_s0 + $0x86] ss:$8 sm:$0xf]   ;;  %v115_v22 = vsel %vm4_vm0, %v365_v19, %v364_v18 }
   0x8   :  { %v348_v10 = vld [vmem:[%s770_s0 + $0x47] ss:$8 sm:$0xf0]   ;;  %73 = vrot.lane.b32.xlu1 %v72_v8, %s429_s14  ;;  %v362_v21 = vld [vmem:[%s770_s0 + $0x86] ss:$8 sm:$0xf0]  }
   0x9   :  { %v50_v11 = vsel %vm4_vm0, %v348_v10, %v347_v9  ;;  %v104_v23 = vsel %vm4_vm0, %v362_v21, %v361_v20  ;;  %v369_v24 = vld [vmem:[%s770_s0 + $0x45] ss:$8 sm:$0xf]   ;;  %s431_s27 = smov 80   ;;  %s432_s15 = smov 64   ;;  %vm129_vm4 = vcmask 786048  }
   0xa   :  { %51 = vrot.lane.b32.xlu0 %v50_v11, %s429_s14  ;;  %v370_v25 = vld [vmem:[%s770_s0 + $0x45] ss:$8 sm:$0xf0]   ;;  %v380_v36 = vld [vmem:[%s770_s0 + $0x44] ss:$8 sm:$0xf]  }
   0xb   :  { %v367_v26 = vld [vmem:[%s770_s0 + $0x5] ss:$8 sm:$0xf]   ;;  %v136_v28 = vsel %vm4_vm0, %v370_v25, %v369_v24  ;;  %v381_v37 = vld [vmem:[%s770_s0 + $0x44] ss:$8 sm:$0xf0]  }
   0xc   :  { %94 = vrot.lane.b32.xlu1 %v93_v16, %s430_s10  ;;  %v368_v27 = vld [vmem:[%s770_s0 + $0x5] ss:$8 sm:$0xf0]   ;;  %v378_v38 = vld [vmem:[%s770_s0 + $0x4] ss:$8 sm:$0xf]   ;;  %v179_v40 = vsel %vm4_vm0, %v381_v37, %v380_v36 }
   0xd   :  { %v126_v29 = vsel %vm4_vm0, %v368_v27, %v367_v26  ;;  %v375_v30 = vld [vmem:[%s770_s0 + $0xc5] ss:$8 sm:$0xf]   ;;  %v379_v39 = vld [vmem:[%s770_s0 + $0x4] ss:$8 sm:$0xf0]  }
   0xe   :  { %84 = vrot.lane.b32.xlu0 %v83_v17, %s430_s10  ;;  %v376_v31 = vld [vmem:[%s770_s0 + $0xc5] ss:$8 sm:$0xf0]   ;;  %v169_v41 = vsel %vm4_vm0, %v379_v39, %v378_v38  ;;  %v386_v42 = vld [vmem:[%s770_s0 + $0xc4] ss:$8 sm:$0xf]  }
   0xf   :  { %v372_v32 = vld [vmem:[%s770_s0 + $0x85] ss:$8 sm:$0xf]   ;;  %v158_v34 = vsel %vm4_vm0, %v376_v31, %v375_v30  ;;  %v387_v43 = vld [vmem:[%s770_s0 + $0xc4] ss:$8 sm:$0xf0]  }
  0x10   :  { %116 = vrot.lane.b32.xlu1 %v115_v22, %s430_s10  ;;  %v373_v33 = vld [vmem:[%s770_s0 + $0x85] ss:$8 sm:$0xf0]   ;;  %v383_v44 = vld [vmem:[%s770_s0 + $0x84] ss:$8 sm:$0xf]   ;;  %v201_v46 = vsel %vm4_vm0, %v387_v43, %v386_v42 }
  0x11   :  { %v147_v35 = vsel %vm4_vm0, %v373_v33, %v372_v32  ;;  %v384_v45 = vld [vmem:[%s770_s0 + $0x84] ss:$8 sm:$0xf0]   ;;  %v391_v47 = vld [vmem:[%s770_s0 + $0x43] ss:$8 sm:$0xf]  }
  0x12   :  { %105 = vrot.lane.b32.xlu0 %v104_v23, %s430_s10  ;;  %v190_v48 = vsel %vm4_vm0, %v384_v45, %v383_v44  ;;  %v392_v49 = vld [vmem:[%s770_s0 + $0x43] ss:$8 sm:$0xf0]   ;;  %v339_v52 = vld [vmem:[%s770_s0 + $0x80] ss:$8 sm:$0xf]  }
  0x13   :  { %v389_v50 = vld [vmem:[%s770_s0 + $0x3] ss:$8 sm:$0xf]   ;;  %v340_v55 = vld [vmem:[%s770_s0 + $0x80] ss:$8 sm:$0xf0]   ;;  %v222_v57 = vsel %vm4_vm0, %v392_v49, %v391_v47 }
  0x14   :  { %137 = vrot.lane.b32.xlu1 %v136_v28, %s431_s27  ;;  %v390_v51 = vld [vmem:[%s770_s0 + $0x3] ss:$8 sm:$0xf0]   ;;  %v2_v56 = vld [vmem:[%s770_s0] ss:$8 sm:$0xf]   ;;  %v22_v59 = vsel %vm4_vm0, %v340_v55, %v339_v52 }
  0x15   :  { %v397_v53 = vld [vmem:[%s770_s0 + $0xc3] ss:$8 sm:$0xf]   ;;  %v3_v60 = vld [vmem:[%s770_s0] ss:$8 sm:$0xf0]   ;;  %v212_v62 = vsel %vm4_vm0, %v390_v51, %v389_v50 }
  0x16   :  { %127 = vrot.lane.b32.xlu0 %v126_v29, %s431_s27  ;;  %v398_v54 = vld [vmem:[%s770_s0 + $0xc3] ss:$8 sm:$0xf0]   ;;  %v342_v61 = vld [vmem:[%s770_s0 + $0xc0] ss:$8 sm:$0xf]   ;;  %v5_v63 = vsel %vm4_vm0, %v3_v60, %v2_v56 }
  0x17   :  { %v394_v58 = vld [vmem:[%s770_s0 + $0x83] ss:$8 sm:$0xf]   ;;  %341 = vst.msk [vmem:[%s771_s1 + $0x10] sm:$0xff] %vm6_vm1, %v22_v59   ;;  %7 = vst.msk [vmem:[%s771_s1] sm:$0xff] %vm6_vm1, %v5_v63   ;;  %s433_s23 = smov 48   ;;  %v244_v6 = vsel %vm4_vm0, %v398_v54, %v397_v53 }
  0x18   :  { %159 = vrot.lane.b32.xlu1 %v158_v34, %s431_s27  ;;  %v343_v0 = vld [vmem:[%s770_s0 + $0xc0] ss:$8 sm:$0xf0]   ;;  %v395_v2 = vld [vmem:[%s770_s0 + $0x83] ss:$8 sm:$0xf0]  }
  0x19   :  { %v336_v1 = vld [vmem:[%s770_s0 + $0x40] ss:$8 sm:$0xf]   ;;  %v31_v3 = vsel %vm4_vm0, %v343_v0, %v342_v61  ;;  %v233_v7 = vsel %vm4_vm0, %v395_v2, %v394_v58  ;;  %v402_v8 = vld [vmem:[%s770_s0 + $0x42] ss:$8 sm:$0xf]  }
  0x1a   :  { %148 = vrot.lane.b32.xlu0 %v147_v35, %s431_s27  ;;  %v337_v4 = vld [vmem:[%s770_s0 + $0x40] ss:$8 sm:$0xf0]   ;;  %344 = vst.msk [vmem:[%s771_s1 + $0x18] sm:$0xff] %vm6_vm1, %v31_v3   ;;  %vm172_vm5 = vcmask 654848   ;;  %vm215_vm6 = vcmask 523648  }
  0x1b   :  { %v13_v5 = vsel %vm4_vm0, %v337_v4, %v336_v1  ;;  %v403_v9 = vld [vmem:[%s770_s0 + $0x42] ss:$8 sm:$0xf0]   ;;  %v413_v20 = vld [vmem:[%s770_s0 + $0x41] ss:$8 sm:$0xf]  }
  0x1c   :  { %180 = vrot.lane.b32.xlu1 %v179_v40, %s432_s15  ;;  %338 = vst.msk [vmem:[%s771_s1 + $0x8] sm:$0xff] %vm6_vm1, %v13_v5   ;;  %v400_v10 = vld [vmem:[%s770_s0 + $0x2] ss:$8 sm:$0xf]   ;;  %v265_v12 = vsel %vm4_vm0, %v403_v9, %v402_v8  ;;  %vm258_vm7 = vcmask 392448   ;;  %vm301_vm8 = vcmask 261248  }
  0x1d   :  { %v401_v11 = vld [vmem:[%s770_s0 + $0x2] ss:$8 sm:$0xf0]   ;;  %v414_v21 = vld [vmem:[%s770_s0 + $0x41] ss:$8 sm:$0xf0]  }
  0x1e   :  { %170 = vrot.lane.b32.xlu0 %v169_v41, %s432_s15  ;;  %v255_v13 = vsel %vm4_vm0, %v401_v11, %v400_v10  ;;  %v408_v14 = vld [vmem:[%s770_s0 + $0xc2] ss:$8 sm:$0xf]   ;;  %v411_v22 = vld [vmem:[%s770_s0 + $0x1] ss:$8 sm:$0xf]   ;;  %v308_v24 = vsel %vm4_vm0, %v414_v21, %v413_v20 }
  0x1f   :  { %v409_v15 = vld [vmem:[%s770_s0 + $0xc2] ss:$8 sm:$0xf0]   ;;  %v412_v23 = vld [vmem:[%s770_s0 + $0x1] ss:$8 sm:$0xf0]  }
  0x20   :  { %202 = vrot.lane.b32.xlu1 %v201_v46, %s432_s15  ;;  %v405_v16 = vld [vmem:[%s770_s0 + $0x82] ss:$8 sm:$0xf]   ;;  %v287_v18 = vsel %vm4_vm0, %v409_v15, %v408_v14  ;;  %v298_v25 = vsel %vm4_vm0, %v412_v23, %v411_v22  ;;  %v419_v26 = vld [vmem:[%s770_s0 + $0xc1] ss:$8 sm:$0xf]  }
  0x21   :  { %v406_v17 = vld [vmem:[%s770_s0 + $0x82] ss:$8 sm:$0xf0]   ;;  %v420_v27 = vld [vmem:[%s770_s0 + $0xc1] ss:$8 sm:$0xf0]  }
  0x22   :  { %191 = vrot.lane.b32.xlu0 %v190_v48, %s432_s15  ;;  %s434_s15 = smov 32   ;;  %v276_v19 = vsel %vm4_vm0, %v406_v17, %v405_v16  ;;  %v416_v28 = vld [vmem:[%s770_s0 + $0x81] ss:$8 sm:$0xf]   ;;  %v330_v30 = vsel %vm4_vm0, %v420_v27, %v419_v26 }
  0x23   :  { %v417_v29 = vld [vmem:[%s770_s0 + $0x81] ss:$8 sm:$0xf0]   ;;  %s435_s0 = smov 16  }
  0x24   :  { %223 = vrot.lane.b32.xlu1 %v222_v57, %s433_s23  ;;  %v319_v31 = vsel %vm4_vm0, %v417_v29, %v416_v28 }
  0x26   :  { %213 = vrot.lane.b32.xlu0 %v212_v62, %s433_s23 }
  0x28   :  { %245 = vrot.lane.b32.xlu1 %v244_v6, %s433_s23 }
  0x2a   :  { %234 = vrot.lane.b32.xlu0 %v233_v7, %s433_s23 }
  0x2c   :  { %266 = vrot.lane.b32.xlu1 %v265_v12, %s434_s15 }
  0x2e   :  { %256 = vrot.lane.b32.xlu0 %v255_v13, %s434_s15 }
  0x30   :  { %288 = vrot.lane.b32.xlu1 %v287_v18, %s434_s15 }
  0x32   :  { %277 = vrot.lane.b32.xlu0 %v276_v19, %s434_s15 }
  0x34   :  { %309 = vrot.lane.b32.xlu1 %v308_v24, %s435_s0 }
  0x36   :  { %299 = vrot.lane.b32.xlu0 %v298_v25, %s435_s0 }
  0x38   :  { %331 = vrot.lane.b32.xlu1 %v330_v30, %s435_s0 }
  0x3a   :  { %320 = vrot.lane.b32.xlu0 %v319_v31, %s435_s0 }
  0x76   :  { %v63_v32 = vpop.permute.xlu1 %62  }
  0x77   :  { %352 = vst.msk [vmem:[%s771_s1 + $0x10] sm:$0xff] %vm43_vm2, %v63_v32  }
  0x78   :  { %v42_v33 = vpop.permute.xlu0 %41  }
  0x79   :  { %44 = vst.msk [vmem:[%s771_s1] sm:$0xff] %vm43_vm2, %v42_v33  }
  0x7a   :  { %v74_v34 = vpop.permute.xlu1 %73  }
  0x7b   :  { %355 = vst.msk [vmem:[%s771_s1 + $0x18] sm:$0xff] %vm43_vm2, %v74_v34  }
  0x7c   :  { %v52_v35 = vpop.permute.xlu0 %51  }
  0x7d   :  { %349 = vst.msk [vmem:[%s771_s1 + $0x8] sm:$0xff] %vm43_vm2, %v52_v35  }
  0x7e   :  { %v95_v36 = vpop.permute.xlu1 %94  }
  0x7f   :  { %360 = vst.msk [vmem:[%s771_s1 + $0x8] sm:$0xff] %vm86_vm3, %v95_v36  }
  0x80   :  { %v85_v37 = vpop.permute.xlu0 %84  }
  0x81   :  { %87 = vst.msk [vmem:[%s771_s1] sm:$0xff] %vm86_vm3, %v85_v37  }
  0x82   :  { %v117_v38 = vpop.permute.xlu1 %116  }
  0x83   :  { %366 = vst.msk [vmem:[%s771_s1 + $0x18] sm:$0xff] %vm86_vm3, %v117_v38  }
  0x84   :  { %v106_v39 = vpop.permute.xlu0 %105  }
  0x85   :  { %363 = vst.msk [vmem:[%s771_s1 + $0x10] sm:$0xff] %vm86_vm3, %v106_v39  }
  0x86   :  { %v138_v40 = vpop.permute.xlu1 %137  }
  0x87   :  { %371 = vst.msk [vmem:[%s771_s1 + $0x8] sm:$0xff] %vm129_vm4, %v138_v40  }
  0x88   :  { %v128_v41 = vpop.permute.xlu0 %127  }
  0x89   :  { %130 = vst.msk [vmem:[%s771_s1] sm:$0xff] %vm129_vm4, %v128_v41  }
  0x8a   :  { %v160_v42 = vpop.permute.xlu1 %159  }
  0x8b   :  { %377 = vst.msk [vmem:[%s771_s1 + $0x18] sm:$0xff] %vm129_vm4, %v160_v42  }
  0x8c   :  { %v149_v43 = vpop.permute.xlu0 %148  }
  0x8d   :  { %374 = vst.msk [vmem:[%s771_s1 + $0x10] sm:$0xff] %vm129_vm4, %v149_v43  }
  0x8e   :  { %v181_v44 = vpop.permute.xlu1 %180  }
  0x8f   :  { %382 = vst.msk [vmem:[%s771_s1 + $0x8] sm:$0xff] %vm172_vm5, %v181_v44  }
  0x90   :  { %v171_v45 = vpop.permute.xlu0 %170  }
  0x91   :  { %173 = vst.msk [vmem:[%s771_s1] sm:$0xff] %vm172_vm5, %v171_v45  }
  0x92   :  { %v203_v46 = vpop.permute.xlu1 %202  }
  0x93   :  { %388 = vst.msk [vmem:[%s771_s1 + $0x18] sm:$0xff] %vm172_vm5, %v203_v46  }
  0x94   :  { %v192_v47 = vpop.permute.xlu0 %191  }
  0x95   :  { %385 = vst.msk [vmem:[%s771_s1 + $0x10] sm:$0xff] %vm172_vm5, %v192_v47  }
  0x96   :  { %v224_v48 = vpop.permute.xlu1 %223  }
  0x97   :  { %393 = vst.msk [vmem:[%s771_s1 + $0x8] sm:$0xff] %vm215_vm6, %v224_v48  }
  0x98   :  { %v214_v49 = vpop.permute.xlu0 %213  }
  0x99   :  { %216 = vst.msk [vmem:[%s771_s1] sm:$0xff] %vm215_vm6, %v214_v49  }
  0x9a   :  { %v246_v50 = vpop.permute.xlu1 %245  }
  0x9b   :  { %399 = vst.msk [vmem:[%s771_s1 + $0x18] sm:$0xff] %vm215_vm6, %v246_v50  }
  0x9c   :  { %v235_v51 = vpop.permute.xlu0 %234  }
  0x9d   :  { %396 = vst.msk [vmem:[%s771_s1 + $0x10] sm:$0xff] %vm215_vm6, %v235_v51  }
  0x9e   :  { %v267_v52 = vpop.permute.xlu1 %266  }
  0x9f   :  { %404 = vst.msk [vmem:[%s771_s1 + $0x8] sm:$0xff] %vm258_vm7, %v267_v52  }
  0xa0   :  { %v257_v53 = vpop.permute.xlu0 %256  }
  0xa1   :  { %259 = vst.msk [vmem:[%s771_s1] sm:$0xff] %vm258_vm7, %v257_v53  }
  0xa2   :  { %v289_v54 = vpop.permute.xlu1 %288  }
  0xa3   :  { %410 = vst.msk [vmem:[%s771_s1 + $0x18] sm:$0xff] %vm258_vm7, %v289_v54  }
  0xa4   :  { %v278_v55 = vpop.permute.xlu0 %277  }
  0xa5   :  { %407 = vst.msk [vmem:[%s771_s1 + $0x10] sm:$0xff] %vm258_vm7, %v278_v55  }
  0xa6   :  { %v310_v56 = vpop.permute.xlu1 %309  }
  0xa7   :  { %415 = vst.msk [vmem:[%s771_s1 + $0x8] sm:$0xff] %vm301_vm8, %v310_v56  }
  0xa8   :  { %v300_v57 = vpop.permute.xlu0 %299  }
  0xa9   :  { %302 = vst.msk [vmem:[%s771_s1] sm:$0xff] %vm301_vm8, %v300_v57  }
  0xaa   :  { %v332_v58 = vpop.permute.xlu1 %331  }
  0xab   :  { %421 = vst.msk [vmem:[%s771_s1 + $0x18] sm:$0xff] %vm301_vm8, %v332_v58  }
  0xac   :  { %v321_v59 = vpop.permute.xlu0 %320  }
  0xad   :  { %418 = vst.msk [vmem:[%s771_s1 + $0x10] sm:$0xff] %vm301_vm8, %v321_v59  }

// kernel: clf_img_forward.1
= control target key start
LH: loop header
LB: loop body
LE: loop exit
PB: predicated region body
PF: predicated region fallthrough
CT: control target
= control target key end

     0   :  { %v8154_v3 = vmov 0   ;;  %vm229_vm0 = vcmask 523264   ;;  %vm1899_vm1 = vcmask 1043456   ;;  %vm1901_vm2 = vcmask 916480   ;;  %s8157_s15 = smov 64   ;;  %s8158_s16 = smov 32   ;;  %s11009_s0 = inlined_call_operand.vmem [shape: bf16[64,4096], index: 0, kind: input, shape index: {}]   ;;  %s11010_s1 = inlined_call_operand.vmem [shape: bf16[16,64], index: 1, kind: input, shape index: {}]   ;;  %s11011_s2 = inlined_call_operand.vmem [shape: bf16[20,256], index: 2, kind: input, shape index: {}]   ;;  %s11012_s3 = inlined_call_operand.vmem [shape: f32[20,1], index: 3, kind: input, shape index: {}]   ;;  %s11013_s4 = inlined_call_operand.vmem [shape: bf16[128,1568], index: 4, kind: input, shape index: {}]   ;;  %s11014_s5 = inlined_call_operand.vmem [shape: f32[128,1], index: 5, kind: input, shape index: {}]   ;;  %s11015_s7 = inlined_call_operand.vmem [shape: f32[16,1], index: 7, kind: input, shape index: {}]   ;;  %s11016_s6 = inlined_call_operand.vmem [shape: bf16[16,128], index: 6, kind: input, shape index: {}]   ;;  %s11017_s8 = inlined_call_operand.vmem [shape: f32[16,16], index: 8, kind: output, shape index: {}]  }
   0x1   :  { %v56_v0 = vld [vmem:[%s11009_s0 + $0x300] sm:$0xff]  ;;  %v58_v2 = vld [vmem:[%s11009_s0 + $0x310] sm:$0xff]  ;;  %265 = vmatprep.mubr.bf16.mxu1 %v8154_v3  ;;  %1815 = vst [vmem:[#allocation2 + $0x80] sm:$0xff] %v8154_v3  ;;  %1816 = vst [vmem:[#allocation2 + $0x108] sm:$0xff] %v8154_v3  ;;  %351 = vmatprep.mubr.bf16.mxu0 %v8154_v3  ;;  %vm3645_vm3 = vcmask 125952   ;;  %vm3855_vm4 = vcmask 123904  }
   0x2   :  { %v60_v1 = vld [vmem:[%s11009_s0 + $0x380] sm:$0xff]  ;;  %v62_v5 = vld [vmem:[%s11009_s0 + $0x390] sm:$0xff]  ;;  %7813 = vset.pattern.permute.xlu1 %v8154_v3  ;;  %7812 = vset.pattern.permute.xlu0 %v8154_v3  ;;  %v57_v31 = vld [vmem:[%s11009_s0 + $0x308] sm:$0xff]  ;;  %s8159_s17 = smov 96   ;;  %s8160_s18 = smov 48   ;;  %vm5957_vm5 = vcmask 261120  }
   0x3   :  { %v6779_v4 = vcombine.high %v56_v0, %v60_v1  ;;  %v6778_v6 = vcombine.low %v56_v0, %v60_v1  ;;  %v48_v7 = vld [vmem:[%s11009_s0 + $0x200] sm:$0xff]  ;;  %v6783_v9 = vcombine.high %v58_v2, %v62_v5  ;;  %v6782_v10 = vcombine.low %v58_v2, %v62_v5  ;;  %v50_v12 = vld [vmem:[%s11009_s0 + $0x210] sm:$0xff]  ;;  %v61_v32 = vld [vmem:[%s11009_s0 + $0x388] sm:$0xff] }
   0x4   :  { %v52_v8 = vld [vmem:[%s11009_s0 + $0x280] sm:$0xff]  ;;  %v54_v13 = vld [vmem:[%s11009_s0 + $0x290] sm:$0xff]  ;;  %v6781_v37 = vcombine.high %v57_v31, %v61_v32  ;;  %v49_v39 = vld [vmem:[%s11009_s0 + $0x208] sm:$0xff]  ;;  %v6780_v44 = vcombine.low %v57_v31, %v61_v32  ;;  %vm8162_vm6 = vmmov 0   ;;  %vm6746_vm7 = vcmask 130048  }
   0x5   :  { %v6771_v11 = vcombine.high %v48_v7, %v52_v8  ;;  %v40_v14 = vld [vmem:[%s11009_s0 + $0x100] sm:$0xff]  ;;  %241 = vmatprep.subr.bf16.mxu1 %v6779_v4  ;;  %v6775_v15 = vcombine.high %v50_v12, %v54_v13  ;;  %v42_v17 = vld [vmem:[%s11009_s0 + $0x110] sm:$0xff]  ;;  %327 = vmatprep.subr.bf16.mxu0 %v6783_v9  ;;  %v6770_v19 = vcombine.low %v48_v7, %v52_v8  ;;  %v53_v40 = vld [vmem:[%s11009_s0 + $0x288] sm:$0xff] }
   0x6   :  { %v44_v16 = vld [vmem:[%s11009_s0 + $0x180] sm:$0xff]  ;;  %v46_v18 = vld [vmem:[%s11009_s0 + $0x190] sm:$0xff]  ;;  %242 = vmatpush1.bf16.msra.mxu1 %v6778_v6  ;;  %328 = vmatpush1.bf16.msra.mxu0 %v6782_v10  ;;  %v6774_v20 = vcombine.low %v50_v12, %v54_v13  ;;  %v6773_v46 = vcombine.high %v49_v39, %v53_v40  ;;  %v41_v48 = vld [vmem:[%s11009_s0 + $0x108] sm:$0xff]  ;;  %v6772_v52 = vcombine.low %v49_v39, %v53_v40 }
   0x7   :  { %243 = vmatprep.subr.bf16.mxu1 %v6771_v11  ;;  %v6763_v21 = vcombine.high %v40_v14, %v44_v16  ;;  %329 = vmatprep.subr.bf16.mxu0 %v6775_v15  ;;  %v6767_v22 = vcombine.high %v42_v17, %v46_v18  ;;  %v32_v23 = vld [vmem:[%s11009_s0] sm:$0xff]  ;;  %v34_v25 = vld [vmem:[%s11009_s0 + $0x10] sm:$0xff]  ;;  %v6762_v27 = vcombine.low %v40_v14, %v44_v16  ;;  %v45_v49 = vld [vmem:[%s11009_s0 + $0x188] sm:$0xff] }
   0x8   :  { %v36_v24 = vld [vmem:[%s11009_s0 + $0x80] sm:$0xff]  ;;  %v38_v26 = vld [vmem:[%s11009_s0 + $0x90] sm:$0xff]  ;;  %v6766_v28 = vcombine.low %v42_v17, %v46_v18  ;;  %v6765_v54 = vcombine.high %v41_v48, %v45_v49  ;;  %v33_v56 = vld [vmem:[%s11009_s0 + $0x8] sm:$0xff]  ;;  %v6764_v60 = vcombine.low %v41_v48, %v45_v49 }
   0x9   :  { %v6755_v29 = vcombine.high %v32_v23, %v36_v24  ;;  %v6759_v30 = vcombine.high %v34_v25, %v38_v26  ;;  %v503_v33 = vld [vmem:[%s11009_s0 + $0x320] sm:$0xff]  ;;  %v6754_v35 = vcombine.low %v32_v23, %v36_v24  ;;  %v6758_v36 = vcombine.low %v34_v25, %v38_v26  ;;  %v37_v57 = vld [vmem:[%s11009_s0 + $0x88] sm:$0xff]  ;;  %v59_v0 = vld [vmem:[%s11009_s0 + $0x318] sm:$0xff] }
   0xa   :  { %244 = vmatpush1.bf16.msra.mxu1 %v6770_v19  ;;  %330 = vmatpush1.bf16.msra.mxu0 %v6774_v20  ;;  %v507_v34 = vld [vmem:[%s11009_s0 + $0x3a0] sm:$0xff]  ;;  %v6757_v62 = vcombine.high %v33_v56, %v37_v57  ;;  %v63_v1 = vld [vmem:[%s11009_s0 + $0x398] sm:$0xff]  ;;  %v505_v2 = vld [vmem:[%s11009_s0 + $0x330] sm:$0xff]  ;;  %v6756_v5 = vcombine.low %v33_v56, %v37_v57 }
   0xb   :  { %245 = vmatprep.subr.bf16.mxu1 %v6763_v21  ;;  %331 = vmatprep.subr.bf16.mxu0 %v6767_v22  ;;  %v6824_v38 = vcombine.high %v503_v33, %v507_v34  ;;  %v8283_v41 = vld [vmem:[%s11010_s1] sm:$0xff]   ;;  %v6823_v45 = vcombine.low %v503_v33, %v507_v34  ;;  %v509_v4 = vld [vmem:[%s11009_s0 + $0x3b0] sm:$0xff]  ;;  %v6785_v7 = vcombine.high %v59_v0, %v63_v1  ;;  %v51_v9 = vld [vmem:[%s11009_s0 + $0x218] sm:$0xff] }
   0xc   :  { %v495_v42 = vld [vmem:[%s11009_s0 + $0x220] sm:$0xff]  ;;  %v6828_v8 = vcombine.high %v505_v2, %v509_v4  ;;  %v55_v10 = vld [vmem:[%s11009_s0 + $0x298] sm:$0xff]  ;;  %v497_v11 = vld [vmem:[%s11009_s0 + $0x230] sm:$0xff]  ;;  %v6784_v13 = vcombine.low %v59_v0, %v63_v1  ;;  %v6827_v15 = vcombine.low %v505_v2, %v509_v4 }
   0xd   :  { %v499_v43 = vld [vmem:[%s11009_s0 + $0x2a0] sm:$0xff]  ;;  %v501_v12 = vld [vmem:[%s11009_s0 + $0x2b0] sm:$0xff]  ;;  %v6777_v16 = vcombine.high %v51_v9, %v55_v10  ;;  %v43_v18 = vld [vmem:[%s11009_s0 + $0x118] sm:$0xff]  ;;  %v6776_v22 = vcombine.low %v51_v9, %v55_v10 }
   0xe   :  { %246 = vmatpush1.bf16.msra.mxu1 %v6762_v27  ;;  %332 = vmatpush1.bf16.msra.mxu0 %v6766_v28  ;;  %v6816_v47 = vcombine.high %v495_v42, %v499_v43  ;;  %v487_v50 = vld [vmem:[%s11009_s0 + $0x120] sm:$0xff]  ;;  %v6815_v53 = vcombine.low %v495_v42, %v499_v43  ;;  %v6820_v17 = vcombine.high %v497_v11, %v501_v12  ;;  %v47_v19 = vld [vmem:[%s11009_s0 + $0x198] sm:$0xff]  ;;  %v489_v20 = vld [vmem:[%s11009_s0 + $0x130] sm:$0xff] }
   0xf   :  { %247 = vmatprep.subr.bf16.mxu1 %v6755_v29  ;;  %333 = vmatprep.subr.bf16.mxu0 %v6759_v30  ;;  %v491_v51 = vld [vmem:[%s11009_s0 + $0x1a0] sm:$0xff]  ;;  %v493_v21 = vld [vmem:[%s11009_s0 + $0x1b0] sm:$0xff]  ;;  %v6819_v23 = vcombine.low %v497_v11, %v501_v12  ;;  %v6769_v24 = vcombine.high %v43_v18, %v47_v19  ;;  %v35_v26 = vld [vmem:[%s11009_s0 + $0x18] sm:$0xff]  ;;  %v6768_v30 = vcombine.low %v43_v18, %v47_v19 }
  0x10   :  { %v6808_v55 = vcombine.high %v487_v50, %v491_v51  ;;  %v479_v58 = vld [vmem:[%s11009_s0 + $0x20] sm:$0xff]  ;;  %v6807_v61 = vcombine.low %v487_v50, %v491_v51  ;;  %v6812_v25 = vcombine.high %v489_v20, %v493_v21  ;;  %v39_v27 = vld [vmem:[%s11009_s0 + $0x98] sm:$0xff]  ;;  %v481_v28 = vld [vmem:[%s11009_s0 + $0x30] sm:$0xff]  ;;  %v6811_v31 = vcombine.low %v489_v20, %v493_v21 }
  0x11   :  { %v483_v59 = vld [vmem:[%s11009_s0 + $0xa0] sm:$0xff]  ;;  %v485_v29 = vld [vmem:[%s11009_s0 + $0xb0] sm:$0xff]  ;;  %v6761_v32 = vcombine.high %v35_v26, %v39_v27  ;;  %v504_v34 = vld [vmem:[%s11009_s0 + $0x328] sm:$0xff] }
  0x12   :  { %248 = vmatpush1.bf16.msra.mxu1 %v6754_v35  ;;  %334 = vmatpush1.bf16.msra.mxu0 %v6758_v36  ;;  %v6800_v63 = vcombine.high %v479_v58, %v483_v59  ;;  %v6799_v6 = vcombine.low %v479_v58, %v483_v59  ;;  %v8348_v14 = vld [vmem:[%s11010_s1] sm:$0xff]   ;;  %v6804_v33 = vcombine.high %v481_v28, %v485_v29  ;;  %v508_v35 = vld [vmem:[%s11009_s0 + $0x3a8] sm:$0xff]  ;;  %v506_v2 = vld [vmem:[%s11009_s0 + $0x338] sm:$0xff] }
  0x13   :  { %284 = vmatprep.subr.bf16.mxu1 %v6781_v37  ;;  %687 = vmatprep.subr.bf16.mxu0 %v6824_v38  ;;  %v949_v36 = vld [vmem:[%s11009_s0 + $0x340] sm:$0xff]  ;;  %v6760_v38 = vcombine.low %v35_v26, %v39_v27  ;;  %v6803_v39 = vcombine.low %v481_v28, %v485_v29  ;;  %v6826_v40 = vcombine.high %v504_v34, %v508_v35  ;;  %v496_v43 = vld [vmem:[%s11009_s0 + $0x228] sm:$0xff]  ;;  %v510_v4 = vld [vmem:[%s11009_s0 + $0x3b8] sm:$0xff] }
  0x14   :  { %v953_v37 = vld [vmem:[%s11009_s0 + $0x3c0] sm:$0xff]  ;;  %v488_v51 = vld [vmem:[%s11009_s0 + $0x128] sm:$0xff]  ;;  %v6830_v9 = vcombine.high %v506_v2, %v510_v4  ;;  %v498_v11 = vld [vmem:[%s11009_s0 + $0x238] sm:$0xff] }
  0x15   :  { %6786 = vmatmul.mubr.msk.bf16.vlgmr.msra.gmra.mxu1 %vm229_vm0, %v8283_v41  ;;  %6788 = vmatmul.mubr.msk.bf16.vlgmr.msra.gmra.mxu0 %vm229_vm0, %v8283_v41  ;;  %v6869_v42 = vcombine.high %v949_v36, %v953_v37  ;;  %v6868_v48 = vcombine.low %v949_v36, %v953_v37  ;;  %v484_v59 = vld [vmem:[%s11009_s0 + $0xa8] sm:$0xff]  ;;  %v502_v12 = vld [vmem:[%s11009_s0 + $0x2b8] sm:$0xff] }
  0x16   :  { %285 = vmatpush1.bf16.msra.mxu1 %v6780_v44  ;;  %688 = vmatpush1.bf16.msra.mxu0 %v6823_v45  ;;  %v500_v44 = vld [vmem:[%s11009_s0 + $0x2a8] sm:$0xff]  ;;  %v941_v45 = vld [vmem:[%s11009_s0 + $0x240] sm:$0xff]  ;;  %v6822_v19 = vcombine.high %v498_v11, %v502_v12  ;;  %v490_v21 = vld [vmem:[%s11009_s0 + $0x138] sm:$0xff] }
  0x17   :  { %286 = vmatprep.subr.bf16.mxu1 %v6773_v46  ;;  %689 = vmatprep.subr.bf16.mxu0 %v6816_v47  ;;  %v945_v46 = vld [vmem:[%s11009_s0 + $0x2c0] sm:$0xff]  ;;  %v6825_v47 = vcombine.low %v504_v34, %v508_v35  ;;  %v6818_v49 = vcombine.high %v496_v43, %v500_v44  ;;  %v482_v29 = vld [vmem:[%s11009_s0 + $0x38] sm:$0xff]  ;;  %v950_v37 = vld [vmem:[%s11009_s0 + $0x348] sm:$0xff] }
  0x18   :  { %308 = vmatprep.mubr.bf16.mxu1 %v8154_v3  ;;  %711 = vmatprep.mubr.bf16.mxu0 %v8154_v3  ;;  %v6861_v50 = vcombine.high %v941_v45, %v945_v46  ;;  %v6860_v56 = vcombine.low %v941_v45, %v945_v46  ;;  %v942_v46 = vld [vmem:[%s11009_s0 + $0x248] sm:$0xff] }
  0x1a   :  { %287 = vmatpush1.bf16.msra.mxu1 %v6772_v52  ;;  %690 = vmatpush1.bf16.msra.mxu0 %v6815_v53  ;;  %v492_v52 = vld [vmem:[%s11009_s0 + $0x1a8] sm:$0xff]  ;;  %v933_v53 = vld [vmem:[%s11009_s0 + $0x140] sm:$0xff] }
  0x1b   :  { %288 = vmatprep.subr.bf16.mxu1 %v6765_v54  ;;  %691 = vmatprep.subr.bf16.mxu0 %v6808_v55  ;;  %v937_v54 = vld [vmem:[%s11009_s0 + $0x1c0] sm:$0xff]  ;;  %v6817_v55 = vcombine.low %v496_v43, %v500_v44  ;;  %v6810_v57 = vcombine.high %v488_v51, %v492_v52 }
  0x1c   :  { %v6853_v58 = vcombine.high %v933_v53, %v937_v54 }
  0x1e   :  { %289 = vmatpush1.bf16.msra.mxu1 %v6764_v60  ;;  %692 = vmatpush1.bf16.msra.mxu0 %v6807_v61  ;;  %v925_v60 = vld [vmem:[%s11009_s0 + $0x40] sm:$0xff] }
  0x1f   :  { %290 = vmatprep.subr.bf16.mxu1 %v6757_v62  ;;  %693 = vmatprep.subr.bf16.mxu0 %v6800_v63  ;;  %v929_v61 = vld [vmem:[%s11009_s0 + $0xc0] sm:$0xff]  ;;  %v6809_v62 = vcombine.low %v488_v51, %v492_v52  ;;  %v6852_v63 = vcombine.low %v933_v53, %v937_v54  ;;  %v934_v54 = vld [vmem:[%s11009_s0 + $0x148] sm:$0xff] }
  0x20   :  { %v6845_v1 = vcombine.high %v925_v60, %v929_v61 }
  0x22   :  { %291 = vmatpush1.bf16.msra.mxu1 %v6756_v5  ;;  %694 = vmatpush1.bf16.msra.mxu0 %v6799_v6  ;;  %v951_v5 = vld [vmem:[%s11009_s0 + $0x350] sm:$0xff] }
  0x23   :  { %370 = vmatprep.subr.bf16.mxu1 %v6785_v7  ;;  %773 = vmatprep.subr.bf16.mxu0 %v6828_v8  ;;  %v955_v6 = vld [vmem:[%s11009_s0 + $0x3d0] sm:$0xff]  ;;  %v6844_v8 = vcombine.low %v925_v60, %v929_v61  ;;  %v930_v61 = vld [vmem:[%s11009_s0 + $0xc8] sm:$0xff] }
  0x24   :  { %v6873_v10 = vcombine.high %v951_v5, %v955_v6  ;;  %v6872_v18 = vcombine.low %v951_v5, %v955_v6  ;;  %v952_v5 = vld [vmem:[%s11009_s0 + $0x358] sm:$0xff] }
  0x25   :  { %6787 = vmatmul.mubr.msk.bf16.vlgmr.msra.gmra.mxu1 %vm229_vm0, %v8283_v41  ;;  %6831 = vmatmul.mubr.msk.bf16.vlgmr.msra.gmra.mxu0 %vm229_vm0, %v8348_v14  ;;  %v956_v6 = vld [vmem:[%s11009_s0 + $0x3d8] sm:$0xff] }
  0x26   :  { %371 = vmatpush1.bf16.msra.mxu1 %v6784_v13  ;;  %774 = vmatpush1.bf16.msra.mxu0 %v6827_v15  ;;  %v943_v13 = vld [vmem:[%s11009_s0 + $0x250] sm:$0xff] }
  0x27   :  { %372 = vmatprep.subr.bf16.mxu1 %v6777_v16  ;;  %775 = vmatprep.subr.bf16.mxu0 %v6820_v17  ;;  %v947_v15 = vld [vmem:[%s11009_s0 + $0x2d0] sm:$0xff]  ;;  %v6829_v16 = vcombine.low %v506_v2, %v510_v4  ;;  %v8461_v17 = vld [vmem:[%s11010_s1] sm:$0xff]  }
  0x28   :  { %394 = vmatprep.mubr.bf16.mxu1 %v8154_v3  ;;  %797 = vmatprep.mubr.bf16.mxu0 %v8154_v3  ;;  %v6865_v20 = vcombine.high %v943_v13, %v947_v15  ;;  %v6864_v26 = vcombine.low %v943_v13, %v947_v15  ;;  %v948_v13 = vld [vmem:[%s11009_s0 + $0x2d8] sm:$0xff] }
  0x2a   :  { %373 = vmatpush1.bf16.msra.mxu1 %v6776_v22  ;;  %776 = vmatpush1.bf16.msra.mxu0 %v6819_v23  ;;  %v494_v22 = vld [vmem:[%s11009_s0 + $0x1b8] sm:$0xff]  ;;  %v935_v23 = vld [vmem:[%s11009_s0 + $0x150] sm:$0xff] }
  0x2b   :  { %374 = vmatprep.subr.bf16.mxu1 %v6769_v24  ;;  %777 = vmatprep.subr.bf16.mxu0 %v6812_v25  ;;  %v939_v24 = vld [vmem:[%s11009_s0 + $0x1d0] sm:$0xff]  ;;  %v6821_v25 = vcombine.low %v498_v11, %v502_v12  ;;  %v6814_v27 = vcombine.high %v490_v21, %v494_v22  ;;  %v6875_v11 = vcombine.high %v952_v5, %v956_v6  ;;  %v944_v12 = vld [vmem:[%s11009_s0 + $0x258] sm:$0xff] }
  0x2c   :  { %v6857_v28 = vcombine.high %v935_v23, %v939_v24  ;;  %v6856_v34 = vcombine.low %v935_v23, %v939_v24  ;;  %v940_v23 = vld [vmem:[%s11009_s0 + $0x1d8] sm:$0xff] }
  0x2e   :  { %375 = vmatpush1.bf16.msra.mxu1 %v6768_v30  ;;  %778 = vmatpush1.bf16.msra.mxu0 %v6811_v31  ;;  %v486_v30 = vld [vmem:[%s11009_s0 + $0xb8] sm:$0xff]  ;;  %v927_v31 = vld [vmem:[%s11009_s0 + $0x50] sm:$0xff] }
  0x2f   :  { %376 = vmatprep.subr.bf16.mxu1 %v6761_v32  ;;  %779 = vmatprep.subr.bf16.mxu0 %v6804_v33  ;;  %v931_v32 = vld [vmem:[%s11009_s0 + $0xd0] sm:$0xff]  ;;  %v6813_v33 = vcombine.low %v490_v21, %v494_v22  ;;  %v6806_v35 = vcombine.high %v482_v29, %v486_v30  ;;  %v6867_v21 = vcombine.high %v944_v12, %v948_v13  ;;  %v936_v22 = vld [vmem:[%s11009_s0 + $0x158] sm:$0xff] }
  0x30   :  { %v6849_v36 = vcombine.high %v927_v31, %v931_v32  ;;  %v6848_v43 = vcombine.low %v927_v31, %v931_v32  ;;  %v932_v31 = vld [vmem:[%s11009_s0 + $0xd8] sm:$0xff] }
  0x32   :  { %377 = vmatpush1.bf16.msra.mxu1 %v6760_v38  ;;  %780 = vmatpush1.bf16.msra.mxu0 %v6803_v39  ;;  %v954_v38 = vld [vmem:[%s11009_s0 + $0x3c8] sm:$0xff]  ;;  %v1395_v39 = vld [vmem:[%s11009_s0 + $0x360] sm:$0xff] }
  0x33   :  { %730 = vmatprep.subr.bf16.mxu1 %v6826_v40  ;;  %1133 = vmatprep.subr.bf16.mxu0 %v6869_v42  ;;  %v1399_v40 = vld [vmem:[%s11009_s0 + $0x3e0] sm:$0xff]  ;;  %v6805_v42 = vcombine.low %v482_v29, %v486_v30  ;;  %v6871_v44 = vcombine.high %v950_v37, %v954_v38  ;;  %v6859_v29 = vcombine.high %v936_v22, %v940_v23  ;;  %v928_v30 = vld [vmem:[%s11009_s0 + $0x58] sm:$0xff] }
  0x34   :  { %v6914_v45 = vcombine.high %v1395_v39, %v1399_v40  ;;  %v6913_v51 = vcombine.low %v1395_v39, %v1399_v40  ;;  %v1400_v39 = vld [vmem:[%s11009_s0 + $0x3e8] sm:$0xff] }
  0x35   :  { %6789 = vmatmul.mubr.msk.bf16.vlgmr.msra.gmra.mxu1 %vm229_vm0, %v8283_v41  ;;  %6833 = vmatmul.mubr.msk.bf16.vlgmr.msra.gmra.mxu0 %vm229_vm0, %v8348_v14  ;;  %v480_v41 = vld [vmem:[%s11009_s0 + $0x28] sm:$0xff] }
  0x36   :  { %731 = vmatpush1.bf16.msra.mxu1 %v6825_v47  ;;  %1134 = vmatpush1.bf16.msra.mxu0 %v6868_v48  ;;  %v6802_v0 = vcombine.high %v480_v41, %v484_v59  ;;  %v6801_v7 = vcombine.low %v480_v41, %v484_v59  ;;  %v946_v47 = vld [vmem:[%s11009_s0 + $0x2c8] sm:$0xff]  ;;  %v1387_v48 = vld [vmem:[%s11009_s0 + $0x260] sm:$0xff] }
  0x37   :  { %732 = vmatprep.subr.bf16.mxu1 %v6818_v49  ;;  %1135 = vmatprep.subr.bf16.mxu0 %v6861_v50  ;;  %v1391_v49 = vld [vmem:[%s11009_s0 + $0x2e0] sm:$0xff]  ;;  %v6870_v50 = vcombine.low %v950_v37, %v954_v38  ;;  %v6863_v52 = vcombine.high %v942_v46, %v946_v47  ;;  %v6851_v37 = vcombine.high %v928_v30, %v932_v31  ;;  %v1396_v38 = vld [vmem:[%s11009_s0 + $0x368] sm:$0xff] }
  0x38   :  { %754 = vmatprep.mubr.bf16.mxu1 %v8154_v3  ;;  %1157 = vmatprep.mubr.bf16.mxu0 %v8154_v3  ;;  %v6906_v53 = vcombine.high %v1387_v48, %v1391_v49  ;;  %v6905_v41 = vcombine.low %v1387_v48, %v1391_v49  ;;  %v6915_v48 = vcombine.low %v1396_v38, %v1400_v39 }
  0x3a   :  { %733 = vmatpush1.bf16.msra.mxu1 %v6817_v55  ;;  %1136 = vmatpush1.bf16.msra.mxu0 %v6860_v56  ;;  %v938_v55 = vld [vmem:[%s11009_s0 + $0x1c8] sm:$0xff]  ;;  %v1379_v56 = vld [vmem:[%s11009_s0 + $0x160] sm:$0xff] }
  0x3b   :  { %734 = vmatprep.subr.bf16.mxu1 %v6810_v57  ;;  %1137 = vmatprep.subr.bf16.mxu0 %v6853_v58  ;;  %v1383_v57 = vld [vmem:[%s11009_s0 + $0x1e0] sm:$0xff]  ;;  %v6862_v58 = vcombine.low %v942_v46, %v946_v47  ;;  %v6855_v59 = vcombine.high %v934_v54, %v938_v55  ;;  %v1392_v46 = vld [vmem:[%s11009_s0 + $0x2e8] sm:$0xff] }
  0x3c   :  { %v6898_v60 = vcombine.high %v1379_v56, %v1383_v57 }
  0x3e   :  { %735 = vmatpush1.bf16.msra.mxu1 %v6809_v62  ;;  %1138 = vmatpush1.bf16.msra.mxu0 %v6852_v63  ;;  %v1371_v62 = vld [vmem:[%s11009_s0 + $0x60] sm:$0xff] }
  0x3f   :  { %736 = vmatprep.subr.bf16.mxu1 %v6802_v0  ;;  %1139 = vmatprep.subr.bf16.mxu0 %v6845_v1  ;;  %v1375_v63 = vld [vmem:[%s11009_s0 + $0xe0] sm:$0xff]  ;;  %v6854_v0 = vcombine.low %v934_v54, %v938_v55  ;;  %v6897_v1 = vcombine.low %v1379_v56, %v1383_v57  ;;  %v1372_v54 = vld [vmem:[%s11009_s0 + $0x68] sm:$0xff]  ;;  %v1398_v57 = vld [vmem:[%s11009_s0 + $0x378] sm:$0xff] }
  0x40   :  { %v6890_v4 = vcombine.high %v1371_v62, %v1375_v63  ;;  %v1376_v55 = vld [vmem:[%s11009_s0 + $0xe8] sm:$0xff] }
  0x42   :  { %737 = vmatpush1.bf16.msra.mxu1 %v6801_v7  ;;  %1140 = vmatpush1.bf16.msra.mxu0 %v6844_v8  ;;  %v1397_v7 = vld [vmem:[%s11009_s0 + $0x370] sm:$0xff] }
  0x43   :  { %816 = vmatprep.subr.bf16.mxu1 %v6830_v9  ;;  %1219 = vmatprep.subr.bf16.mxu0 %v6873_v10  ;;  %v1401_v8 = vld [vmem:[%s11009_s0 + $0x3f0] sm:$0xff]  ;;  %v6889_v10 = vcombine.low %v1371_v62, %v1375_v63  ;;  %v1382_v63 = vld [vmem:[%s11009_s0 + $0x178] sm:$0xff] }
  0x44   :  { %v6918_v15 = vcombine.high %v1397_v7, %v1401_v8  ;;  %v6917_v24 = vcombine.low %v1397_v7, %v1401_v8 }
  0x45   :  { %6832 = vmatmul.mubr.msk.bf16.vlgmr.msra.gmra.mxu1 %vm229_vm0, %v8348_v14  ;;  %6876 = vmatmul.mubr.msk.bf16.vlgmr.msra.gmra.mxu0 %vm229_vm0, %v8461_v17 }
  0x46   :  { %817 = vmatpush1.bf16.msra.mxu1 %v6829_v16  ;;  %1220 = vmatpush1.bf16.msra.mxu0 %v6872_v18  ;;  %v6874_v16 = vcombine.low %v952_v5, %v956_v6  ;;  %v8568_v18 = vld [vmem:[%s11010_s1] sm:$0xff]   ;;  %v1378_v5 = vld [vmem:[%s11009_s0 + $0xf8] sm:$0xff] }
  0x47   :  { %818 = vmatprep.subr.bf16.mxu1 %v6822_v19  ;;  %1221 = vmatprep.subr.bf16.mxu0 %v6865_v20  ;;  %v1389_v19 = vld [vmem:[%s11009_s0 + $0x270] sm:$0xff] }
  0x48   :  { %840 = vmatprep.mubr.bf16.mxu1 %v8154_v3  ;;  %1243 = vmatprep.mubr.bf16.mxu0 %v8154_v3  ;;  %v1393_v20 = vld [vmem:[%s11009_s0 + $0x2f0] sm:$0xff] }
  0x49   :  { %v6909_v32 = vcombine.low %v1389_v19, %v1393_v20 }
  0x4a   :  { %819 = vmatpush1.bf16.msra.mxu1 %v6821_v25  ;;  %1222 = vmatpush1.bf16.msra.mxu0 %v6864_v26  ;;  %v6910_v25 = vcombine.high %v1389_v19, %v1393_v20  ;;  %v6866_v26 = vcombine.low %v944_v12, %v948_v13 }
  0x4b   :  { %820 = vmatprep.subr.bf16.mxu1 %v6814_v27  ;;  %1223 = vmatprep.subr.bf16.mxu0 %v6857_v28  ;;  %v1381_v27 = vld [vmem:[%s11009_s0 + $0x170] sm:$0xff] }
  0x4c   :  { %v1385_v28 = vld [vmem:[%s11009_s0 + $0x1f0] sm:$0xff] }
  0x4d   :  { %v6901_v40 = vcombine.low %v1381_v27, %v1385_v28 }
  0x4e   :  { %821 = vmatpush1.bf16.msra.mxu1 %v6813_v33  ;;  %1224 = vmatpush1.bf16.msra.mxu0 %v6856_v34  ;;  %v6902_v33 = vcombine.high %v1381_v27, %v1385_v28  ;;  %v6858_v34 = vcombine.low %v936_v22, %v940_v23 }
  0x4f   :  { %822 = vmatprep.subr.bf16.mxu1 %v6806_v35  ;;  %1225 = vmatprep.subr.bf16.mxu0 %v6849_v36  ;;  %v1373_v35 = vld [vmem:[%s11009_s0 + $0x70] sm:$0xff] }
  0x50   :  { %v1377_v36 = vld [vmem:[%s11009_s0 + $0xf0] sm:$0xff] }
  0x51   :  { %v6893_v47 = vcombine.low %v1373_v35, %v1377_v36 }
  0x52   :  { %823 = vmatpush1.bf16.msra.mxu1 %v6805_v42  ;;  %1226 = vmatpush1.bf16.msra.mxu0 %v6848_v43  ;;  %v6894_v42 = vcombine.high %v1373_v35, %v1377_v36  ;;  %v6850_v43 = vcombine.low %v928_v30, %v932_v31 }
  0x53   :  { %1176 = vmatprep.subr.bf16.mxu1 %v6871_v44  ;;  %1579 = vmatprep.subr.bf16.mxu0 %v6914_v45  ;;  %v6916_v44 = vcombine.high %v1396_v38, %v1400_v39  ;;  %v1388_v45 = vld [vmem:[%s11009_s0 + $0x268] sm:$0xff] }
  0x54   :  { %v6908_v49 = vcombine.high %v1388_v45, %v1392_v46 }
  0x55   :  { %6834 = vmatmul.mubr.msk.bf16.vlgmr.msra.gmra.mxu1 %vm229_vm0, %v8348_v14  ;;  %6878 = vmatmul.mubr.msk.bf16.vlgmr.msra.gmra.mxu0 %vm229_vm0, %v8461_v17  ;;  %v926_v14 = vld [vmem:[%s11009_s0 + $0x48] sm:$0xff] }
  0x56   :  { %1177 = vmatpush1.bf16.msra.mxu1 %v6870_v50  ;;  %1580 = vmatpush1.bf16.msra.mxu0 %v6913_v51  ;;  %v6847_v2 = vcombine.high %v926_v14, %v930_v61  ;;  %v6846_v9 = vcombine.low %v926_v14, %v930_v61  ;;  %v1380_v50 = vld [vmem:[%s11009_s0 + $0x168] sm:$0xff]  ;;  %v1394_v14 = vld [vmem:[%s11009_s0 + $0x2f8] sm:$0xff] }
  0x57   :  { %1178 = vmatprep.subr.bf16.mxu1 %v6863_v52  ;;  %1581 = vmatprep.subr.bf16.mxu0 %v6906_v53  ;;  %v1384_v51 = vld [vmem:[%s11009_s0 + $0x1e8] sm:$0xff]  ;;  %v6907_v52 = vcombine.low %v1388_v45, %v1392_v46 }
  0x58   :  { %1200 = vmatprep.mubr.bf16.mxu1 %v8154_v3  ;;  %1603 = vmatprep.mubr.bf16.mxu0 %v8154_v3  ;;  %v6900_v53 = vcombine.high %v1380_v50, %v1384_v51  ;;  %v6899_v56 = vcombine.low %v1380_v50, %v1384_v51 }
  0x5a   :  { %1179 = vmatpush1.bf16.msra.mxu1 %v6862_v58  ;;  %1582 = vmatpush1.bf16.msra.mxu0 %v6905_v41  ;;  %v1402_v58 = vld [vmem:[%s11009_s0 + $0x3f8] sm:$0xff]  ;;  %v6891_v41 = vcombine.low %v1372_v54, %v1376_v55 }
  0x5b   :  { %1180 = vmatprep.subr.bf16.mxu1 %v6855_v59  ;;  %1583 = vmatprep.subr.bf16.mxu0 %v6898_v60  ;;  %v6920_v59 = vcombine.high %v1398_v57, %v1402_v58  ;;  %v1390_v60 = vld [vmem:[%s11009_s0 + $0x278] sm:$0xff]  ;;  %v6919_v61 = vcombine.low %v1398_v57, %v1402_v58 }
  0x5c   :  { %v6912_v62 = vcombine.high %v1390_v60, %v1394_v14 }
  0x5e   :  { %1181 = vmatpush1.bf16.msra.mxu1 %v6854_v0  ;;  %1584 = vmatpush1.bf16.msra.mxu0 %v6897_v1  ;;  %v1386_v0 = vld [vmem:[%s11009_s0 + $0x1f8] sm:$0xff]  ;;  %v6911_v1 = vcombine.low %v1390_v60, %v1394_v14 }
  0x5f   :  { %1182 = vmatprep.subr.bf16.mxu1 %v6847_v2  ;;  %1585 = vmatprep.subr.bf16.mxu0 %v6890_v4  ;;  %v6904_v2 = vcombine.high %v1382_v63, %v1386_v0  ;;  %v1374_v4 = vld [vmem:[%s11009_s0 + $0x78] sm:$0xff]  ;;  %v6903_v6 = vcombine.low %v1382_v63, %v1386_v0  ;;  %s8155_s0 = smov 112  }
  0x60   :  { %v6896_v7 = vcombine.high %v1374_v4, %v1378_v5  ;;  %v6895_v8 = vcombine.low %v1374_v4, %v1378_v5 }
  0x62   :  { %1183 = vmatpush1.bf16.msra.mxu1 %v6846_v9  ;;  %1586 = vmatpush1.bf16.msra.mxu0 %v6889_v10 }
  0x63   :  { %1262 = vmatprep.subr.bf16.mxu1 %v6875_v11  ;;  %1665 = vmatprep.subr.bf16.mxu0 %v6918_v15 }
  0x65   :  { %6877 = vmatmul.mubr.msk.bf16.vlgmr.msra.gmra.mxu1 %vm229_vm0, %v8461_v17  ;;  %6921 = vmatmul.mubr.msk.bf16.vlgmr.msra.gmra.mxu0 %vm229_vm0, %v8568_v18 }
  0x66   :  { %1263 = vmatpush1.bf16.msra.mxu1 %v6874_v16  ;;  %1286 = vmatprep.mubr.bf16.mxu1 %v8154_v3 }
  0x67   :  { %1264 = vmatprep.subr.bf16.mxu1 %v6867_v21  ;;  %1666 = vmatpush1.bf16.msra.mxu0 %v6917_v24 }
  0x68   :  { %1689 = vmatprep.mubr.bf16.mxu0 %v8154_v3  ;;  %1667 = vmatprep.subr.bf16.mxu0 %v6910_v25 }
  0x6a   :  { %1265 = vmatpush1.bf16.msra.mxu1 %v6866_v26 }
  0x6b   :  { %1266 = vmatprep.subr.bf16.mxu1 %v6859_v29  ;;  %1668 = vmatpush1.bf16.msra.mxu0 %v6909_v32 }
  0x6c   :  { %1669 = vmatprep.subr.bf16.mxu0 %v6902_v33 }
  0x6e   :  { %1267 = vmatpush1.bf16.msra.mxu1 %v6858_v34 }
  0x6f   :  { %1268 = vmatprep.subr.bf16.mxu1 %v6851_v37  ;;  %1670 = vmatpush1.bf16.msra.mxu0 %v6901_v40 }
  0x70   :  { %1671 = vmatprep.subr.bf16.mxu0 %v6894_v42 }
  0x72   :  { %1269 = vmatpush1.bf16.msra.mxu1 %v6850_v43 }
  0x73   :  { %1622 = vmatprep.subr.bf16.mxu1 %v6916_v44  ;;  %1672 = vmatpush1.bf16.msra.mxu0 %v6893_v47 }
  0x75   :  { %6879 = vmatmul.mubr.msk.bf16.vlgmr.msra.gmra.mxu1 %vm229_vm0, %v8461_v17  ;;  %v6892_v17 = vcombine.high %v1372_v54, %v1376_v55 }
  0x76   :  { %1623 = vmatpush1.bf16.msra.mxu1 %v6915_v48  ;;  %1646 = vmatprep.mubr.bf16.mxu1 %v8154_v3 }
  0x77   :  { %1624 = vmatprep.subr.bf16.mxu1 %v6908_v49  ;;  %6923 = vmatmul.mubr.msk.bf16.vlgmr.msra.gmra.mxu0 %vm229_vm0, %v8568_v18 }
  0x7a   :  { %1625 = vmatpush1.bf16.msra.mxu1 %v6907_v52 }
  0x7b   :  { %1626 = vmatprep.subr.bf16.mxu1 %v6900_v53 }
  0x7e   :  { %1627 = vmatpush1.bf16.msra.mxu1 %v6899_v56 }
  0x7f   :  { %1628 = vmatprep.subr.bf16.mxu1 %v6892_v17 }
  0x82   :  { %1629 = vmatpush1.bf16.msra.mxu1 %v6891_v41 }
  0x83   :  { %1708 = vmatprep.subr.bf16.mxu1 %v6920_v59 }
  0x85   :  { %6922 = vmatmul.mubr.msk.bf16.vlgmr.msra.gmra.mxu1 %vm229_vm0, %v8568_v18 }
  0x86   :  { %1709 = vmatpush1.bf16.msra.mxu1 %v6919_v61  ;;  %1732 = vmatprep.mubr.bf16.mxu1 %v8154_v3 }
  0x87   :  { %1710 = vmatprep.subr.bf16.mxu1 %v6912_v62 }
  0x8a   :  { %1711 = vmatpush1.bf16.msra.mxu1 %v6911_v1 }
  0x8b   :  { %1712 = vmatprep.subr.bf16.mxu1 %v6904_v2 }
  0x8e   :  { %1713 = vmatpush1.bf16.msra.mxu1 %v6903_v6 }
  0x8f   :  { %1714 = vmatprep.subr.bf16.mxu1 %v6896_v7 }
  0x92   :  { %1715 = vmatpush1.bf16.msra.mxu1 %v6895_v8 }
  0x95   :  { %6924 = vmatmul.mubr.msk.bf16.vlgmr.msra.gmra.mxu1 %vm229_vm0, %v8568_v18 }
  0xd5   :  { %v8664_v3 = vpop.f32.mrf.mxu1  ;;  %v353_v10 = vpop.f32.mrf.mxu0 }
  0xd6   :  { %v11019_v9 = vmax.f32 %v8664_v3, 0.0  ;;  %v409_v12 = vmax.f32 %v353_v10, 0.0 }
  0xd7   :  { %v8667_v11 = vpop.f32.mrf.mxu1  ;;  %v355_v15 = vpop.f32.mrf.mxu0 }
  0xd8   :  { %v11021_v13 = vmax.f32 %v8667_v11, 0.0  ;;  %v410_v19 = vmax.f32 %v355_v15, 0.0 }
  0xd9   :  { %v8670_v16 = vpop.f32.mrf.mxu1  ;;  %v357_v18 = vpop.f32.mrf.mxu0 }
  0xda   :  { %v7297_v20 = vpack.c.bf16 %v11021_v13, %v11019_v9  ;;  %v8678_v22 = vpack.c.bf16 %v410_v19, %v409_v12  ;;  %v417_v23 = vmax.f32 %v357_v18, 0.0  ;;  %v11018_v24 = vmax.f32 %v8670_v16, 0.0 }
  0xdb   :  { %v8676_v21 = vpop.f32.mrf.mxu1  ;;  %v359_v26 = vpop.f32.mrf.mxu0 }
  0xdc   :  { %469 = vst [vmem:[#allocation2] sm:$0xff] %v7297_v20  ;;  %v11020_v25 = vmax.f32 %v8676_v21, 0.0  ;;  %1869 = vrot.lane.b32.xlu0 %v7297_v20, %s8155_s0  ;;  %471 = vst [vmem:[#allocation2 + $0x10] sm:$0xff] %v8678_v22  ;;  %v418_v27 = vmax.f32 %v359_v26, 0.0 }
  0xde   :  { %v8688_v28 = vpack.c.bf16 %v11020_v25, %v11018_v24  ;;  %v8690_v29 = vpack.c.bf16 %v418_v27, %v417_v23 }
  0xe0   :  { %473 = vst [vmem:[#allocation2 + $0x88] sm:$0xff] %v8688_v28  ;;  %475 = vst [vmem:[#allocation2 + $0x98] sm:$0xff] %v8690_v29 }
  0xe5   :  { %v310_v30 = vpop.f32.mrf.mxu1  ;;  %v713_v32 = vpop.f32.mrf.mxu0 }
  0xe6   :  { %v407_v31 = vmax.f32 %v310_v30, 0.0  ;;  %v851_v34 = vmax.f32 %v713_v32, 0.0 }
  0xe7   :  { %v312_v33 = vpop.f32.mrf.mxu1  ;;  %v715_v36 = vpop.f32.mrf.mxu0 }
  0xe8   :  { %v408_v35 = vmax.f32 %v312_v33, 0.0  ;;  %v852_v38 = vmax.f32 %v715_v36, 0.0 }
  0xe9   :  { %v314_v37 = vpop.f32.mrf.mxu1  ;;  %v717_v40 = vpop.f32.mrf.mxu0 }
  0xea   :  { %v7298_v39 = vpack.c.bf16 %v408_v35, %v407_v31  ;;  %v7305_v43 = vpack.c.bf16 %v852_v38, %v851_v34  ;;  %v859_v44 = vmax.f32 %v717_v40, 0.0  ;;  %v415_v45 = vmax.f32 %v314_v37, 0.0 }
  0xeb   :  { %v316_v42 = vpop.f32.mrf.mxu1  ;;  %v719_v47 = vpop.f32.mrf.mxu0 }
  0xec   :  { %470 = vst [vmem:[#allocation2 + $0x8] sm:$0xff] %v7298_v39  ;;  %v416_v46 = vmax.f32 %v316_v42, 0.0  ;;  %1871 = vrot.lane.b32.xlu1 %v7298_v39, %s8155_s0  ;;  %915 = vst [vmem:[#allocation2 + $0x20] sm:$0xff] %v7305_v43  ;;  %v860_v48 = vmax.f32 %v719_v47, 0.0  ;;  %1953 = vrot.lane.b32.xlu0 %v7305_v43, %s8155_s0  ;;  %v8700_v51 = vpack.c.bf16 %v859_v44, %v851_v34 }
  0xee   :  { %v8696_v49 = vpack.c.bf16 %v416_v46, %v415_v45  ;;  %v7309_v50 = vpack.c.bf16 %v860_v48, %v859_v44  ;;  %v8702_v52 = vpack.c.bf16 %v860_v48, %v852_v38 }
  0xf0   :  { %474 = vst [vmem:[#allocation2 + $0x90] sm:$0xff] %v8696_v49  ;;  %919 = vst [vmem:[#allocation2 + $0xa8] sm:$0xff] %v7309_v50  ;;  %1963 = vrot.lane.b32.xlu0 %v7309_v50, %s8155_s0 }
  0xf5   :  { %v396_v53 = vpop.f32.mrf.mxu1  ;;  %v799_v55 = vpop.f32.mrf.mxu0 }
  0xf6   :  { %v411_v54 = vmax.f32 %v396_v53, 0.0  ;;  %v855_v17 = vmax.f32 %v799_v55, 0.0 }
  0xf7   :  { %v398_v56 = vpop.f32.mrf.mxu1  ;;  %v801_v58 = vpop.f32.mrf.mxu0 }
  0xf8   :  { %v412_v57 = vmax.f32 %v398_v56, 0.0  ;;  %v856_v59 = vmax.f32 %v801_v58, 0.0 }
  0xf9   :  { %v400_v41 = vpop.f32.mrf.mxu1  ;;  %v803_v14 = vpop.f32.mrf.mxu0 }
  0xfa   :  { %v8704_v60 = vpack.c.bf16 %v412_v57, %v411_v54  ;;  %v8706_v62 = vpack.c.bf16 %v856_v59, %v855_v17  ;;  %v863_v63 = vmax.f32 %v803_v14, 0.0  ;;  %v419_v0 = vmax.f32 %v400_v41, 0.0 }
  0xfb   :  { %v402_v61 = vpop.f32.mrf.mxu1  ;;  %v805_v2 = vpop.f32.mrf.mxu0 }
  0xfc   :  { %472 = vst [vmem:[#allocation2 + $0x18] sm:$0xff] %v8704_v60  ;;  %v420_v1 = vmax.f32 %v402_v61, 0.0  ;;  %917 = vst [vmem:[#allocation2 + $0x30] sm:$0xff] %v8706_v62  ;;  %v864_v4 = vmax.f32 %v805_v2, 0.0 }
  0xfe   :  { %v8710_v5 = vpack.c.bf16 %v420_v1, %v419_v0  ;;  %v8712_v6 = vpack.c.bf16 %v864_v4, %v863_v63 }
 0x100   :  { %476 = vst [vmem:[#allocation2 + $0xa0] sm:$0xff] %v8710_v5  ;;  %921 = vst [vmem:[#allocation2 + $0xb8] sm:$0xff] %v8712_v6 }
 0x105   :  { %v756_v7 = vpop.f32.mrf.mxu1  ;;  %v1159_v10 = vpop.f32.mrf.mxu0 }
 0x106   :  { %v853_v8 = vmax.f32 %v756_v7, 0.0  ;;  %v1297_v15 = vmax.f32 %v1159_v10, 0.0 }
 0x107   :  { %v758_v12 = vpop.f32.mrf.mxu1  ;;  %v1161_v20 = vpop.f32.mrf.mxu0 }
 0x108   :  { %v854_v19 = vmax.f32 %v758_v12, 0.0  ;;  %v1298_v23 = vmax.f32 %v1161_v20, 0.0 }
 0x109   :  { %v760_v18 = vpop.f32.mrf.mxu1  ;;  %v1163_v27 = vpop.f32.mrf.mxu0 }
 0x10a   :  { %v7306_v26 = vpack.c.bf16 %v854_v19, %v853_v8  ;;  %v7313_v31 = vpack.c.bf16 %v1298_v23, %v1297_v15  ;;  %v1305_v32 = vmax.f32 %v1163_v27, 0.0  ;;  %v861_v33 = vmax.f32 %v760_v18, 0.0 }
 0x10b   :  { %v762_v30 = vpop.f32.mrf.mxu1  ;;  %v1165_v35 = vpop.f32.mrf.mxu0 }
 0x10c   :  { %916 = vst [vmem:[#allocation2 + $0x28] sm:$0xff] %v7306_v26  ;;  %v862_v34 = vmax.f32 %v762_v30, 0.0  ;;  %1955 = vrot.lane.b32.xlu1 %v7306_v26, %s8155_s0  ;;  %1361 = vst [vmem:[#allocation2 + $0x40] sm:$0xff] %v7313_v31  ;;  %v1306_v36 = vmax.f32 %v1165_v35, 0.0  ;;  %2067 = vrot.lane.b32.xlu0 %v7313_v31, %s8155_s0  ;;  %v8719_v39 = vpack.c.bf16 %v861_v33, %v853_v8 }
 0x10d   :  { %v8724_v42 = vpack.c.bf16 %v1305_v32, %v1297_v15 }
 0x10e   :  { %v7310_v37 = vpack.c.bf16 %v862_v34, %v861_v33  ;;  %v7317_v38 = vpack.c.bf16 %v1306_v36, %v1305_v32  ;;  %v8721_v40 = vpack.c.bf16 %v862_v34, %v854_v19  ;;  %v8726_v43 = vpack.c.bf16 %v1306_v36, %v1298_v23 }
 0x110   :  { %920 = vst [vmem:[#allocation2 + $0xb0] sm:$0xff] %v7310_v37  ;;  %1965 = vrot.lane.b32.xlu1 %v7310_v37, %s8155_s0  ;;  %1365 = vst [vmem:[#allocation2 + $0xc8] sm:$0xff] %v7317_v38  ;;  %2077 = vrot.lane.b32.xlu0 %v7317_v38, %s8155_s0 }
 0x115   :  { %v842_v44 = vpop.f32.mrf.mxu1  ;;  %v1245_v46 = vpop.f32.mrf.mxu0 }
 0x116   :  { %v857_v45 = vmax.f32 %v842_v44, 0.0  ;;  %v1301_v48 = vmax.f32 %v1245_v46, 0.0 }
 0x117   :  { %v844_v47 = vpop.f32.mrf.mxu1  ;;  %v1247_v53 = vpop.f32.mrf.mxu0 }
 0x118   :  { %v858_v50 = vmax.f32 %v844_v47, 0.0  ;;  %v1302_v55 = vmax.f32 %v1247_v53, 0.0 }
 0x119   :  { %v846_v54 = vpop.f32.mrf.mxu1  ;;  %v1249_v17 = vpop.f32.mrf.mxu0 }
 0x11a   :  { %v8728_v56 = vpack.c.bf16 %v858_v50, %v857_v45  ;;  %v8730_v58 = vpack.c.bf16 %v1302_v55, %v1301_v48  ;;  %v1309_v41 = vmax.f32 %v1249_v17, 0.0  ;;  %v865_v59 = vmax.f32 %v846_v54, 0.0 }
 0x11b   :  { %v848_v57 = vpop.f32.mrf.mxu1  ;;  %v1251_v61 = vpop.f32.mrf.mxu0 }
 0x11c   :  { %918 = vst [vmem:[#allocation2 + $0x38] sm:$0xff] %v8728_v56  ;;  %v866_v14 = vmax.f32 %v848_v57, 0.0  ;;  %1363 = vst [vmem:[#allocation2 + $0x50] sm:$0xff] %v8730_v58  ;;  %v1310_v63 = vmax.f32 %v1251_v61, 0.0 }
 0x11e   :  { %v8734_v0 = vpack.c.bf16 %v866_v14, %v865_v59  ;;  %v8736_v1 = vpack.c.bf16 %v1310_v63, %v1309_v41  ;;  %v1853_v59 = vld [vmem:[#allocation2 + $0x20] sm:$0xf] }
 0x120   :  { %922 = vst [vmem:[#allocation2 + $0xc0] sm:$0xff] %v8734_v0  ;;  %1367 = vst [vmem:[#allocation2 + $0xd8] sm:$0xff] %v8736_v1 }
 0x125   :  { %v1202_v2 = vpop.f32.mrf.mxu1  ;;  %v1605_v7 = vpop.f32.mrf.mxu0 }
 0x126   :  { %v1299_v4 = vmax.f32 %v1202_v2, 0.0  ;;  %v1743_v8 = vmax.f32 %v1605_v7, 0.0 }
 0x127   :  { %v1204_v10 = vpop.f32.mrf.mxu1  ;;  %v1607_v12 = vpop.f32.mrf.mxu0 }
 0x128   :  { %v1300_v15 = vmax.f32 %v1204_v10, 0.0  ;;  %v1744_v19 = vmax.f32 %v1607_v12, 0.0 }
 0x129   :  { %v1206_v20 = vpop.f32.mrf.mxu1  ;;  %v1609_v23 = vpop.f32.mrf.mxu0 }
 0x12a   :  { %v7314_v18 = vpack.c.bf16 %v1300_v15, %v1299_v4  ;;  %v7321_v26 = vpack.c.bf16 %v1744_v19, %v1743_v8  ;;  %v1751_v27 = vmax.f32 %v1609_v23, 0.0  ;;  %v1307_v31 = vmax.f32 %v1206_v20, 0.0 }
 0x12b   :  { %v1208_v30 = vpop.f32.mrf.mxu1  ;;  %v1611_v32 = vpop.f32.mrf.mxu0 }
 0x12c   :  { %1362 = vst [vmem:[#allocation2 + $0x48] sm:$0xff] %v7314_v18  ;;  %v1308_v33 = vmax.f32 %v1208_v30, 0.0  ;;  %2069 = vrot.lane.b32.xlu1 %v7314_v18, %s8155_s0  ;;  %1807 = vst [vmem:[#allocation2 + $0x60] sm:$0xff] %v7321_v26  ;;  %v1752_v34 = vmax.f32 %v1611_v32, 0.0  ;;  %2149 = vrot.lane.b32.xlu0 %v7321_v26, %s8155_s0  ;;  %v8742_v37 = vpack.c.bf16 %v1307_v31, %v1299_v4  ;;  %v1942_v4 = vld [vmem:[#allocation2 + $0xc8] sm:$0xf] }
 0x12d   :  { %v8747_v44 = vpack.c.bf16 %v1751_v27, %v1743_v8 }
 0x12e   :  { %v7318_v35 = vpack.c.bf16 %v1308_v33, %v1307_v31  ;;  %v7325_v36 = vpack.c.bf16 %v1752_v34, %v1751_v27  ;;  %v8744_v38 = vpack.c.bf16 %v1308_v33, %v1300_v15  ;;  %v8749_v45 = vpack.c.bf16 %v1752_v34, %v1744_v19 }
 0x130   :  { %1366 = vst [vmem:[#allocation2 + $0xd0] sm:$0xff] %v7318_v35  ;;  %1811 = vst [vmem:[#allocation2 + $0xe8] sm:$0xff] %v7325_v36  ;;  %2159 = vrot.lane.b32.xlu1 %v7325_v36, %s8155_s0 }
 0x133   :  { %v8752_v53 = vld [vmem:[#allocation2 + $0x44] sm:$0xff]  ;;  %v8758_v41 = vld [vmem:[#allocation2 + $0x4c] sm:$0xff] }
 0x134   :  { %2079 = vrot.lane.b32.xlu1 %v7318_v35, %s8155_s0  ;;  %v2443_v25 = vld [vmem:[#allocation2 + $0x64] sm:$0xf] }
 0x135   :  { %v1288_v46 = vpop.f32.mrf.mxu1 }
 0x136   :  { %v1303_v47 = vmax.f32 %v1288_v46, 0.0 }
 0x137   :  { %v1290_v48 = vpop.f32.mrf.mxu1  ;;  %v1691_v50 = vpop.f32.mrf.mxu0  ;;  %v8754_v54 = vld [vmem:[#allocation2 + $0xcc] sm:$0xff]  ;;  %v8756_v55 = vld [vmem:[#allocation2 + $0xd4] sm:$0xff] }
 0x138   :  { %v1304_v17 = vmax.f32 %v1290_v48, 0.0  ;;  %v1747_v57 = vmax.f32 %v1691_v50, 0.0 }
 0x139   :  { %v1292_v61 = vpop.f32.mrf.mxu1  ;;  %v1693_v63 = vpop.f32.mrf.mxu0 }
 0x13a   :  { %v8768_v7 = vpack.c.bf16 %v1304_v17, %v1303_v47  ;;  %v1748_v8 = vmax.f32 %v1693_v63, 0.0  ;;  %v1311_v15 = vmax.f32 %v1292_v61, 0.0 }
 0x13b   :  { %v1294_v10 = vpop.f32.mrf.mxu1  ;;  %v1695_v12 = vpop.f32.mrf.mxu0 }
 0x13c   :  { %1364 = vst [vmem:[#allocation2 + $0x58] sm:$0xff] %v8768_v7  ;;  %v1312_v19 = vmax.f32 %v1294_v10, 0.0  ;;  %v7323_v20 = vpack.c.bf16 %v1748_v8, %v1747_v57  ;;  %v1755_v18 = vmax.f32 %v1695_v12, 0.0 }
 0x13d   :  { %v1697_v23 = vpop.f32.mrf.mxu0 }
 0x13e   :  { %v8771_v26 = vpack.c.bf16 %v1312_v19, %v1311_v15  ;;  %1809 = vst [vmem:[#allocation2 + $0x70] sm:$0xff] %v7323_v20  ;;  %v1756_v27 = vmax.f32 %v1697_v23, 0.0 }
 0x140   :  { %1368 = vst [vmem:[#allocation2 + $0xe0] sm:$0xff] %v8771_v26  ;;  %v8774_v30 = vpack.c.bf16 %v1756_v27, %v1755_v18  ;;  %v1937_v18 = vld [vmem:[#allocation2 + $0x40] sm:$0xf]  ;;  %v1858_v27 = vld [vmem:[#allocation2 + $0xa8] sm:$0xf] }
 0x142   :  { %11033 = vst [vmem:[#allocation5_spill] sm:$0xff] %v8774_v30  ;;  %1813 = vst [vmem:[#allocation2 + $0xf8] sm:$0xff] %v8774_v30 }
 0x145   :  { %v1648_v31 = vpop.f32.mrf.mxu1 }
 0x146   :  { %v1745_v33 = vmax.f32 %v1648_v31, 0.0 }
 0x147   :  { %v1650_v32 = vpop.f32.mrf.mxu1 }
 0x148   :  { %v1746_v34 = vmax.f32 %v1650_v32, 0.0 }
 0x149   :  { %v1652_v35 = vpop.f32.mrf.mxu1 }
 0x14a   :  { %v7322_v36 = vpack.c.bf16 %v1746_v34, %v1745_v33  ;;  %v1753_v47 = vmax.f32 %v1652_v35, 0.0  ;;  %v8840_v35 = vld [vmem:[#allocation2 + $0x2c] sm:$0xff] }
 0x14b   :  { %v1654_v46 = vpop.f32.mrf.mxu1  ;;  %11034 = vst [vmem:[#allocation6_spill] sm:$0xff] %v8840_v35 }
 0x14c   :  { %1808 = vst [vmem:[#allocation2 + $0x68] sm:$0xff] %v7322_v36  ;;  %v1754_v48 = vmax.f32 %v1654_v46, 0.0  ;;  %2151 = vrot.lane.b32.xlu0 %v7322_v36, %s8155_s0  ;;  %v8781_v17 = vpack.c.bf16 %v1753_v47, %v1745_v33  ;;  %v8856_v36 = vld [vmem:[#allocation2 + $0xc] sm:$0xff]  ;;  %v8862_v46 = vld [vmem:[#allocation2 + $0x94] sm:$0xff] }
 0x14d   :  { %11035 = vst [vmem:[#allocation7_spill] sm:$0xff] %v8856_v36  ;;  %11036 = vst [vmem:[#allocation8_spill] sm:$0xff] %v8862_v46 }
 0x14e   :  { %v7326_v50 = vpack.c.bf16 %v1754_v48, %v1753_v47  ;;  %v8783_v57 = vpack.c.bf16 %v1754_v48, %v1746_v34  ;;  %v2441_v48 = vld [vmem:[#allocation2 + $0x54] sm:$0xff] }
 0x150   :  { %1812 = vst [vmem:[#allocation2 + $0xf0] sm:$0xff] %v7326_v50  ;;  %1879 = vrot.lane.b32.xlu0 %v8688_v28, %s8155_s0  ;;  %2161 = vrot.lane.b32.xlu1 %v7326_v50, %s8155_s0 }
 0x153   :  { %v8788_v8 = vld [vmem:[#allocation2 + $0x64] sm:$0xff]  ;;  %v8790_v12 = vld [vmem:[#allocation2 + $0x6c] sm:$0xff] }
 0x154   :  { %2153 = vrot.lane.b32.xlu0 %v7323_v20, %s8155_s0  ;;  %1881 = vrot.lane.b32.xlu1 %v8696_v49, %s8155_s0 }
 0x155   :  { %v1734_v61 = vpop.f32.mrf.mxu1 }
 0x156   :  { %v1749_v63 = vmax.f32 %v1734_v61, 0.0  ;;  %v2327_v61 = vld [vmem:[#allocation2 + $0x34] sm:$0xff] }
 0x157   :  { %v1736_v10 = vpop.f32.mrf.mxu1  ;;  %v8792_v15 = vld [vmem:[#allocation2 + $0xec] sm:$0xff]  ;;  %v8794_v28 = vld [vmem:[#allocation2 + $0xf4] sm:$0xff] }
 0x158   :  { %v1750_v19 = vmax.f32 %v1736_v10, 0.0  ;;  %2071 = vrot.lane.b32.xlu0 %v8730_v58, %s8155_s0  ;;  %2163 = vrot.lane.b32.xlu1 %v8774_v30, %s8155_s0  ;;  %v8874_v10 = vld [vmem:[%s11011_s2 + $0x4] ss:$8 sps:$4 sm:$0xff]  }
 0x159   :  { %v1738_v23 = vpop.f32.mrf.mxu1  ;;  %3441 = vmatprep.mubr.bf16.mxu0 %v8874_v10  ;;  %3492 = vmatprep.mubr.bf16.mxu1 %v8874_v10 }
 0x15a   :  { %v7324_v31 = vpack.c.bf16 %v1750_v19, %v1749_v63  ;;  %v1757_v32 = vmax.f32 %v1738_v23, 0.0  ;;  %v2446_v63 = vld [vmem:[#allocation2 + $0xdc] sm:$0xff]  ;;  %v2245_v19 = vld [vmem:[#allocation2 + $0x14] sm:$0xff] }
 0x15b   :  { %v1740_v33 = vpop.f32.mrf.mxu1  ;;  %v2332_v23 = vld [vmem:[#allocation2 + $0xbc] sm:$0xff] }
 0x15c   :  { %1810 = vst [vmem:[#allocation2 + $0x78] sm:$0xff] %v7324_v31  ;;  %v1758_v58 = vmax.f32 %v1740_v33, 0.0  ;;  %2541 = vrot.lane.b32.xlu0 %v8788_v8, %s8155_s0  ;;  %2081 = vrot.lane.b32.xlu1 %v8736_v1, %s8155_s0  ;;  %v8832_v1 = vld [vmem:[#allocation2 + $0x24] sm:$0xff] }
 0x15e   :  { %v7328_v34 = vpack.c.bf16 %v1758_v58, %v1757_v32  ;;  %v2250_v32 = vld [vmem:[#allocation2 + $0x9c] sm:$0xff]  ;;  %v8895_v33 = vpop.permute.xlu1 %1871 }
 0x160   :  { %1814 = vst [vmem:[#allocation2 + $0x100] sm:$0xff] %v7328_v34  ;;  %2459 = vrot.lane.b32.xlu0 %v8752_v53, %s8155_s0  ;;  %2543 = vrot.lane.b32.xlu1 %v8790_v12, %s8155_s0 }
 0x163   :  { %v2523_v47 = vld [vmem:[#allocation2 + $0x74] sm:$0xff]  ;;  %v2524_v58 = vld [vmem:[#allocation2 + $0x7c] sm:$0xff] }
 0x164   :  { %2469 = vrot.lane.b32.xlu0 %v8754_v54, %s8155_s0  ;;  %2461 = vrot.lane.b32.xlu1 %v8758_v41, %s8155_s0 }
 0x167   :  { %v2528_v50 = vld [vmem:[#allocation2 + $0xfc] sm:$0xff] }
 0x168   :  { %1957 = vrot.lane.b32.xlu0 %v8706_v62, %s8155_s0  ;;  %2471 = vrot.lane.b32.xlu1 %v8756_v55, %s8155_s0  ;;  %v8838_v62 = vld [vmem:[#allocation2 + $0xac] sm:$0xff] }
 0x16c   :  { %2551 = vrot.lane.b32.xlu0 %v8792_v15, %s8155_s0  ;;  %1967 = vrot.lane.b32.xlu1 %v8712_v6, %s8155_s0  ;;  %v8848_v6 = vld [vmem:[#allocation2 + $0xb4] sm:$0xff] }
 0x170   :  { %1873 = vrot.lane.b32.xlu0 %v8678_v22, %s8155_s0  ;;  %2553 = vrot.lane.b32.xlu1 %v8794_v28, %s8155_s0  ;;  %v8846_v22 = vld [vmem:[#allocation2 + $0x4] sm:$0xff] }
 0x174   :  { %2345 = vrot.lane.b32.xlu0 %v8832_v1, %s8155_s0  ;;  %1883 = vrot.lane.b32.xlu1 %v8690_v29, %s8155_s0  ;;  %v8854_v29 = vld [vmem:[#allocation2 + $0x8c] sm:$0xff] }
 0x178   :  { %2355 = vrot.lane.b32.xlu0 %v8838_v62, %s8155_s0  ;;  %2347 = vrot.lane.b32.xlu1 %v8840_v35, %s8155_s0 }
 0x17c   :  { %2263 = vrot.lane.b32.xlu0 %v8846_v22, %s8155_s0  ;;  %2357 = vrot.lane.b32.xlu1 %v8848_v6, %s8155_s0 }
 0x180   :  { %2273 = vrot.lane.b32.xlu0 %v8854_v29, %s8155_s0  ;;  %2265 = vrot.lane.b32.xlu1 %v8856_v36, %s8155_s0 }
 0x184   :  { %2275 = vrot.lane.b32.xlu1 %v8862_v46, %s8155_s0  ;;  %2545 = vrot.lane.b32.xlu0 %v2523_v47, %s8155_s0 }
 0x188   :  { %2463 = vrot.lane.b32.xlu0 %v2441_v48, %s8155_s0  ;;  %2555 = vrot.lane.b32.xlu1 %v2528_v50, %s8155_s0  ;;  %v2138_v50 = vld [vmem:[#allocation2 + $0x108] sm:$0xf] }
 0x18c   :  { %2349 = vrot.lane.b32.xlu0 %v2327_v61, %s8155_s0  ;;  %2473 = vrot.lane.b32.xlu1 %v2446_v63, %s8155_s0  ;;  %v2246_v61 = vld [vmem:[#allocation2 + $0x1c] sm:$0xff]  ;;  %v2333_v63 = vld [vmem:[#allocation2 + $0xc4] sm:$0xff] }
 0x190   :  { %2267 = vrot.lane.b32.xlu0 %v2245_v19, %s8155_s0  ;;  %2359 = vrot.lane.b32.xlu1 %v2332_v23, %s8155_s0 }
 0x194   :  { %2155 = vrot.lane.b32.xlu0 %v7324_v31, %s8155_s0  ;;  %2277 = vrot.lane.b32.xlu1 %v2250_v32, %s8155_s0  ;;  %v8893_v31 = vpop.permute.xlu0 %1869 }
 0x198   :  { %2073 = vrot.lane.b32.xlu0 %v8768_v7, %s8155_s0  ;;  %2165 = vrot.lane.b32.xlu1 %v7328_v34, %s8155_s0  ;;  %v8902_v7 = vpop.permute.xlu1 %1955  ;;  %v2529_v34 = vld [vmem:[#allocation2 + $0x104] sm:$0xff] }
 0x19c   :  { %1959 = vrot.lane.b32.xlu0 %v8728_v56, %s8155_s0  ;;  %2083 = vrot.lane.b32.xlu1 %v8771_v26, %s8155_s0  ;;  %v8900_v56 = vpop.permute.xlu0 %1953  ;;  %v2442_v26 = vld [vmem:[#allocation2 + $0x5c] sm:$0xff]  ;;  %v8908_v48 = vpop.permute.xlu1 %1965 }
 0x1a0   :  { %1875 = vrot.lane.b32.xlu0 %v8704_v60, %s8155_s0  ;;  %1969 = vrot.lane.b32.xlu1 %v8734_v0, %s8155_s0  ;;  %v2328_v60 = vld [vmem:[#allocation2 + $0x3c] sm:$0xff]  ;;  %v2447_v0 = vld [vmem:[#allocation2 + $0xe4] sm:$0xff]  ;;  %v8906_v47 = vpop.permute.xlu0 %1963  ;;  %v8912_v23 = vpop.permute.xlu1 %2069 }
 0x1a1   :  { %v2088_v14 = vrot.slane %v8912_v23, 4 }
 0x1a4   :  { %2547 = vrot.lane.b32.xlu0 %v2524_v58, %s8155_s0  ;;  %1885 = vrot.lane.b32.xlu1 %v8710_v5, %s8155_s0  ;;  %v2133_v5 = vld [vmem:[#allocation2 + $0x80] sm:$0xf]  ;;  %v2068_v19 = vpop.permute.xlu0 %2067  ;;  %v2251_v58 = vld [vmem:[#allocation2 + $0xa4] sm:$0xff] }
 0x1a5   :  { %v7802_v32 = vpack.i.bf16 %v2138_v50, %v2133_v5  ;;  %v2525_v5 = vld [vmem:[#allocation2 + $0x84] sm:$0xf]  ;;  %v2530_v50 = vld [vmem:[#allocation2 + $0x10c] sm:$0xf] }
 0x1a8   :  { %2465 = vrot.lane.b32.xlu0 %v2442_v26, %s8155_s0  ;;  %2557 = vrot.lane.b32.xlu1 %v2529_v34, %s8155_s0  ;;  %v2078_v26 = vpop.permute.xlu0 %2077  ;;  %v2160_v34 = vpop.permute.xlu1 %2159 }
 0x1a9   :  { %v2174_v24 = vrot.slane %v2160_v34, 4 }
 0x1ac   :  { %2351 = vrot.lane.b32.xlu0 %v2328_v60, %s8155_s0  ;;  %2475 = vrot.lane.b32.xlu1 %v2447_v0, %s8155_s0  ;;  %v2056_v60 = vld [vmem:[#allocation2 + $0xe8] sm:$0xf]  ;;  %v2051_v0 = vld [vmem:[#allocation2 + $0x60] sm:$0xf]  ;;  %v2150_v2 = vpop.permute.xlu0 %2149 }
 0x1ad   :  { %v2169_v49 = vrot.slane %v2150_v2, 4 }
 0x1b0   :  { %2269 = vrot.lane.b32.xlu0 %v2246_v61, %s8155_s0  ;;  %2361 = vrot.lane.b32.xlu1 %v2333_v63, %s8155_s0  ;;  %v8920_v61 = vpop.permute.xlu1 %2079 }
 0x1b4   :  { %7803 = vrot.lane.b32.xlu0 %v7802_v32, %s8155_s0  ;;  %2279 = vrot.lane.b32.xlu1 %v2251_v58, %s8155_s0  ;;  %v11028_v32 = vrot.slane %v8920_v61, 4 }
 0x1b8   :  { %2085 = vrot.lane.b32.xlu0 %v2056_v60, %s8155_s0  ;;  %2075 = vrot.lane.b32.xlu1 %v2051_v0, %s8155_s0  ;;  %v7807_v60 = vpack.i.bf16 %v2530_v50, %v2525_v5  ;;  %v2092_v0 = vrot.slane %v2078_v26, 4 }
 0x1bc   :  { %1971 = vrot.lane.b32.xlu0 %v1942_v4, %s8155_s0  ;;  %1961 = vrot.lane.b32.xlu1 %v1937_v18, %s8155_s0  ;;  %v2087_v4 = vrot.slane %v2068_v19, 4 }
 0x1be   :  { %v2152_v63 = vpop.permute.xlu0 %2151  ;;  %v2097_v5 = vsel %vm1899_vm1, %v2087_v4, %v2088_v14 }
 0x1bf   :  { %v2170_v58 = vrot.slane %v2152_v63, 4 }
 0x1c0   :  { %1887 = vrot.lane.b32.xlu0 %v1858_v27, %s8155_s0  ;;  %1877 = vrot.lane.b32.xlu1 %v1853_v59, %s8155_s0  ;;  %v2105_v27 = vsel %vm1899_vm1, %v2092_v0, %v11028_v32  ;;  %v2448_v32 = vld [vmem:[#allocation2 + $0xec] sm:$0xf] }
 0x1c1   :  { %v2179_v13 = vsel %vm1899_vm1, %v2169_v49, %v2170_v58  ;;  %v2106_v30 = vsel %vm1901_vm2, %v2078_v26, %v2105_v27 }
 0x1c2   :  { %v8928_v20 = vpop.permute.xlu0 %1879  ;;  %v2162_v18 = vpop.permute.xlu1 %2161  ;;  %v2180_v46 = vsel %vm1901_vm2, %v2150_v2, %v2179_v13  ;;  %v1979_v13 = vrot.slane %v8908_v48, 4 }
 0x1c3   :  { %v2175_v9 = vrot.slane %v2162_v18, 4 }
 0x1c4   :  { %2467 = vrot.lane.b32.xlu0 %v2443_v25, %s8155_s0  ;;  %7808 = vrot.lane.b32.xlu1 %v7807_v60, %s8155_s0  ;;  %v2329_v25 = vld [vmem:[#allocation2 + $0x44] sm:$0xf] }
 0x1c5   :  { %v2187_v59 = vsel %vm1899_vm1, %v2174_v24, %v2175_v9  ;;  %v2098_v24 = vsel %vm1901_vm2, %v2068_v19, %v2097_v5  ;;  %v1973_v5 = vrot.slane %v8900_v56, 4 }
 0x1c6   :  { %v8938_v50 = vpop.permute.xlu0 %2153  ;;  %v8940_v36 = vpop.permute.xlu1 %1881  ;;  %v2188_v49 = vsel %vm1901_vm2, %v2160_v34, %v2187_v59  ;;  %v6986_v4 = vcombine.high %v2098_v24, %v2106_v30  ;;  %v2334_v59 = vld [vmem:[#allocation2 + $0xcc] sm:$0xf] }
 0x1c7   :  { %v11032_v0 = vrot.slane %v8938_v50, 4  ;;  %v6993_v60 = vcombine.low %v2180_v46, %v2188_v49  ;;  %v6994_v35 = vcombine.high %v2180_v46, %v2188_v49  ;;  %v2247_v46 = vld [vmem:[#allocation2 + $0x24] sm:$0xf]  ;;  %v1974_v49 = vrot.slane %v8902_v7, 4 }
 0x1c8   :  { %2353 = vrot.lane.b32.xlu0 %v2329_v25, %s8155_s0  ;;  %2477 = vrot.lane.b32.xlu1 %v2448_v32, %s8155_s0  ;;  %v6985_v32 = vcombine.low %v2098_v24, %v2106_v30 }
 0x1c9   :  { %3409 = vmatprep.subr.bf16.mxu0 %v6994_v35  ;;  %v2181_v19 = vsel %vm1899_vm1, %v2170_v58, %v11032_v0  ;;  %v1978_v35 = vrot.slane %v8906_v47, 4 }
 0x1ca   :  { %v8950_v2 = vpop.permute.xlu0 %2071  ;;  %3410 = vmatpush1.bf16.msra.mxu0 %v6993_v60  ;;  %v8952_v26 = vpop.permute.xlu1 %2163  ;;  %v1895_v60 = vrot.slane %v8940_v36, 4  ;;  %v2182_v30 = vsel %vm1901_vm2, %v2152_v63, %v2181_v19  ;;  %v1890_v63 = vrot.slane %v8895_v33, 4  ;;  %v11037_v19 = vrot.slane %v8920_v61, 4 }
 0x1cb   :  { %v2089_v34 = vrot.slane %v8950_v2, 4  ;;  %v11031_v27 = vrot.slane %v8952_v26, 4  ;;  %3411 = vmatprep.subr.bf16.mxu0 %v6986_v4 }
 0x1cc   :  { %2271 = vrot.lane.b32.xlu0 %v2247_v46, %s8155_s0  ;;  %2363 = vrot.lane.b32.xlu1 %v2334_v59, %s8155_s0  ;;  %v1991_v46 = vsel %vm1899_vm1, %v1978_v35, %v1979_v13  ;;  %v1983_v35 = vsel %vm1899_vm1, %v1973_v5, %v1974_v49  ;;  %v2734_v5 = vld [vmem:[%s11012_s3] sm:$0xff] }
 0x1cd   :  { %v2189_v25 = vsel %vm1899_vm1, %v2175_v9, %v11031_v27  ;;  %v2252_v9 = vld [vmem:[#allocation2 + $0xac] sm:$0xf] }
 0x1ce   :  { %v8968_v4 = vpop.permute.xlu0 %2541  ;;  %3412 = vmatpush1.bf16.msra.mxu0 %v6985_v32  ;;  %v8970_v58 = vpop.permute.xlu1 %2081  ;;  %v2190_v24 = vsel %vm1901_vm2, %v2162_v18, %v2189_v25  ;;  %v2099_v32 = vsel %vm1899_vm1, %v2088_v14, %v2089_v34  ;;  %v1894_v18 = vrot.slane %v8928_v20, 4 }
 0x1cf   :  { %v2094_v59 = vrot.slane %v8970_v58, 4  ;;  %3413 = vmatprep.subr.bf16.mxu0 %v8749_v45  ;;  %v6995_v27 = vcombine.low %v2182_v30, %v2190_v24  ;;  %v6996_v0 = vcombine.high %v2182_v30, %v2190_v24  ;;  %v1992_v24 = vsel %vm1901_vm2, %v8906_v47, %v1991_v46 }
 0x1d0   :  { %2281 = vrot.lane.b32.xlu1 %v2252_v9, %s8155_s0  ;;  %v1889_v9 = vrot.slane %v8893_v31, 4 }
 0x1d1   :  { %3460 = vmatprep.subr.bf16.mxu1 %v6996_v0  ;;  %v2107_v45 = vsel %vm1899_vm1, %v11037_v19, %v2094_v59  ;;  %v2100_v0 = vsel %vm1901_vm2, %v8912_v23, %v2099_v32  ;;  %v1909_v23 = vsel %vm1899_vm1, %v1894_v18, %v1895_v60 }
 0x1d2   :  { %v8993_v25 = vpop.permute.xlu0 %2459  ;;  %3414 = vmatpush1.bf16.msra.mxu0 %v8747_v44  ;;  %3461 = vmatpush1.bf16.msra.mxu1 %v6995_v27  ;;  %v8996_v14 = vpop.permute.xlu1 %2543  ;;  %v2108_v30 = vsel %vm1901_vm2, %v8920_v61, %v2107_v45  ;;  %v1984_v61 = vsel %vm1901_vm2, %v8900_v56, %v1983_v35  ;;  %v1900_v46 = vsel %vm1899_vm1, %v1889_v9, %v1890_v63 }
 0x1d3   :  { %3415 = vmatprep.subr.bf16.mxu0 %v8726_v43  ;;  %v6987_v44 = vcombine.low %v2100_v0, %v2108_v30  ;;  %v6988_v27 = vcombine.high %v2100_v0, %v2108_v30  ;;  %v6962_v47 = vcombine.high %v1984_v61, %v1992_v24  ;;  %v1910_v19 = vsel %vm1901_vm2, %v8928_v20, %v1909_v23 }
 0x1d4   :  { %2739 = vperm.xlu1 %7813, %v2734_v5   ;;  %v6961_v56 = vcombine.low %v1984_v61, %v1992_v24  ;;  %v1902_v18 = vsel %vm1901_vm2, %v8893_v31, %v1900_v46  ;;  %v2561_v5 = vrot.slane %v8968_v4, 4 }
 0x1d5   :  { %3462 = vmatprep.subr.bf16.mxu1 %v6988_v27  ;;  %v6954_v45 = vcombine.high %v1902_v18, %v1910_v19  ;;  %v6953_v20 = vcombine.low %v1902_v18, %v1910_v19  ;;  %v11039_v27 = vmax.f32 %v8676_v21, 0.0 }
 0x1d6   :  { %v2470_v32 = vpop.permute.xlu0 %2469  ;;  %3416 = vmatpush1.bf16.msra.mxu0 %v8724_v42  ;;  %3463 = vmatpush1.bf16.msra.mxu1 %v6987_v44  ;;  %v9018_v43 = vpop.permute.xlu1 %2461  ;;  %v11038_v44 = vmax.f32 %v8667_v11, 0.0  ;;  %v2735_v11 = vld [vmem:[%s11012_s3 + $0x8] sm:$0xff] }
 0x1d7   :  { %3417 = vmatprep.subr.bf16.mxu0 %v6962_v47  ;;  %3464 = vmatprep.subr.bf16.mxu1 %v8783_v57  ;;  %v2562_v57 = vrot.slane %v8996_v14, 4  ;;  %v2484_v9 = vrot.slane %v2470_v32, 4  ;;  %v2480_v61 = vrot.slane %v9018_v43, 4 }
 0x1d8   :  { %v8152_v23 = vpack.c.bf16 %v11039_v27, %v11038_v44  ;;  %2744 = vperm.xlu1 %7813, %v2735_v11   ;;  %v11041_v44 = vmax.f32 %v8670_v16, 0.0 }
 0x1da   :  { %v9025_v35 = vpop.permute.xlu0 %1957  ;;  %3418 = vmatpush1.bf16.msra.mxu0 %v6961_v56  ;;  %v9027_v0 = vpop.permute.xlu1 %2471  ;;  %3465 = vmatpush1.bf16.msra.mxu1 %v8781_v17 }
 0x1db   :  { %v1975_v42 = vrot.slane %v9025_v35, 4  ;;  %3419 = vmatprep.subr.bf16.mxu0 %v6954_v45  ;;  %3466 = vmatprep.subr.bf16.mxu1 %v8744_v38  ;;  %v2485_v30 = vrot.slane %v9027_v0, 4 }
 0x1dd   :  { %v1985_v38 = vsel %vm1899_vm1, %v1974_v49, %v1975_v42  ;;  %v2571_v49 = vsel %vm1899_vm1, %v2561_v5, %v2562_v57  ;;  %v2497_v56 = vsel %vm1899_vm1, %v2484_v9, %v2485_v30  ;;  %v11040_v5 = vmax.f32 %v8664_v3, 0.0 }
 0x1de   :  { %v2552_v24 = vpop.permute.xlu0 %2551  ;;  %3420 = vmatpush1.bf16.msra.mxu0 %v6953_v20  ;;  %v9034_v31 = vpop.permute.xlu1 %1967  ;;  %3467 = vmatpush1.bf16.msra.mxu1 %v8742_v37  ;;  %v2479_v37 = vrot.slane %v8993_v25, 4  ;;  %v1986_v19 = vsel %vm1901_vm2, %v8902_v7, %v1985_v38  ;;  %v2572_v3 = vsel %vm1901_vm2, %v8968_v4, %v2571_v49 }
 0x1df   :  { %v1980_v17 = vrot.slane %v9034_v31, 4  ;;  %3421 = vmatprep.subr.bf16.mxu0 %v8702_v52  ;;  %v2566_v21 = vrot.slane %v2552_v24, 4  ;;  %v8153_v7 = vpack.c.bf16 %v11041_v44, %v11040_v5 }
 0x1e0   :  { %v2489_v38 = vsel %vm1899_vm1, %v2479_v37, %v2480_v61 }
 0x1e1   :  { %v1993_v52 = vsel %vm1899_vm1, %v1979_v13, %v1980_v17 }
 0x1e2   :  { %v9062_v47 = vpop.permute.xlu0 %1873  ;;  %3422 = vmatpush1.bf16.msra.mxu0 %v8700_v51  ;;  %v9065_v46 = vpop.permute.xlu1 %2553  ;;  %v1994_v13 = vsel %vm1901_vm2, %v8908_v48, %v1993_v52 }
 0x1e3   :  { %v1891_v18 = vrot.slane %v9062_v47, 4  ;;  %v2567_v45 = vrot.slane %v9065_v46, 4  ;;  %3423 = vmatprep.subr.bf16.mxu0 %v8152_v23  ;;  %v6963_v20 = vcombine.low %v1986_v19, %v1994_v13  ;;  %v6964_v51 = vcombine.high %v1986_v19, %v1994_v13 }
 0x1e4   :  { %v2498_v23 = vsel %vm1901_vm2, %v2470_v32, %v2497_v56  ;;  %v2490_v19 = vsel %vm1901_vm2, %v8993_v25, %v2489_v38 }
 0x1e5   :  { %3468 = vmatprep.subr.bf16.mxu1 %v6964_v51  ;;  %v2579_v48 = vsel %vm1899_vm1, %v2566_v21, %v2567_v45  ;;  %v1903_v37 = vsel %vm1899_vm1, %v1890_v63, %v1891_v18  ;;  %v7050_v13 = vcombine.high %v2490_v19, %v2498_v23 }
 0x1e6   :  { %v2346_v9 = vpop.permute.xlu0 %2345  ;;  %3424 = vmatpush1.bf16.msra.mxu0 %v8153_v7  ;;  %v9086_v27 = vpop.permute.xlu1 %1883  ;;  %3469 = vmatpush1.bf16.msra.mxu1 %v6963_v20  ;;  %v2580_v16 = vsel %vm1901_vm2, %v2552_v24, %v2579_v48  ;;  %v1904_v49 = vsel %vm1901_vm2, %v8895_v33, %v1903_v37  ;;  %v7049_v20 = vcombine.low %v2490_v19, %v2498_v23  ;;  %v7822_v19 = vld [vmem:[#allocation2 + $0x8] ss:$136 sps:$4 sm:$0xff]  }
 0x1e7   :  { %v1896_v52 = vrot.slane %v9086_v27, 4  ;;  %v7057_v11 = vcombine.low %v2572_v3, %v2580_v16  ;;  %v7058_v21 = vcombine.high %v2572_v3, %v2580_v16  ;;  %v2365_v44 = vrot.slane %v2346_v9, 4 }
 0x1e8   :  { %v11042_v33 = vcombine.high %v8788_v8, %v8792_v15  ;;  %v11043_v23 = vcombine.low %v8788_v8, %v8792_v15  ;;  %v11044_v37 = vcombine.high %v8752_v53, %v8754_v54  ;;  %v11045_v8 = vcombine.low %v8752_v53, %v8754_v54  ;;  %v2736_v53 = vld [vmem:[%s11012_s3 + $0x10] sm:$0xf] }
 0x1e9   :  { %3425 = vmatprep.subr.bf16.mxu0 %v7058_v21  ;;  %v1911_v4 = vsel %vm1899_vm1, %v1895_v60, %v1896_v52  ;;  %2749 = vperm.xlu0 %7812, %v2736_v53  }
 0x1ea   :  { %v2356_v32 = vpop.permute.xlu0 %2355  ;;  %3426 = vmatpush2.bf16.msra.mxu0 %v7057_v11  ;;  %v9105_v24 = vpop.permute.xlu1 %2347  ;;  %v1912_v63 = vsel %vm1901_vm2, %v8940_v36, %v1911_v4  ;;  %v7824_v36 = vld [vmem:[#allocation2 + $0xc] ss:$136 sps:$4 sm:$0xff]  }
 0x1eb   :  { %3427 = vmatprep.subr.bf16.mxu0 %v7050_v13  ;;  %v6955_v25 = vcombine.low %v1904_v49, %v1912_v63  ;;  %v6956_v56 = vcombine.high %v1904_v49, %v1912_v63  ;;  %v2366_v51 = vrot.slane %v9105_v24, 4  ;;  %v2370_v7 = vrot.slane %v2356_v32, 4 }
 0x1ed   :  { %3470 = vmatprep.subr.bf16.mxu1 %v6956_v56  ;;  %v2375_v38 = vsel %vm1899_vm1, %v2365_v44, %v2366_v51 }
 0x1ee   :  { %v2264_v5 = vpop.permute.xlu0 %2263  ;;  %3428 = vmatpush2.bf16.msra.mxu0 %v7049_v20  ;;  %v9112_v60 = vpop.permute.xlu1 %2357  ;;  %3471 = vmatpush1.bf16.msra.mxu1 %v6955_v25  ;;  %v2376_v13 = vsel %vm1901_vm2, %v2346_v9, %v2375_v38 }
 0x1ef   :  { %v2371_v48 = vrot.slane %v9112_v60, 4  ;;  %3429 = vmatprep.subr.bf16.mxu0 %v11042_v33  ;;  %3472 = vmatprep.subr.bf16.mxu1 %v8721_v40  ;;  %v2283_v4 = vrot.slane %v2264_v5, 4 }
 0x1f1   :  { %v2383_v3 = vsel %vm1899_vm1, %v2370_v7, %v2371_v48 }
 0x1f2   :  { %v2274_v16 = vpop.permute.xlu0 %2273  ;;  %3430 = vmatpush2.bf16.msra.mxu0 %v11043_v23  ;;  %v9128_v11 = vpop.permute.xlu1 %2265  ;;  %3473 = vmatpush1.bf16.msra.mxu1 %v8719_v39  ;;  %v2384_v40 = vsel %vm1901_vm2, %v2356_v32, %v2383_v3 }
 0x1f3   :  { %v2284_v21 = vrot.slane %v9128_v11, 4  ;;  %3431 = vmatprep.subr.bf16.mxu0 %v11044_v37  ;;  %3474 = vmatprep.subr.bf16.mxu1 %v7824_v36  ;;  %v7026_v49 = vcombine.high %v2376_v13, %v2384_v40  ;;  %v2288_v32 = vrot.slane %v2274_v16, 4  ;;  %v7025_v54 = vcombine.low %v2376_v13, %v2384_v40 }
 0x1f4   :  { %v7010_v37 = vcombine.high %v8832_v1, %v8838_v62 }
 0x1f5   :  { %v2293_v9 = vsel %vm1899_vm1, %v2283_v4, %v2284_v21 }
 0x1f6   :  { %3432 = vmatpush2.bf16.msra.mxu0 %v11045_v8  ;;  %v9140_v15 = vpop.permute.xlu1 %2275  ;;  %3475 = vmatpush1.bf16.msra.mxu1 %v7822_v19  ;;  %v9142_v39 = vpop.permute.xlu0 %2545  ;;  %v2294_v7 = vsel %vm1901_vm2, %v2264_v5, %v2293_v9 }
 0x1f7   :  { %v2289_v63 = vrot.slane %v9140_v15, 4  ;;  %v2563_v25 = vrot.slane %v9142_v39, 4  ;;  %3433 = vmatprep.subr.bf16.mxu0 %v7026_v49 }
 0x1f9   :  { %v2301_v56 = vsel %vm1899_vm1, %v2288_v32, %v2289_v63  ;;  %v2573_v36 = vsel %vm1899_vm1, %v2562_v57, %v2563_v25  ;;  %v7009_v32 = vcombine.low %v8832_v1, %v8838_v62 }
 0x1fa   :  { %3434 = vmatpush2.bf16.msra.mxu0 %v7025_v54  ;;  %v9155_v20 = vpop.permute.xlu0 %2463  ;;  %v9157_v44 = vpop.permute.xlu1 %2555  ;;  %v2302_v33 = vsel %vm1901_vm2, %v2274_v16, %v2301_v56  ;;  %v2574_v19 = vsel %vm1901_vm2, %v8996_v14, %v2573_v36  ;;  %v7002_v14 = vcombine.high %v8846_v22, %v8854_v29 }
 0x1fb   :  { %v2481_v38 = vrot.slane %v9155_v20, 4  ;;  %v2568_v3 = vrot.slane %v9157_v44, 4  ;;  %v7017_v23 = vcombine.low %v2294_v7, %v2302_v33  ;;  %v7018_v40 = vcombine.high %v2294_v7, %v2302_v33 }
 0x1fc   :  { %v7001_v7 = vcombine.low %v8846_v22, %v8854_v29  ;;  %v11046_v29 = vcombine.high %v8790_v12, %v8794_v28 }
 0x1fd   :  { %3435 = vmatprep.subr.bf16.mxu0 %v7018_v40  ;;  %v2581_v5 = vsel %vm1899_vm1, %v2567_v45, %v2568_v3  ;;  %v2491_v45 = vsel %vm1899_vm1, %v2480_v61, %v2481_v38 }
 0x1fe   :  { %3436 = vmatpush2.bf16.msra.mxu0 %v7017_v23  ;;  %v9175_v16 = vpop.permute.xlu0 %2349  ;;  %v9177_v57 = vpop.permute.xlu1 %2473  ;;  %v2582_v13 = vsel %vm1901_vm2, %v9065_v46, %v2581_v5  ;;  %v2492_v61 = vsel %vm1901_vm2, %v9018_v43, %v2491_v45  ;;  %v9216_v43 = vld [vmem:[%s11011_s2] ss:$8 sps:$4 sm:$0xff]  }
 0x1ff   :  { %v2486_v4 = vrot.slane %v9177_v57, 4  ;;  %3437 = vmatprep.subr.bf16.mxu0 %v7010_v37  ;;  %v7059_v49 = vcombine.low %v2574_v19, %v2582_v13  ;;  %v7060_v8 = vcombine.high %v2574_v19, %v2582_v13  ;;  %v2367_v33 = vrot.slane %v9175_v16, 4 }
 0x201   :  { %3476 = vmatprep.subr.bf16.mxu1 %v7060_v8  ;;  %v2499_v46 = vsel %vm1899_vm1, %v2485_v30, %v2486_v4  ;;  %v2605_v30 = vld [vmem:[%s11011_s2 + $0x10] sm:$0x33]  ;;  %v2377_v19 = vsel %vm1899_vm1, %v2366_v51, %v2367_v33  ;;  %v11048_v51 = vcombine.high %v8758_v41, %v8756_v55 }
 0x202   :  { %3438 = vmatpush2.bf16.msra.mxu0 %v7009_v32  ;;  %v9198_v9 = vpop.permute.xlu0 %2267  ;;  %3477 = vmatpush2.bf16.msra.mxu1 %v7059_v49  ;;  %v9200_v53 = vpop.permute.xlu1 %2359  ;;  %v2500_v1 = vsel %vm1901_vm2, %v9027_v0, %v2499_v46  ;;  %v9222_v23 = vcombine.high %v2605_v30, %v2605_v30  ;;  %v11047_v49 = vcombine.low %v8790_v12, %v8794_v28  ;;  %v11049_v12 = vrot.slane %v8938_v50, 4 }
 0x203   :  { %v2372_v62 = vrot.slane %v9200_v53, 4  ;;  %3439 = vmatprep.subr.bf16.mxu0 %v7002_v14  ;;  %v7051_v54 = vcombine.low %v2492_v61, %v2500_v1  ;;  %v7052_v56 = vcombine.high %v2492_v61, %v2500_v1  ;;  %v2285_v5 = vrot.slane %v9198_v9, 4 }
 0x204   :  { %v2378_v14 = vsel %vm1901_vm2, %v9105_v24, %v2377_v19  ;;  %v11050_v61 = vrot.slane %v8952_v26, 4  ;;  %v11051_v24 = vcombine.low %v8758_v41, %v8756_v55 }
 0x205   :  { %3478 = vmatprep.subr.bf16.mxu1 %v7052_v56  ;;  %v2385_v37 = vsel %vm1899_vm1, %v2371_v48, %v2372_v62  ;;  %v9278_v56 = vcombine.low %v2605_v30, %v2605_v30 }
 0x206   :  { %3440 = vmatpush2.bf16.msra.mxu0 %v7001_v7  ;;  %v9218_v0 = vpop.permute.xlu0 %2155  ;;  %3479 = vmatpush2.bf16.msra.mxu1 %v7051_v54  ;;  %v9220_v36 = vpop.permute.xlu1 %2277  ;;  %v2386_v48 = vsel %vm1901_vm2, %v9112_v60, %v2385_v37  ;;  %v2295_v54 = vsel %vm1899_vm1, %v2284_v21, %v2285_v5 }
 0x207   :  { %v2172_v40 = vrot.slane %v9218_v0, 4  ;;  %v2290_v22 = vrot.slane %v9220_v36, 4  ;;  %3480 = vmatprep.subr.bf16.mxu1 %v11046_v29  ;;  %v7028_v46 = vcombine.high %v2378_v14, %v2386_v48  ;;  %v7027_v41 = vcombine.low %v2378_v14, %v2386_v48  ;;  %v2033_v48 = vld [vmem:[#allocation2 + $0x70] sm:$0xff] }
 0x209   :  { %3442 = vmatmul.mubr.bf16.vlgmr.msra.gmra.mxu0 %v9216_v43  ;;  %v2183_v28 = vsel %vm1899_vm1, %v11049_v12, %v2172_v40  ;;  %v2303_v60 = vsel %vm1899_vm1, %v2289_v63, %v2290_v22 }
 0x20a   :  { %v9241_v13 = vpop.permute.xlu0 %2073  ;;  %3481 = vmatpush2.bf16.msra.mxu1 %v11047_v49  ;;  %v9246_v8 = vpop.permute.xlu1 %2165  ;;  %3451 = vmatprep.mubr.bf16.mxu0 %v9222_v23  ;;  %v2184_v29 = vsel %vm1901_vm2, %v8938_v50, %v2183_v28  ;;  %v2304_v19 = vsel %vm1901_vm2, %v9140_v15, %v2303_v60  ;;  %v2296_v50 = vsel %vm1901_vm2, %v9128_v11, %v2295_v54  ;;  %v11053_v54 = vld [vmem:[#allocation5_spill] sm:$0xff] }
 0x20b   :  { %v2090_v45 = vrot.slane %v9241_v13, 4  ;;  %v2177_v32 = vrot.slane %v9246_v8, 4  ;;  %3482 = vmatprep.subr.bf16.mxu1 %v11048_v51  ;;  %v7019_v14 = vcombine.low %v2296_v50, %v2304_v19 }
 0x20d   :  { %v2191_v1 = vsel %vm1899_vm1, %v11050_v61, %v2177_v32  ;;  %v2101_v55 = vsel %vm1899_vm1, %v2089_v34, %v2090_v45  ;;  %v11052_v61 = vld [vmem:[#allocation6_spill] sm:$0xff] }
 0x20e   :  { %v9280_v7 = vpop.permute.xlu0 %1959  ;;  %3483 = vmatpush2.bf16.msra.mxu1 %v11051_v24  ;;  %v9285_v63 = vpop.permute.xlu1 %2083  ;;  %v2192_v37 = vsel %vm1901_vm2, %v8952_v26, %v2191_v1  ;;  %v7020_v26 = vcombine.high %v2296_v50, %v2304_v19  ;;  %v2102_v34 = vsel %vm1901_vm2, %v8950_v2, %v2101_v55  ;;  %v7012_v1 = vcombine.high %v11052_v61, %v8848_v6  ;;  %v11054_v55 = vld [vmem:[#allocation8_spill] sm:$0xff] }
 0x20f   :  { %v2095_v21 = vrot.slane %v9285_v63, 4  ;;  %3484 = vmatprep.subr.bf16.mxu1 %v7028_v46  ;;  %v6997_v30 = vcombine.low %v2184_v29, %v2192_v37  ;;  %v6998_v49 = vcombine.high %v2184_v29, %v2192_v37  ;;  %v1976_v46 = vrot.slane %v9280_v7, 4 }
 0x210   :  { %v6982_v2 = vcombine.high %v2033_v48, %v11053_v54  ;;  %v7011_v19 = vcombine.low %v11052_v61, %v8848_v6 }
 0x211   :  { %3511 = vmatprep.subr.bf16.mxu0 %v6998_v49  ;;  %v2109_v15 = vsel %vm1899_vm1, %v2094_v59, %v2095_v21  ;;  %3452 = vmatmul.mubr.bf16.gmra.mxu0 %v9278_v56 }
 0x212   :  { %v9307_v51 = vpop.permute.xlu0 %1875  ;;  %3485 = vmatpush2.bf16.msra.mxu1 %v7027_v41  ;;  %3512 = vmatpush1.bf16.msra.mxu0 %v6997_v30  ;;  %v9309_v12 = vpop.permute.xlu1 %1969  ;;  %v2110_v11 = vsel %vm1901_vm2, %v8970_v58, %v2109_v15  ;;  %v6981_v30 = vcombine.low %v2033_v48, %v11053_v54  ;;  %v11055_v41 = vld [vmem:[#allocation7_spill] sm:$0xff]  ;;  %v1987_v15 = vsel %vm1899_vm1, %v1975_v42, %v1976_v46 }
 0x213   :  { %v1981_v28 = vrot.slane %v9309_v12, 4  ;;  %3486 = vmatprep.subr.bf16.mxu1 %v7020_v26  ;;  %v6989_v60 = vcombine.low %v2102_v34, %v2110_v11  ;;  %v6990_v59 = vcombine.high %v2102_v34, %v2110_v11  ;;  %3543 = vmatprep.mubr.bf16.mxu0 %v8874_v10  ;;  %v1892_v49 = vrot.slane %v9307_v51, 4  ;;  %v7842_v26 = vld [vmem:[#allocation2 + $0x54] ss:$136 sps:$4 sm:$0xff]   ;;  %v7840_v48 = vld [vmem:[#allocation2 + $0x50] ss:$136 sps:$4 sm:$0xff]  }
 0x214   :  { %v7004_v50 = vcombine.high %v11055_v41, %v11054_v55  ;;  %v7003_v42 = vcombine.low %v11055_v41, %v11054_v55 }
 0x215   :  { %3513 = vmatprep.subr.bf16.mxu0 %v6990_v59  ;;  %v1995_v37 = vsel %vm1899_vm1, %v1980_v17, %v1981_v28 }
 0x216   :  { %v9321_v24 = vpop.permute.xlu0 %2547  ;;  %3487 = vmatpush2.bf16.msra.mxu1 %v7019_v14  ;;  %3514 = vmatpush1.bf16.msra.mxu0 %v6989_v60  ;;  %v9323_v58 = vpop.permute.xlu1 %1885  ;;  %v1996_v6 = vsel %vm1901_vm2, %v9034_v31, %v1995_v37  ;;  %v1988_v60 = vsel %vm1901_vm2, %v9025_v35, %v1987_v15  ;;  %v1905_v31 = vsel %vm1899_vm1, %v1891_v18, %v1892_v49 }
 0x217   :  { %v1897_v29 = vrot.slane %v9323_v58, 4  ;;  %3488 = vmatprep.subr.bf16.mxu1 %v7012_v1  ;;  %3515 = vmatprep.subr.bf16.mxu0 %v6982_v2  ;;  %v6966_v59 = vcombine.high %v1988_v60, %v1996_v6  ;;  %v6965_v1 = vcombine.low %v1988_v60, %v1996_v6  ;;  %v1906_v35 = vsel %vm1901_vm2, %v9062_v47, %v1905_v31 }
 0x219   :  { %v1913_v11 = vsel %vm1899_vm1, %v1896_v52, %v1897_v29 }
 0x21a   :  { %v9342_v34 = vpop.permute.xlu0 %2465  ;;  %3489 = vmatpush2.bf16.msra.mxu1 %v7011_v19  ;;  %3516 = vmatpush1.bf16.msra.mxu0 %v6981_v30  ;;  %v9344_v17 = vpop.permute.xlu1 %2557  ;;  %v1914_v52 = vsel %vm1901_vm2, %v9086_v27, %v1913_v11  ;;  %v2564_v19 = vrot.slane %v9321_v24, 4  ;;  %v7845_v30 = vld [vmem:[#allocation2 + $0x34] ss:$136 sps:$4 sm:$0xff]  }
 0x21b   :  { %3490 = vmatprep.subr.bf16.mxu1 %v7004_v50  ;;  %3517 = vmatprep.subr.bf16.mxu0 %v7842_v26  ;;  %v6958_v54 = vcombine.high %v1906_v35, %v1914_v52  ;;  %v2569_v2 = vrot.slane %v9344_v17, 4  ;;  %v6957_v27 = vcombine.low %v1906_v35, %v1914_v52  ;;  %v2482_v11 = vrot.slane %v9342_v34, 4 }
 0x21c   :  { %v2575_v6 = vsel %vm1899_vm1, %v2563_v25, %v2564_v19 }
 0x21d   :  { %v2583_v50 = vsel %vm1899_vm1, %v2568_v3, %v2569_v2 }
 0x21e   :  { %v9362_v14 = vpop.permute.xlu0 %2351  ;;  %3491 = vmatpush2.bf16.msra.mxu1 %v7003_v42  ;;  %3518 = vmatpush1.bf16.msra.mxu0 %v7840_v48  ;;  %v9364_v61 = vpop.permute.xlu1 %2475  ;;  %v7843_v42 = vld [vmem:[#allocation2 + $0x30] ss:$136 sps:$4 sm:$0xff]   ;;  %v2584_v31 = vsel %vm1901_vm2, %v9157_v44, %v2583_v50 }
 0x21f   :  { %3519 = vmatprep.subr.bf16.mxu0 %v6966_v59  ;;  %v2487_v55 = vrot.slane %v9364_v61, 4  ;;  %v7848_v59 = vld [vmem:[#allocation2 + $0x14] ss:$136 sps:$4 sm:$0xff]  }
 0x221   :  { %3493 = vmatmul.mubr.bf16.vlgmr.msra.gmra.mxu1 %v9216_v43  ;;  %v2501_v25 = vsel %vm1899_vm1, %v2486_v4, %v2487_v55 }
 0x222   :  { %v9372_v18 = vpop.permute.xlu0 %2269  ;;  %3520 = vmatpush1.bf16.msra.mxu0 %v6965_v1  ;;  %v9374_v37 = vpop.permute.xlu1 %2361  ;;  %3502 = vmatprep.mubr.bf16.mxu1 %v9222_v23  ;;  %v2576_v1 = vsel %vm1901_vm2, %v9142_v39, %v2575_v6  ;;  %v7846_v39 = vld [vmem:[#allocation2 + $0x10] ss:$136 sps:$4 sm:$0xff]  }
 0x223   :  { %3521 = vmatprep.subr.bf16.mxu0 %v6958_v54 }
 0x226   :  { %v7804_v47 = vpop.permute.xlu0 %7803  ;;  %3522 = vmatpush1.bf16.msra.mxu0 %v6957_v27  ;;  %v9379_v41 = vpop.permute.xlu1 %2279 }
 0x227   :  { %v7806_v26 = vunpack.i.h.bf16 %v7804_v47  ;;  %v7805_v15 = vunpack.i.l.bf16 %v7804_v47  ;;  %3523 = vmatprep.subr.bf16.mxu0 %v7845_v30  ;;  %v7062_v30 = vcombine.high %v2576_v1, %v2584_v31 }
 0x229   :  { %v2178_v48 = vrot.slane %v7806_v26, 4  ;;  %v2173_v60 = vrot.slane %v7805_v15, 4  ;;  %3503 = vmatmul.mubr.bf16.gmra.mxu1 %v9278_v56 }
 0x22a   :  { %v2086_v3 = vpop.permute.xlu0 %2085  ;;  %3524 = vmatpush1.bf16.msra.mxu0 %v7843_v42  ;;  %v2076_v52 = vpop.permute.xlu1 %2075  ;;  %3594 = vmatprep.mubr.bf16.mxu1 %v8874_v10  ;;  %v2493_v10 = vsel %vm1899_vm1, %v2481_v38, %v2482_v11  ;;  %v2502_v38 = vsel %vm1901_vm2, %v9177_v57, %v2501_v25  ;;  %v7061_v42 = vcombine.low %v2576_v1, %v2584_v31  ;;  %v7851_v57 = vld [vmem:[#allocation2 + $0x7c] ss:$136 sps:$4 sm:$0xff]   ;;  %v2368_v25 = vrot.slane %v9362_v14, 4 }
 0x22b   :  { %v2096_v35 = vrot.slane %v2086_v3, 4  ;;  %v2091_v54 = vrot.slane %v2076_v52, 4  ;;  %3525 = vmatprep.subr.bf16.mxu0 %v7848_v59  ;;  %v2185_v44 = vsel %vm1899_vm1, %v2172_v40, %v2173_v60  ;;  %v2193_v27 = vsel %vm1899_vm1, %v2177_v32, %v2178_v48 }
 0x22c   :  { %v2186_v47 = vsel %vm1901_vm2, %v9218_v0, %v2185_v44  ;;  %v2194_v4 = vsel %vm1901_vm2, %v9246_v8, %v2193_v27  ;;  %v7854_v44 = vld [vmem:[#allocation2 + $0x78] ss:$136 sps:$4 sm:$0xff]  }
 0x22d   :  { %v2111_v40 = vsel %vm1899_vm1, %v2095_v21, %v2096_v35  ;;  %v2103_v32 = vsel %vm1899_vm1, %v2090_v45, %v2091_v54  ;;  %v6999_v50 = vcombine.low %v2186_v47, %v2194_v4  ;;  %v7000_v26 = vcombine.high %v2186_v47, %v2194_v4  ;;  %v7849_v27 = vld [vmem:[#allocation2 + $0x78] ss:$136 sps:$4 sm:$0xff]   ;;  %v7852_v47 = vld [vmem:[#allocation2 + $0x74] ss:$136 sps:$4 sm:$0xff]  }
 0x22e   :  { %v1972_v0 = vpop.permute.xlu0 %1971  ;;  %3526 = vmatpush1.bf16.msra.mxu0 %v7846_v39  ;;  %v1962_v15 = vpop.permute.xlu1 %1961  ;;  %v2104_v8 = vsel %vm1901_vm2, %v9241_v13, %v2103_v32  ;;  %v2112_v6 = vsel %vm1901_vm2, %v9285_v63, %v2111_v40  ;;  %v2494_v45 = vsel %vm1901_vm2, %v9155_v20, %v2493_v10  ;;  %v2373_v63 = vrot.slane %v9374_v37, 4 }
 0x22f   :  { %3527 = vmatprep.subr.bf16.mxu0 %v7062_v30  ;;  %3562 = vmatprep.subr.bf16.mxu1 %v7000_v26  ;;  %v6992_v21 = vcombine.high %v2104_v8, %v2112_v6  ;;  %v1982_v48 = vrot.slane %v1972_v0, 4  ;;  %v1977_v60 = vrot.slane %v1962_v15, 4  ;;  %v7054_v59 = vcombine.high %v2494_v45, %v2502_v38  ;;  %v7857_v30 = vld [vmem:[#allocation2 + $0x5c] ss:$136 sps:$4 sm:$0xff]  }
 0x230   :  { %3563 = vmatpush1.bf16.msra.mxu1 %v6999_v50  ;;  %v6991_v3 = vcombine.low %v2104_v8, %v2112_v6  ;;  %v7053_v35 = vcombine.low %v2494_v45, %v2502_v38  ;;  %v2291_v39 = vrot.slane %v9379_v41, 4  ;;  %v2286_v10 = vrot.slane %v9372_v18, 4  ;;  %v7858_v0 = vld [vmem:[#allocation2 + $0x54] ss:$136 sps:$4 sm:$0xff]  }
 0x231   :  { %3564 = vmatprep.subr.bf16.mxu1 %v6992_v21  ;;  %v1997_v20 = vsel %vm1899_vm1, %v1981_v28, %v1982_v48  ;;  %v1989_v31 = vsel %vm1899_vm1, %v1976_v46, %v1977_v60  ;;  %v2387_v28 = vsel %vm1899_vm1, %v2372_v62, %v2373_v63  ;;  %v7860_v62 = vld [vmem:[#allocation2 + $0x58] ss:$136 sps:$4 sm:$0xff]  }
 0x232   :  { %v1888_v13 = vpop.permute.xlu0 %1887  ;;  %3528 = vmatpush2.bf16.msra.mxu0 %v7061_v42  ;;  %v1878_v52 = vpop.permute.xlu1 %1877  ;;  %v1990_v46 = vsel %vm1901_vm2, %v9280_v7, %v1989_v31  ;;  %v1998_v4 = vsel %vm1901_vm2, %v9309_v12, %v1997_v20  ;;  %v2379_v7 = vsel %vm1899_vm1, %v2367_v33, %v2368_v25  ;;  %v7855_v12 = vld [vmem:[#allocation2 + $0x58] ss:$136 sps:$4 sm:$0xff]   ;;  %v2388_v26 = vsel %vm1901_vm2, %v9200_v53, %v2387_v28 }
 0x233   :  { %3529 = vmatprep.subr.bf16.mxu0 %v7054_v59  ;;  %v1898_v1 = vrot.slane %v1888_v13, 4  ;;  %v1893_v54 = vrot.slane %v1878_v52, 4  ;;  %v2380_v15 = vsel %vm1901_vm2, %v9175_v16, %v2379_v7  ;;  %v6967_v21 = vcombine.low %v1990_v46, %v1998_v4  ;;  %v7861_v20 = vld [vmem:[#allocation2 + $0x38] ss:$136 sps:$4 sm:$0xff]  }
 0x234   :  { %3565 = vmatpush1.bf16.msra.mxu1 %v6991_v3  ;;  %v7030_v38 = vcombine.high %v2380_v15, %v2388_v26  ;;  %v7029_v42 = vcombine.low %v2380_v15, %v2388_v26  ;;  %v9519_v26 = vld [vmem:[#allocation2 + $0x80] sm:$0xff] }
 0x235   :  { %3566 = vmatprep.subr.bf16.mxu1 %v7851_v57  ;;  %v1915_v40 = vsel %vm1899_vm1, %v1897_v29, %v1898_v1  ;;  %v1907_v32 = vsel %vm1899_vm1, %v1892_v49, %v1893_v54  ;;  %v6968_v29 = vcombine.high %v1990_v46, %v1998_v4  ;;  %v2305_v49 = vsel %vm1899_vm1, %v2290_v22, %v2291_v39  ;;  %v7866_v57 = vld [vmem:[#allocation2 + $0x38] ss:$136 sps:$4 sm:$0xff]   ;;  %v7871_v1 = vld [vmem:[#allocation2 + $0x1c] ss:$136 sps:$4 sm:$0xff]  }
 0x236   :  { %3530 = vmatpush2.bf16.msra.mxu0 %v7053_v35  ;;  %v7809_v50 = vpop.permute.xlu1 %7808  ;;  %v1908_v33 = vsel %vm1901_vm2, %v9307_v51, %v1907_v32  ;;  %v1916_v8 = vsel %vm1901_vm2, %v9323_v58, %v1915_v40  ;;  %v2297_v22 = vsel %vm1899_vm1, %v2285_v5, %v2286_v10  ;;  %v2306_v16 = vsel %vm1901_vm2, %v9220_v36, %v2305_v49  ;;  %v7863_v5 = vld [vmem:[#allocation2 + $0x3c] ss:$136 sps:$4 sm:$0xff]   ;;  %v2468_v13 = vpop.permute.xlu0 %2467 }
 0x237   :  { %3531 = vmatprep.subr.bf16.mxu0 %v7854_v44  ;;  %v7811_v53 = vunpack.i.h.bf16 %v7809_v50  ;;  %v7810_v6 = vunpack.i.l.bf16 %v7809_v50  ;;  %v6960_v51 = vcombine.high %v1908_v33, %v1916_v8  ;;  %v2298_v58 = vsel %vm1901_vm2, %v9198_v9, %v2297_v22  ;;  %v7864_v54 = vld [vmem:[#allocation2 + $0x34] ss:$136 sps:$4 sm:$0xff]   ;;  %v7877_v50 = vld [vmem:[#allocation2 + $0x80] ss:$136 sps:$4 sm:$0xff]   ;;  %3674 = vst.msk [vmem:[#allocation4 + $0x70] sm:$0xf] %vm3645_vm3, %v9519_v26 }
 0x238   :  { %3567 = vmatpush1.bf16.msra.mxu1 %v7849_v27  ;;  %v7022_v60 = vcombine.high %v2298_v58, %v2306_v16  ;;  %v6959_v3 = vcombine.low %v1908_v33, %v1916_v8  ;;  %v7021_v52 = vcombine.low %v2298_v58, %v2306_v16  ;;  %v2483_v31 = vrot.slane %v2468_v13, 4  ;;  %v7872_v4 = vld [vmem:[#allocation2 + $0x14] ss:$136 sps:$4 sm:$0xff]   ;;  %3646 = vst.msk [vmem:[#allocation4] sm:$0xf] %vm3645_vm3, %v9519_v26 }
 0x239   :  { %3568 = vmatprep.subr.bf16.mxu1 %v7857_v30  ;;  %v2570_v45 = vrot.slane %v7811_v53, 4  ;;  %v2565_v48 = vrot.slane %v7810_v6, 4  ;;  %v7874_v30 = vld [vmem:[#allocation2 + $0x18] ss:$136 sps:$4 sm:$0xff]   ;;  %3647 = vst.msk [vmem:[#allocation4 + $0x4] sm:$0xf] %vm3645_vm3, %v9519_v26 }
 0x23a   :  { %3532 = vmatpush2.bf16.msra.mxu0 %v7852_v47  ;;  %v2478_v59 = vpop.permute.xlu1 %2477  ;;  %v2495_v28 = vsel %vm1899_vm1, %v2482_v11, %v2483_v31  ;;  %3648 = vst.msk [vmem:[#allocation4 + $0x8] sm:$0xf] %vm3645_vm3, %v9519_v26  ;;  %3649 = vst.msk [vmem:[#allocation4 + $0xc] sm:$0xf] %vm3645_vm3, %v9519_v26  ;;  %v7878_v8 = vld [vmem:[#allocation2 + $0x5c] ss:$136 sps:$4 sm:$0xff]  }
 0x23b   :  { %3533 = vmatprep.subr.bf16.mxu0 %v7860_v62  ;;  %v2488_v36 = vrot.slane %v2478_v59, 4  ;;  %v2577_v35 = vsel %vm1899_vm1, %v2564_v19, %v2565_v48  ;;  %v2585_v9 = vsel %vm1899_vm1, %v2569_v2, %v2570_v45  ;;  %v7869_v2 = vld [vmem:[#allocation2 + $0x18] ss:$136 sps:$4 sm:$0xff]   ;;  %v2496_v40 = vsel %vm1901_vm2, %v9342_v34, %v2495_v28  ;;  %3650 = vst.msk [vmem:[#allocation4 + $0x10] sm:$0xf] %vm3645_vm3, %v9519_v26 }
 0x23c   :  { %3569 = vmatpush1.bf16.msra.mxu1 %v7855_v12  ;;  %v2578_v44 = vsel %vm1901_vm2, %v9321_v24, %v2577_v35  ;;  %v2586_v27 = vsel %vm1901_vm2, %v9344_v17, %v2585_v9  ;;  %v9502_v17 = vpop.permute.xlu0 %2353  ;;  %3651 = vst.msk [vmem:[#allocation4 + $0x14] sm:$0xf] %vm3645_vm3, %v9519_v26  ;;  %3652 = vst.msk [vmem:[#allocation4 + $0x18] sm:$0xf] %vm3645_vm3, %v9519_v26 }
 0x23d   :  { %3570 = vmatprep.subr.bf16.mxu1 %v6968_v29  ;;  %v2503_v19 = vsel %vm1899_vm1, %v2487_v55, %v2488_v36  ;;  %v7064_v47 = vcombine.high %v2578_v44, %v2586_v27  ;;  %v7063_v55 = vcombine.low %v2578_v44, %v2586_v27  ;;  %3653 = vst.msk [vmem:[#allocation4 + $0x1c] sm:$0xf] %vm3645_vm3, %v9519_v26  ;;  %3654 = vst.msk [vmem:[#allocation4 + $0x20] sm:$0xf] %vm3645_vm3, %v9519_v26 }
 0x23e   :  { %3534 = vmatpush2.bf16.msra.mxu0 %v7858_v0  ;;  %v2364_v46 = vpop.permute.xlu1 %2363  ;;  %v2504_v24 = vsel %vm1901_vm2, %v9364_v61, %v2503_v19  ;;  %v2369_v61 = vrot.slane %v9502_v17, 4  ;;  %3655 = vst.msk [vmem:[#allocation4 + $0x24] sm:$0xf] %vm3645_vm3, %v9519_v26  ;;  %3656 = vst.msk [vmem:[#allocation4 + $0x28] sm:$0xf] %vm3645_vm3, %v9519_v26 }
 0x23f   :  { %3535 = vmatprep.subr.bf16.mxu0 %v7030_v38  ;;  %v7056_v32 = vcombine.high %v2496_v40, %v2504_v24  ;;  %v2374_v62 = vrot.slane %v2364_v46, 4  ;;  %v7055_v7 = vcombine.low %v2496_v40, %v2504_v24  ;;  %3657 = vst.msk [vmem:[#allocation4 + $0x2c] sm:$0xf] %vm3645_vm3, %v9519_v26  ;;  %3658 = vst.msk [vmem:[#allocation4 + $0x30] sm:$0xf] %vm3645_vm3, %v9519_v26 }
 0x240   :  { %3571 = vmatpush1.bf16.msra.mxu1 %v6967_v21  ;;  %v9511_v12 = vpop.permute.xlu0 %2271  ;;  %3659 = vst.msk [vmem:[#allocation4 + $0x34] sm:$0xf] %vm3645_vm3, %v9519_v26  ;;  %3660 = vst.msk [vmem:[#allocation4 + $0x38] sm:$0xf] %vm3645_vm3, %v9519_v26  ;;  %v2381_v29 = vsel %vm1899_vm1, %v2368_v25, %v2369_v61  ;;  %v7880_v0 = vld [vmem:[#allocation2 + $0x60] ss:$136 sps:$4 sm:$0xff]  }
 0x241   :  { %3572 = vmatprep.subr.bf16.mxu1 %v6960_v51  ;;  %v9516_v34 = vsel %vm1899_vm1, %v2373_v63, %v2374_v62  ;;  %3661 = vst.msk [vmem:[#allocation4 + $0x3c] sm:$0xf] %vm3645_vm3, %v9519_v26  ;;  %3662 = vst.msk [vmem:[#allocation4 + $0x40] sm:$0xf] %vm3645_vm3, %v9519_v26  ;;  %v7875_v63 = vld [vmem:[#allocation2 + $0x7c] ss:$136 sps:$4 sm:$0xff]   ;;  %v2382_v25 = vsel %vm1901_vm2, %v9362_v14, %v2381_v29 }
 0x242   :  { %3536 = vmatpush2.bf16.msra.mxu0 %v7029_v42  ;;  %v9507_v11 = vpop.permute.xlu1 %2281  ;;  %3663 = vst.msk [vmem:[#allocation4 + $0x44] sm:$0xf] %vm3645_vm3, %v9519_v26  ;;  %3664 = vst.msk [vmem:[#allocation4 + $0x48] sm:$0xf] %vm3645_vm3, %v9519_v26  ;;  %v2287_v49 = vrot.slane %v9511_v12, 4  ;;  %v2390_v15 = vsel %vm1901_vm2, %v9374_v37, %v9516_v34 }
 0x243   :  { %3537 = vmatprep.subr.bf16.mxu0 %v7022_v60  ;;  %3665 = vst.msk [vmem:[#allocation4 + $0x4c] sm:$0xf] %vm3645_vm3, %v9519_v26  ;;  %3666 = vst.msk [vmem:[#allocation4 + $0x50] sm:$0xf] %vm3645_vm3, %v9519_v26  ;;  %v7032_v6 = vcombine.high %v2382_v25, %v2390_v15  ;;  %v7031_v38 = vcombine.low %v2382_v25, %v2390_v15  ;;  %v7883_v21 = vld [vmem:[#allocation2 + $0x40] ss:$136 sps:$4 sm:$0xff]  }
 0x244   :  { %3573 = vmatpush1.bf16.msra.mxu1 %v6959_v3  ;;  %3667 = vst.msk [vmem:[#allocation4 + $0x54] sm:$0xf] %vm3645_vm3, %v9519_v26  ;;  %3668 = vst.msk [vmem:[#allocation4 + $0x58] sm:$0xf] %vm3645_vm3, %v9519_v26  ;;  %v2299_v53 = vsel %vm1899_vm1, %v2286_v10, %v2287_v49  ;;  %v7881_v14 = vld [vmem:[#allocation2 + $0x3c] ss:$136 sps:$4 sm:$0xff]  }
 0x245   :  { %3574 = vmatprep.subr.bf16.mxu1 %v7863_v5  ;;  %3669 = vst.msk [vmem:[#allocation4 + $0x5c] sm:$0xf] %vm3645_vm3, %v9519_v26  ;;  %3670 = vst.msk [vmem:[#allocation4 + $0x60] sm:$0xf] %vm3645_vm3, %v9519_v26  ;;  %v7886_v51 = vld [vmem:[#allocation2 + $0x20] ss:$136 sps:$4 sm:$0xff]  }
 0x246   :  { %3538 = vmatpush2.bf16.msra.mxu0 %v7021_v52  ;;  %3671 = vst.msk [vmem:[#allocation4 + $0x64] sm:$0xf] %vm3645_vm3, %v9519_v26  ;;  %3672 = vst.msk [vmem:[#allocation4 + $0x68] sm:$0xf] %vm3645_vm3, %v9519_v26  ;;  %v7884_v10 = vld [vmem:[#allocation2 + $0x1c] ss:$136 sps:$4 sm:$0xff]  }
 0x247   :  { %3539 = vmatprep.subr.bf16.mxu0 %v7866_v57  ;;  %3673 = vst.msk [vmem:[#allocation4 + $0x6c] sm:$0xf] %vm3645_vm3, %v9519_v26  ;;  %3675 = vst.msk [vmem:[#allocation4 + $0x74] sm:$0xf] %vm3645_vm3, %v9519_v26 }
 0x248   :  { %3575 = vmatpush1.bf16.msra.mxu1 %v7861_v20  ;;  %3676 = vst.msk [vmem:[#allocation4 + $0x78] sm:$0xf] %vm3645_vm3, %v9519_v26  ;;  %3677 = vst.msk [vmem:[#allocation4 + $0x7c] sm:$0xf] %vm3645_vm3, %v9519_v26 }
 0x249   :  { %3576 = vmatprep.subr.bf16.mxu1 %v7871_v1  ;;  %3678 = vst.msk [vmem:[#allocation4 + $0x80] sm:$0xf] %vm3645_vm3, %v9519_v26  ;;  %3679 = vst.msk [vmem:[#allocation4 + $0x84] sm:$0xf] %vm3645_vm3, %v9519_v26 }
 0x24a   :  { %3540 = vmatpush2.bf16.msra.mxu0 %v7864_v54  ;;  %3680 = vst.msk [vmem:[#allocation4 + $0x88] sm:$0xf] %vm3645_vm3, %v9519_v26  ;;  %3681 = vst.msk [vmem:[#allocation4 + $0x8c] sm:$0xf] %vm3645_vm3, %v9519_v26 }
 0x24b   :  { %3541 = vmatprep.subr.bf16.mxu0 %v7874_v30  ;;  %3682 = vst.msk [vmem:[#allocation4 + $0x90] sm:$0xf] %vm3645_vm3, %v9519_v26  ;;  %3683 = vst.msk [vmem:[#allocation4 + $0x94] sm:$0xf] %vm3645_vm3, %v9519_v26 }
 0x24c   :  { %3577 = vmatpush1.bf16.msra.mxu1 %v7869_v2  ;;  %3684 = vst.msk [vmem:[#allocation4 + $0x98] sm:$0xf] %vm3645_vm3, %v9519_v26  ;;  %3685 = vst.msk [vmem:[#allocation4 + $0x9c] sm:$0xf] %vm3645_vm3, %v9519_v26 }
 0x24d   :  { %3578 = vmatprep.subr.bf16.mxu1 %v7064_v47  ;;  %3686 = vst.msk [vmem:[#allocation4 + $0xa0] sm:$0xf] %vm3645_vm3, %v9519_v26  ;;  %3687 = vst.msk [vmem:[#allocation4 + $0xa4] sm:$0xf] %vm3645_vm3, %v9519_v26 }
 0x24e   :  { %3542 = vmatpush2.bf16.msra.mxu0 %v7872_v4  ;;  %3688 = vst.msk [vmem:[#allocation4 + $0xa8] sm:$0xf] %vm3645_vm3, %v9519_v26  ;;  %3689 = vst.msk [vmem:[#allocation4 + $0xac] sm:$0xf] %vm3645_vm3, %v9519_v26 }
 0x24f   :  { %3690 = vst.msk [vmem:[#allocation4 + $0xb0] sm:$0xf] %vm3645_vm3, %v9519_v26  ;;  %3691 = vst.msk [vmem:[#allocation4 + $0xb4] sm:$0xf] %vm3645_vm3, %v9519_v26 }
 0x250   :  { %3579 = vmatpush2.bf16.msra.mxu1 %v7063_v55  ;;  %3692 = vst.msk [vmem:[#allocation4 + $0xb8] sm:$0xf] %vm3645_vm3, %v9519_v26  ;;  %3693 = vst.msk [vmem:[#allocation4 + $0xbc] sm:$0xf] %vm3645_vm3, %v9519_v26 }
 0x251   :  { %3544 = vmatmul.mubr.bf16.vlgmr.msra.gmra.mxu0 %v9216_v43  ;;  %3580 = vmatprep.subr.bf16.mxu1 %v7056_v32  ;;  %v2292_v43 = vrot.slane %v9507_v11, 4  ;;  %3694 = vst.msk [vmem:[#allocation4 + $0xc0] sm:$0xf] %vm3645_vm3, %v9519_v26  ;;  %3695 = vst.msk [vmem:[#allocation4 + $0xc4] sm:$0xf] %vm3645_vm3, %v9519_v26 }
 0x252   :  { %3553 = vmatprep.mubr.bf16.mxu0 %v9222_v23  ;;  %3696 = vst.msk [vmem:[#allocation4 + $0xc8] sm:$0xf] %vm3645_vm3, %v9519_v26  ;;  %3697 = vst.msk [vmem:[#allocation4 + $0xcc] sm:$0xf] %vm3645_vm3, %v9519_v26 }
 0x253   :  { %3698 = vst.msk [vmem:[#allocation4 + $0xd0] sm:$0xf] %vm3645_vm3, %v9519_v26  ;;  %3699 = vst.msk [vmem:[#allocation4 + $0xd4] sm:$0xf] %vm3645_vm3, %v9519_v26  ;;  %v2307_v33 = vsel %vm1899_vm1, %v2291_v39, %v2292_v43  ;;  %v2300_v39 = vsel %vm1901_vm2, %v9372_v18, %v2299_v53  ;;  %v9942_v18 = vpop.permute.xlu1 %2739 }
 0x254   :  { %3581 = vmatpush2.bf16.msra.mxu1 %v7055_v7  ;;  %3700 = vst.msk [vmem:[#allocation4 + $0xd8] sm:$0xf] %vm3645_vm3, %v9519_v26  ;;  %3701 = vst.msk [vmem:[#allocation4 + $0xdc] sm:$0xf] %vm3645_vm3, %v9519_v26  ;;  %v2308_v37 = vsel %vm1901_vm2, %v9379_v41, %v2307_v33  ;;  %v8139_v41 = vld [vmem:[%s11011_s2] ss:$8 sps:$4 sm:$0xff]  }
 0x255   :  { %3582 = vmatprep.subr.bf16.mxu1 %v7877_v50  ;;  %3702 = vst.msk [vmem:[#allocation4 + $0xe0] sm:$0xf] %vm3645_vm3, %v9519_v26  ;;  %3703 = vst.msk [vmem:[#allocation4 + $0xe4] sm:$0xf] %vm3645_vm3, %v9519_v26  ;;  %v7024_v22 = vcombine.high %v2300_v39, %v2308_v37  ;;  %v7023_v16 = vcombine.low %v2300_v39, %v2308_v37  ;;  %s8156_s2 = smov 80  }
 0x256   :  { %3704 = vst.msk [vmem:[#allocation4 + $0xe8] sm:$0xf] %vm3645_vm3, %v9519_v26  ;;  %3705 = vst.msk [vmem:[#allocation4 + $0xec] sm:$0xf] %vm3645_vm3, %v9519_v26 }
 0x257   :  { %3706 = vst.msk [vmem:[#allocation4 + $0xf0] sm:$0xf] %vm3645_vm3, %v9519_v26  ;;  %3707 = vst.msk [vmem:[#allocation4 + $0xf4] sm:$0xf] %vm3645_vm3, %v9519_v26  ;;  %v9945_v48 = vpop.permute.xlu1 %2744 }
 0x258   :  { %3708 = vst.msk [vmem:[#allocation4 + $0xf8] sm:$0xf] %vm3645_vm3, %v9519_v26  ;;  %3709 = vst.msk [vmem:[#allocation4 + $0xfc] sm:$0xf] %vm3645_vm3, %v9519_v26  ;;  %3583 = vmatpush2.bf16.msra.mxu1 %v7875_v63 }
 0x259   :  { %3710 = vst.msk [vmem:[#allocation4 + $0x100] sm:$0xf] %vm3645_vm3, %v9519_v26  ;;  %3711 = vst.msk [vmem:[#allocation4 + $0x104] sm:$0xf] %vm3645_vm3, %v9519_v26  ;;  %3554 = vmatmul.mubr.bf16.gmra.mxu0 %v9278_v56  ;;  %3584 = vmatprep.subr.bf16.mxu1 %v7880_v0 }
 0x25a   :  { %3712 = vst.msk [vmem:[#allocation4 + $0x108] sm:$0xf] %vm3645_vm3, %v9519_v26  ;;  %3713 = vst.msk [vmem:[#allocation4 + $0x10c] sm:$0xf] %vm3645_vm3, %v9519_v26 }
 0x25b   :  { %3714 = vst.msk [vmem:[#allocation4 + $0x110] sm:$0xf] %vm3645_vm3, %v9519_v26  ;;  %3715 = vst.msk [vmem:[#allocation4 + $0x114] sm:$0xf] %vm3645_vm3, %v9519_v26 }
 0x25c   :  { %3716 = vst.msk [vmem:[#allocation4 + $0x118] sm:$0xf] %vm3645_vm3, %v9519_v26  ;;  %3717 = vst.msk [vmem:[#allocation4 + $0x11c] sm:$0xf] %vm3645_vm3, %v9519_v26  ;;  %3585 = vmatpush2.bf16.msra.mxu1 %v7878_v8 }
 0x25d   :  { %3718 = vst.msk [vmem:[#allocation4 + $0x120] sm:$0xf] %vm3645_vm3, %v9519_v26  ;;  %3719 = vst.msk [vmem:[#allocation4 + $0x124] sm:$0xf] %vm3645_vm3, %v9519_v26  ;;  %3586 = vmatprep.subr.bf16.mxu1 %v7032_v6 }
 0x25e   :  { %3720 = vst.msk [vmem:[#allocation4 + $0x128] sm:$0xf] %vm3645_vm3, %v9519_v26  ;;  %3721 = vst.msk [vmem:[#allocation4 + $0x12c] sm:$0xf] %vm3645_vm3, %v9519_v26 }
 0x25f   :  { %3722 = vst.msk [vmem:[#allocation4 + $0x130] sm:$0xf] %vm3645_vm3, %v9519_v26  ;;  %3723 = vst.msk [vmem:[#allocation4 + $0x134] sm:$0xf] %vm3645_vm3, %v9519_v26 }
 0x260   :  { %3724 = vst.msk [vmem:[#allocation4 + $0x138] sm:$0xf] %vm3645_vm3, %v9519_v26  ;;  %3725 = vst.msk [vmem:[#allocation4 + $0x13c] sm:$0xf] %vm3645_vm3, %v9519_v26  ;;  %3587 = vmatpush2.bf16.msra.mxu1 %v7031_v38 }
 0x261   :  { %3726 = vst.msk [vmem:[#allocation4 + $0x140] sm:$0xf] %vm3645_vm3, %v9519_v26  ;;  %3727 = vst.msk [vmem:[#allocation4 + $0x144] sm:$0xf] %vm3645_vm3, %v9519_v26  ;;  %3588 = vmatprep.subr.bf16.mxu1 %v7024_v22 }
 0x262   :  { %3728 = vst.msk [vmem:[#allocation4 + $0x148] sm:$0xf] %vm3645_vm3, %v9519_v26  ;;  %3729 = vst.msk [vmem:[#allocation4 + $0x14c] sm:$0xf] %vm3645_vm3, %v9519_v26 }
 0x263   :  { %3730 = vst.msk [vmem:[#allocation4 + $0x150] sm:$0xf] %vm3645_vm3, %v9519_v26  ;;  %3731 = vst.msk [vmem:[#allocation4 + $0x154] sm:$0xf] %vm3645_vm3, %v9519_v26 }
 0x264   :  { %3732 = vst.msk [vmem:[#allocation4 + $0x158] sm:$0xf] %vm3645_vm3, %v9519_v26  ;;  %3733 = vst.msk [vmem:[#allocation4 + $0x15c] sm:$0xf] %vm3645_vm3, %v9519_v26  ;;  %3589 = vmatpush2.bf16.msra.mxu1 %v7023_v16 }
 0x265   :  { %3734 = vst.msk [vmem:[#allocation4 + $0x160] sm:$0xf] %vm3645_vm3, %v9519_v26  ;;  %3735 = vst.msk [vmem:[#allocation4 + $0x164] sm:$0xf] %vm3645_vm3, %v9519_v26  ;;  %3590 = vmatprep.subr.bf16.mxu1 %v7883_v21 }
 0x266   :  { %3736 = vst.msk [vmem:[#allocation4 + $0x168] sm:$0xf] %vm3645_vm3, %v9519_v26  ;;  %3737 = vst.msk [vmem:[#allocation4 + $0x16c] sm:$0xf] %vm3645_vm3, %v9519_v26 }
 0x267   :  { %3738 = vst.msk [vmem:[#allocation4 + $0x170] sm:$0xf] %vm3645_vm3, %v9519_v26  ;;  %3739 = vst.msk [vmem:[#allocation4 + $0x174] sm:$0xf] %vm3645_vm3, %v9519_v26 }
 0x268   :  { %3740 = vst.msk [vmem:[#allocation4 + $0x178] sm:$0xf] %vm3645_vm3, %v9519_v26  ;;  %3741 = vst.msk [vmem:[#allocation4 + $0x17c] sm:$0xf] %vm3645_vm3, %v9519_v26  ;;  %3591 = vmatpush2.bf16.msra.mxu1 %v7881_v14 }
 0x269   :  { %3742 = vst.msk [vmem:[#allocation4 + $0x180] sm:$0xf] %vm3645_vm3, %v9519_v26  ;;  %3743 = vst.msk [vmem:[#allocation4 + $0x184] sm:$0xf] %vm3645_vm3, %v9519_v26  ;;  %3592 = vmatprep.subr.bf16.mxu1 %v7886_v51 }
 0x26a   :  { %3744 = vst.msk [vmem:[#allocation4 + $0x188] sm:$0xf] %vm3645_vm3, %v9519_v26  ;;  %3745 = vst.msk [vmem:[#allocation4 + $0x18c] sm:$0xf] %vm3645_vm3, %v9519_v26 }
 0x26b   :  { %3746 = vst.msk [vmem:[#allocation4 + $0x190] sm:$0xf] %vm3645_vm3, %v9519_v26  ;;  %3747 = vst.msk [vmem:[#allocation4 + $0x194] sm:$0xf] %vm3645_vm3, %v9519_v26 }
 0x26c   :  { %3748 = vst.msk [vmem:[#allocation4 + $0x198] sm:$0xf] %vm3645_vm3, %v9519_v26  ;;  %3749 = vst.msk [vmem:[#allocation4 + $0x19c] sm:$0xf] %vm3645_vm3, %v9519_v26  ;;  %3593 = vmatpush2.bf16.msra.mxu1 %v7884_v10 }
 0x26d   :  { %3750 = vst.msk [vmem:[#allocation4 + $0x1a0] sm:$0xf] %vm3645_vm3, %v9519_v26  ;;  %3751 = vst.msk [vmem:[#allocation4 + $0x1a4] sm:$0xf] %vm3645_vm3, %v9519_v26 }
 0x26e   :  { %3752 = vst.msk [vmem:[#allocation4 + $0x1a8] sm:$0xf] %vm3645_vm3, %v9519_v26  ;;  %3753 = vst.msk [vmem:[#allocation4 + $0x1ac] sm:$0xf] %vm3645_vm3, %v9519_v26 }
 0x26f   :  { %3754 = vst.msk [vmem:[#allocation4 + $0x1b0] sm:$0xf] %vm3645_vm3, %v9519_v26  ;;  %3755 = vst.msk [vmem:[#allocation4 + $0x1b4] sm:$0xf] %vm3645_vm3, %v9519_v26  ;;  %3595 = vmatmul.mubr.bf16.vlgmr.msra.gmra.mxu1 %v8139_v41 }
 0x270   :  { %3756 = vst.msk [vmem:[#allocation4 + $0x1b8] sm:$0xf] %vm3645_vm3, %v9519_v26  ;;  %3757 = vst.msk [vmem:[#allocation4 + $0x1bc] sm:$0xf] %vm3645_vm3, %v9519_v26  ;;  %3602 = vmatprep.mubr.bf16.mxu1 %v9222_v23  ;;  %v9949_v23 = vpop.permute.xlu0 %2749 }
 0x271   :  { %3758 = vst.msk [vmem:[#allocation4 + $0x1c0] sm:$0xf] %vm3645_vm3, %v9519_v26  ;;  %3759 = vst.msk [vmem:[#allocation4 + $0x1c4] sm:$0xf] %vm3645_vm3, %v9519_v26 }
 0x272   :  { %3760 = vst.msk [vmem:[#allocation4 + $0x1c8] sm:$0xf] %vm3645_vm3, %v9519_v26  ;;  %3761 = vst.msk [vmem:[#allocation4 + $0x1cc] sm:$0xf] %vm3645_vm3, %v9519_v26 }
 0x273   :  { %3762 = vst.msk [vmem:[#allocation4 + $0x1d0] sm:$0xf] %vm3645_vm3, %v9519_v26  ;;  %3763 = vst.msk [vmem:[#allocation4 + $0x1d4] sm:$0xf] %vm3645_vm3, %v9519_v26 }
 0x274   :  { %3764 = vst.msk [vmem:[#allocation4 + $0x1d8] sm:$0xf] %vm3645_vm3, %v9519_v26  ;;  %3765 = vst.msk [vmem:[#allocation4 + $0x1dc] sm:$0xf] %vm3645_vm3, %v9519_v26 }
 0x275   :  { %3766 = vst.msk [vmem:[#allocation4 + $0x1e0] sm:$0xf] %vm3645_vm3, %v9519_v26  ;;  %3767 = vst.msk [vmem:[#allocation4 + $0x1e4] sm:$0xf] %vm3645_vm3, %v9519_v26 }
 0x276   :  { %3768 = vst.msk [vmem:[#allocation4 + $0x1e8] sm:$0xf] %vm3645_vm3, %v9519_v26  ;;  %3769 = vst.msk [vmem:[#allocation4 + $0x1ec] sm:$0xf] %vm3645_vm3, %v9519_v26 }
 0x277   :  { %3770 = vst.msk [vmem:[#allocation4 + $0x1f0] sm:$0xf] %vm3645_vm3, %v9519_v26  ;;  %3771 = vst.msk [vmem:[#allocation4 + $0x1f4] sm:$0xf] %vm3645_vm3, %v9519_v26  ;;  %3603 = vmatmul.mubr.bf16.gmra.mxu1 %v9278_v56 }
 0x278   :  { %3772 = vst.msk [vmem:[#allocation4 + $0x1f8] sm:$0xf] %vm3645_vm3, %v9519_v26  ;;  %3773 = vst.msk [vmem:[#allocation4 + $0x1fc] sm:$0xf] %vm3645_vm3, %v9519_v26 }
 0x279   :  { %3774 = vst.msk [vmem:[#allocation4 + $0x200] sm:$0xf] %vm3645_vm3, %v9519_v26  ;;  %3775 = vst.msk [vmem:[#allocation4 + $0x204] sm:$0xf] %vm3645_vm3, %v9519_v26 }
 0x27a   :  { %3776 = vst.msk [vmem:[#allocation4 + $0x208] sm:$0xf] %vm3645_vm3, %v9519_v26  ;;  %3777 = vst.msk [vmem:[#allocation4 + $0x20c] sm:$0xf] %vm3645_vm3, %v9519_v26 }
 0x27b   :  { %3778 = vst.msk [vmem:[#allocation4 + $0x210] sm:$0xf] %vm3645_vm3, %v9519_v26  ;;  %3779 = vst.msk [vmem:[#allocation4 + $0x214] sm:$0xf] %vm3645_vm3, %v9519_v26 }
 0x27c   :  { %3780 = vst.msk [vmem:[#allocation4 + $0x218] sm:$0xf] %vm3645_vm3, %v9519_v26  ;;  %3781 = vst.msk [vmem:[#allocation4 + $0x21c] sm:$0xf] %vm3645_vm3, %v9519_v26 }
 0x27d   :  { %3782 = vst.msk [vmem:[#allocation4 + $0x220] sm:$0xf] %vm3645_vm3, %v9519_v26  ;;  %3783 = vst.msk [vmem:[#allocation4 + $0x224] sm:$0xf] %vm3645_vm3, %v9519_v26 }
 0x27e   :  { %3784 = vst.msk [vmem:[#allocation4 + $0x228] sm:$0xf] %vm3645_vm3, %v9519_v26  ;;  %3785 = vst.msk [vmem:[#allocation4 + $0x22c] sm:$0xf] %vm3645_vm3, %v9519_v26 }
 0x27f   :  { %3786 = vst.msk [vmem:[#allocation4 + $0x230] sm:$0xf] %vm3645_vm3, %v9519_v26  ;;  %3787 = vst.msk [vmem:[#allocation4 + $0x234] sm:$0xf] %vm3645_vm3, %v9519_v26 }
 0x280   :  { %3788 = vst.msk [vmem:[#allocation4 + $0x238] sm:$0xf] %vm3645_vm3, %v9519_v26  ;;  %3789 = vst.msk [vmem:[#allocation4 + $0x23c] sm:$0xf] %vm3645_vm3, %v9519_v26 }
 0x281   :  { %3790 = vst.msk [vmem:[#allocation4 + $0x240] sm:$0xf] %vm3645_vm3, %v9519_v26  ;;  %3791 = vst.msk [vmem:[#allocation4 + $0x244] sm:$0xf] %vm3645_vm3, %v9519_v26 }
 0x282   :  { %3792 = vst.msk [vmem:[#allocation4 + $0x248] sm:$0xf] %vm3645_vm3, %v9519_v26  ;;  %3793 = vst.msk [vmem:[#allocation4 + $0x24c] sm:$0xf] %vm3645_vm3, %v9519_v26 }
 0x283   :  { %3794 = vst.msk [vmem:[#allocation4 + $0x250] sm:$0xf] %vm3645_vm3, %v9519_v26  ;;  %3795 = vst.msk [vmem:[#allocation4 + $0x254] sm:$0xf] %vm3645_vm3, %v9519_v26 }
 0x284   :  { %3796 = vst.msk [vmem:[#allocation4 + $0x258] sm:$0xf] %vm3645_vm3, %v9519_v26  ;;  %3797 = vst.msk [vmem:[#allocation4 + $0x25c] sm:$0xf] %vm3645_vm3, %v9519_v26 }
 0x285   :  { %3798 = vst.msk [vmem:[#allocation4 + $0x260] sm:$0xf] %vm3645_vm3, %v9519_v26  ;;  %3799 = vst.msk [vmem:[#allocation4 + $0x264] sm:$0xf] %vm3645_vm3, %v9519_v26 }
 0x286   :  { %3800 = vst.msk [vmem:[#allocation4 + $0x268] sm:$0xf] %vm3645_vm3, %v9519_v26  ;;  %3801 = vst.msk [vmem:[#allocation4 + $0x26c] sm:$0xf] %vm3645_vm3, %v9519_v26 }
 0x287   :  { %3802 = vst.msk [vmem:[#allocation4 + $0x270] sm:$0xf] %vm3645_vm3, %v9519_v26  ;;  %3803 = vst.msk [vmem:[#allocation4 + $0x274] sm:$0xf] %vm3645_vm3, %v9519_v26 }
 0x288   :  { %3804 = vst.msk [vmem:[#allocation4 + $0x278] sm:$0xf] %vm3645_vm3, %v9519_v26  ;;  %3805 = vst.msk [vmem:[#allocation4 + $0x27c] sm:$0xf] %vm3645_vm3, %v9519_v26 }
 0x289   :  { %3806 = vst.msk [vmem:[#allocation4 + $0x280] sm:$0xf] %vm3645_vm3, %v9519_v26  ;;  %3807 = vst.msk [vmem:[#allocation4 + $0x284] sm:$0xf] %vm3645_vm3, %v9519_v26 }
 0x28a   :  { %3808 = vst.msk [vmem:[#allocation4 + $0x288] sm:$0xf] %vm3645_vm3, %v9519_v26  ;;  %3809 = vst.msk [vmem:[#allocation4 + $0x28c] sm:$0xf] %vm3645_vm3, %v9519_v26 }
 0x28b   :  { %3810 = vst.msk [vmem:[#allocation4 + $0x290] sm:$0xf] %vm3645_vm3, %v9519_v26  ;;  %3811 = vst.msk [vmem:[#allocation4 + $0x294] sm:$0xf] %vm3645_vm3, %v9519_v26 }
 0x28c   :  { %3812 = vst.msk [vmem:[#allocation4 + $0x298] sm:$0xf] %vm3645_vm3, %v9519_v26  ;;  %3813 = vst.msk [vmem:[#allocation4 + $0x29c] sm:$0xf] %vm3645_vm3, %v9519_v26 }
 0x28d   :  { %3814 = vst.msk [vmem:[#allocation4 + $0x2a0] sm:$0xf] %vm3645_vm3, %v9519_v26  ;;  %3815 = vst.msk [vmem:[#allocation4 + $0x2a4] sm:$0xf] %vm3645_vm3, %v9519_v26 }
 0x28e   :  { %3816 = vst.msk [vmem:[#allocation4 + $0x2a8] sm:$0xf] %vm3645_vm3, %v9519_v26  ;;  %3817 = vst.msk [vmem:[#allocation4 + $0x2ac] sm:$0xf] %vm3645_vm3, %v9519_v26 }
 0x28f   :  { %3818 = vst.msk [vmem:[#allocation4 + $0x2b0] sm:$0xf] %vm3645_vm3, %v9519_v26  ;;  %3819 = vst.msk [vmem:[#allocation4 + $0x2b4] sm:$0xf] %vm3645_vm3, %v9519_v26 }
 0x290   :  { %3820 = vst.msk [vmem:[#allocation4 + $0x2b8] sm:$0xf] %vm3645_vm3, %v9519_v26  ;;  %3821 = vst.msk [vmem:[#allocation4 + $0x2bc] sm:$0xf] %vm3645_vm3, %v9519_v26 }
 0x291   :  { %3822 = vst.msk [vmem:[#allocation4 + $0x2c0] sm:$0xf] %vm3645_vm3, %v9519_v26  ;;  %3823 = vst.msk [vmem:[#allocation4 + $0x2c4] sm:$0xf] %vm3645_vm3, %v9519_v26 }
 0x292   :  { %3824 = vst.msk [vmem:[#allocation4 + $0x2c8] sm:$0xf] %vm3645_vm3, %v9519_v26  ;;  %3825 = vst.msk [vmem:[#allocation4 + $0x2cc] sm:$0xf] %vm3645_vm3, %v9519_v26 }
 0x293   :  { %3826 = vst.msk [vmem:[#allocation4 + $0x2d0] sm:$0xf] %vm3645_vm3, %v9519_v26  ;;  %3827 = vst.msk [vmem:[#allocation4 + $0x2d4] sm:$0xf] %vm3645_vm3, %v9519_v26 }
 0x294   :  { %3828 = vst.msk [vmem:[#allocation4 + $0x2d8] sm:$0xf] %vm3645_vm3, %v9519_v26  ;;  %3829 = vst.msk [vmem:[#allocation4 + $0x2dc] sm:$0xf] %vm3645_vm3, %v9519_v26 }
 0x295   :  { %3830 = vst.msk [vmem:[#allocation4 + $0x2e0] sm:$0xf] %vm3645_vm3, %v9519_v26  ;;  %3831 = vst.msk [vmem:[#allocation4 + $0x2e4] sm:$0xf] %vm3645_vm3, %v9519_v26 }
 0x296   :  { %3832 = vst.msk [vmem:[#allocation4 + $0x2e8] sm:$0xf] %vm3645_vm3, %v9519_v26  ;;  %3833 = vst.msk [vmem:[#allocation4 + $0x2ec] sm:$0xf] %vm3645_vm3, %v9519_v26 }
 0x297   :  { %3834 = vst.msk [vmem:[#allocation4 + $0x2f0] sm:$0xf] %vm3645_vm3, %v9519_v26  ;;  %3835 = vst.msk [vmem:[#allocation4 + $0x2f4] sm:$0xf] %vm3645_vm3, %v9519_v26 }
 0x298   :  { %3836 = vst.msk [vmem:[#allocation4 + $0x2f8] sm:$0xf] %vm3645_vm3, %v9519_v26  ;;  %3837 = vst.msk [vmem:[#allocation4 + $0x2fc] sm:$0xf] %vm3645_vm3, %v9519_v26 }
 0x299   :  { %3838 = vst.msk [vmem:[#allocation4 + $0x300] sm:$0xf] %vm3645_vm3, %v9519_v26  ;;  %3839 = vst.msk [vmem:[#allocation4 + $0x304] sm:$0xf] %vm3645_vm3, %v9519_v26 }
 0x29a   :  { %3840 = vst.msk [vmem:[#allocation4 + $0x308] sm:$0xf] %vm3645_vm3, %v9519_v26  ;;  %3841 = vst.msk [vmem:[#allocation4 + $0x30c] sm:$0xf] %vm3645_vm3, %v9519_v26 }
 0x2c9   :  { %v3443_v42 = vpop.f32.mrf.mxu0 }
 0x2ca   :  { %v3444_v58 = vadd.f32 %v3443_v42, %v9942_v18 }
 0x2cb   :  { %v3445_v45 = vpop.f32.mrf.mxu0 }
 0x2cc   :  { %v3610_v60 = vmax.f32 %v3444_v58, 0.0  ;;  %v3446_v59 = vadd.f32 %v3445_v45, %v9942_v18 }
 0x2cd   :  { %v3447_v3 = vpop.f32.mrf.mxu0 }
 0x2ce   :  { %v7329_v5 = vpack.c.bf16 %v3610_v60, %v3610_v60  ;;  %v3611_v13 = vmax.f32 %v3446_v59, 0.0  ;;  %v3448_v52 = vadd.f32 %v3447_v3, %v9945_v48 }
 0x2cf   :  { %v3449_v36 = vpop.f32.mrf.mxu0 }
 0x2d0   :  { %3881 = vrot.lane.b32.xlu1 %v7329_v5, %s8156_s2  ;;  %v9952_v56 = vpack.c.bf16 %v3611_v13, %v3611_v13  ;;  %3853 = vst.msk [vmem:[#allocation4] sm:$0xf] %vm3645_vm3, %v7329_v5  ;;  %v3450_v57 = vadd.f32 %v3449_v36, %v9945_v48  ;;  %v3617_v35 = vmax.f32 %v3448_v52, 0.0  ;;  %3893 = vrot.lane.b32.xlu0 %v7329_v5, %s8157_s15 }
 0x2d1   :  { %v3453_v9 = vpop.f32.mrf.mxu0 }
 0x2d2   :  { %3940 = vst.msk [vmem:[#allocation4 + $0x70] sm:$0xf] %vm3645_vm3, %v9952_v56  ;;  %v3618_v20 = vmax.f32 %v3450_v57, 0.0  ;;  %v9959_v31 = vpack.c.bf16 %v3617_v35, %v3617_v35  ;;  %v3454_v1 = vadd.f32 %v3453_v9, %v9949_v23 }
 0x2d3   :  { %v3455_v54 = vpop.f32.mrf.mxu0 }
 0x2d4   :  { %3917 = vrot.lane.b32.xlu1 %v7329_v5, %s8158_s16  ;;  %v9963_v44 = vpack.c.bf16 %v3618_v20, %v3618_v20  ;;  %3854 = vst.msk [vmem:[#allocation4 + $0x4] sm:$0xf] %vm3645_vm3, %v9959_v31  ;;  %v3456_v27 = vadd.f32 %v3455_v54, %v9949_v23  ;;  %v3624_v19 = vmax.f32 %v3454_v1, 0.0 }
 0x2d5   :  { %v3457_v30 = vpop.f32.mrf.mxu0 }
 0x2d6   :  { %3941 = vst.msk [vmem:[#allocation4 + $0x74] sm:$0xf] %vm3645_vm3, %v9963_v44  ;;  %v3625_v2 = vmax.f32 %v3456_v27, 0.0  ;;  %v9970_v28 = vpack.c.bf16 %v3624_v19, %v3624_v19 }
 0x2d7   :  { %v3458_v47 = vpop.f32.mrf.mxu0 }
 0x2d8   :  { %3869 = vrot.lane.b32.xlu1 %v7329_v5, %s8159_s17  ;;  %v9973_v46 = vpack.c.bf16 %v3625_v2, %v3625_v2  ;;  %3856 = vst.msk [vmem:[#allocation4 + $0x8] sm:$0x3] %vm3855_vm4, %v9970_v28 }
 0x2da   :  { %3942 = vst.msk [vmem:[#allocation4 + $0x78] sm:$0x3] %vm3855_vm4, %v9973_v46 }
 0x2dc   :  { %3905 = vrot.lane.b32.xlu1 %v7329_v5, %s8160_s18 }
 0x2e0   :  { %3857 = vrot.lane.b32.xlu1 %v7329_v5, %s8155_s0 }
 0x2e1   :  { %v3494_v4 = vpop.f32.mrf.mxu1  ;;  %v7887_v24 = vld [vmem:[#allocation4 + $0x78] sm:$0xff]  }
 0x2e2   :  { %v3495_v17 = vadd.f32 %v3494_v4, %v9942_v18  ;;  %7350 = vmatprep.subr.bf16.mxu0 %v7887_v24 }
 0x2e3   :  { %v3496_v55 = vpop.f32.mrf.mxu1 }
 0x2e4   :  { %v3612_v40 = vmax.f32 %v3495_v17, 0.0  ;;  %v3497_v32 = vadd.f32 %v3496_v55, %v9942_v18 }
 0x2e5   :  { %v3498_v62 = vpop.f32.mrf.mxu1 }
 0x2e6   :  { %v9983_v11 = vpack.c.bf16 %v3612_v40, %v3612_v40  ;;  %v3613_v7 = vmax.f32 %v3497_v32, 0.0  ;;  %v3499_v61 = vadd.f32 %v3498_v62, %v9945_v48 }
 0x2e7   :  { %v3500_v50 = vpop.f32.mrf.mxu1 }
 0x2e8   :  { %4026 = vst.msk [vmem:[#allocation4 + $0xe0] sm:$0xf] %vm3645_vm3, %v9983_v11  ;;  %v9988_v12 = vpack.c.bf16 %v3613_v7, %v3613_v7  ;;  %v3619_v34 = vmax.f32 %v3499_v61, 0.0  ;;  %v3501_v43 = vadd.f32 %v3500_v50, %v9945_v48  ;;  %4029 = vrot.lane.b32.xlu0 %v9983_v11, %s8155_s0  ;;  %4077 = vrot.lane.b32.xlu1 %v9983_v11, %s8160_s18  ;;  %v7909_v7 = vld [vmem:[%s11013_s4 + $0x4] ss:$52 sps:$4 sm:$0xff]  }
 0x2e9   :  { %v3504_v26 = vpop.f32.mrf.mxu1  ;;  %6014 = vmatprep.mubr.bf16.mxu0 %v7909_v7 }
 0x2ea   :  { %4112 = vst.msk [vmem:[#allocation4 + $0x150] sm:$0xf] %vm3645_vm3, %v9988_v12  ;;  %v9997_v63 = vpack.c.bf16 %v3619_v34, %v3619_v34  ;;  %v3620_v29 = vmax.f32 %v3501_v43, 0.0  ;;  %v3505_v49 = vadd.f32 %v3504_v26, %v9949_v23 }
 0x2eb   :  { %v3506_v0 = vpop.f32.mrf.mxu1 }
 0x2ec   :  { %4027 = vst.msk [vmem:[#allocation4 + $0xe4] sm:$0xf] %vm3645_vm3, %v9997_v63  ;;  %v10002_v15 = vpack.c.bf16 %v3620_v29, %v3620_v29  ;;  %3979 = vrot.lane.b32.xlu0 %v9952_v56, %s8157_s15  ;;  %3967 = vrot.lane.b32.xlu1 %v9952_v56, %s8156_s2  ;;  %v3626_v33 = vmax.f32 %v3505_v49, 0.0  ;;  %v3507_v8 = vadd.f32 %v3506_v0, %v9949_v23  ;;  %v7941_v29 = vld [vmem:[%s11013_s4 + $0xc] ss:$52 sps:$4 sm:$0xff]  }
 0x2ed   :  { %v3508_v25 = vpop.f32.mrf.mxu1  ;;  %6111 = vmatprep.mubr.bf16.mxu1 %v7941_v29 }
 0x2ee   :  { %4113 = vst.msk [vmem:[#allocation4 + $0x154] sm:$0xf] %vm3645_vm3, %v10002_v15  ;;  %v10011_v53 = vpack.c.bf16 %v3626_v33, %v3626_v33  ;;  %v3627_v6 = vmax.f32 %v3507_v8, 0.0 }
 0x2ef   :  { %v3509_v37 = vpop.f32.mrf.mxu1 }
 0x2f0   :  { %4003 = vrot.lane.b32.xlu1 %v9952_v56, %s8158_s16  ;;  %3883 = vrot.lane.b32.xlu0 %v9959_v31, %s8156_s2  ;;  %4028 = vst.msk [vmem:[#allocation4 + $0xe8] sm:$0x3] %vm3855_vm4, %v10011_v53  ;;  %v10019_v38 = vpack.c.bf16 %v3627_v6, %v3627_v6 }
 0x2f2   :  { %4114 = vst.msk [vmem:[#allocation4 + $0x158] sm:$0x3] %vm3855_vm4, %v10019_v38 }
 0x2f4   :  { %3955 = vrot.lane.b32.xlu1 %v9952_v56, %s8159_s17  ;;  %3919 = vrot.lane.b32.xlu0 %v9959_v31, %s8158_s16 }
 0x2f8   :  { %3991 = vrot.lane.b32.xlu1 %v9952_v56, %s8160_s18  ;;  %3871 = vrot.lane.b32.xlu0 %v9959_v31, %s8159_s17 }
 0x2fc   :  { %3943 = vrot.lane.b32.xlu1 %v9952_v56, %s8155_s0  ;;  %3907 = vrot.lane.b32.xlu0 %v9959_v31, %s8160_s18 }
 0x300   :  { %4127 = vrot.lane.b32.xlu1 %v9988_v12, %s8159_s17  ;;  %3859 = vrot.lane.b32.xlu0 %v9959_v31, %s8155_s0 }
 0x304   :  { %4115 = vrot.lane.b32.xlu1 %v9988_v12, %s8155_s0  ;;  %4079 = vrot.lane.b32.xlu0 %v9997_v63, %s8160_s18 }
 0x308   :  { %3895 = vrot.lane.b32.xlu1 %v9959_v31, %s8157_s15  ;;  %3969 = vrot.lane.b32.xlu0 %v9963_v44, %s8156_s2 }
 0x30c   :  { %4031 = vrot.lane.b32.xlu1 %v9997_v63, %s8155_s0  ;;  %4005 = vrot.lane.b32.xlu0 %v9963_v44, %s8158_s16 }
 0x310   :  { %3981 = vrot.lane.b32.xlu1 %v9963_v44, %s8157_s15  ;;  %3957 = vrot.lane.b32.xlu0 %v9963_v44, %s8159_s17 }
 0x311   :  { %v3545_v39 = vpop.f32.mrf.mxu0 }
 0x312   :  { %v3546_v22 = vadd.f32 %v3545_v39, %v9942_v18 }
 0x313   :  { %v3547_v21 = vpop.f32.mrf.mxu0 }
 0x314   :  { %v3614_v16 = vmax.f32 %v3546_v22, 0.0  ;;  %v3548_v14 = vadd.f32 %v3547_v21, %v9942_v18  ;;  %3921 = vrot.lane.b32.xlu1 %v9970_v28, %s8158_s16  ;;  %3993 = vrot.lane.b32.xlu0 %v9963_v44, %s8160_s18 }
 0x315   :  { %v3549_v51 = vpop.f32.mrf.mxu0 }
 0x316   :  { %v10061_v10 = vpack.c.bf16 %v3614_v16, %v3614_v16  ;;  %v3615_v41 = vmax.f32 %v3548_v14, 0.0  ;;  %v3550_v42 = vadd.f32 %v3549_v51, %v9945_v48 }
 0x317   :  { %v3551_v58 = vpop.f32.mrf.mxu0 }
 0x318   :  { %4198 = vst.msk [vmem:[#allocation4 + $0x1c0] sm:$0xf] %vm3645_vm3, %v10061_v10  ;;  %v10066_v45 = vpack.c.bf16 %v3615_v41, %v3615_v41  ;;  %v3621_v60 = vmax.f32 %v3550_v42, 0.0  ;;  %v3552_v59 = vadd.f32 %v3551_v58, %v9945_v48  ;;  %4065 = vrot.lane.b32.xlu1 %v9983_v11, %s8157_s15  ;;  %3945 = vrot.lane.b32.xlu0 %v9963_v44, %s8155_s0 }
 0x319   :  { %v3555_v3 = vpop.f32.mrf.mxu0 }
 0x31a   :  { %4284 = vst.msk [vmem:[#allocation4 + $0x230] sm:$0xf] %vm3645_vm3, %v10066_v45  ;;  %v10075_v5 = vpack.c.bf16 %v3621_v60, %v3621_v60  ;;  %v3622_v13 = vmax.f32 %v3552_v59, 0.0  ;;  %v3556_v52 = vadd.f32 %v3555_v3, %v9949_v23 }
 0x31b   :  { %v3557_v36 = vpop.f32.mrf.mxu0 }
 0x31c   :  { %4199 = vst.msk [vmem:[#allocation4 + $0x1c4] sm:$0xf] %vm3645_vm3, %v10075_v5  ;;  %v10080_v56 = vpack.c.bf16 %v3622_v13, %v3622_v13  ;;  %v3628_v57 = vmax.f32 %v3556_v52, 0.0  ;;  %v3558_v35 = vadd.f32 %v3557_v36, %v9949_v23  ;;  %3909 = vrot.lane.b32.xlu1 %v9970_v28, %s8160_s18  ;;  %4129 = vrot.lane.b32.xlu0 %v10002_v15, %s8159_s17 }
 0x31d   :  { %v3559_v9 = vpop.f32.mrf.mxu0 }
 0x31e   :  { %4285 = vst.msk [vmem:[#allocation4 + $0x234] sm:$0xf] %vm3645_vm3, %v10080_v56  ;;  %v10089_v20 = vpack.c.bf16 %v3628_v57, %v3628_v57  ;;  %v3629_v31 = vmax.f32 %v3558_v35, 0.0 }
 0x31f   :  { %v3560_v1 = vpop.f32.mrf.mxu0 }
 0x320   :  { %4200 = vst.msk [vmem:[#allocation4 + $0x1c8] sm:$0x3] %vm3855_vm4, %v10089_v20  ;;  %v10093_v54 = vpack.c.bf16 %v3629_v31, %v3629_v31  ;;  %3897 = vrot.lane.b32.xlu1 %v9970_v28, %s8157_s15  ;;  %3885 = vrot.lane.b32.xlu0 %v9970_v28, %s8156_s2 }
 0x322   :  { %4286 = vst.msk [vmem:[#allocation4 + $0x238] sm:$0x3] %vm3855_vm4, %v10093_v54 }
 0x324   :  { %4057 = vrot.lane.b32.xlu1 %v10011_v53, %s8156_s2  ;;  %4117 = vrot.lane.b32.xlu0 %v10002_v15, %s8155_s0 }
 0x328   :  { %3983 = vrot.lane.b32.xlu1 %v9973_v46, %s8157_s15  ;;  %3873 = vrot.lane.b32.xlu0 %v9970_v28, %s8159_s17 }
 0x32c   :  { %4055 = vrot.lane.b32.xlu1 %v9997_v63, %s8156_s2  ;;  %4067 = vrot.lane.b32.xlu0 %v9997_v63, %s8157_s15 }
 0x32f   :  { %v3596_v44 = vpop.f32.mrf.mxu1 }
 0x330   :  { %v3597_v27 = vadd.f32 %v3596_v44, %v9942_v18  ;;  %4045 = vrot.lane.b32.xlu1 %v10011_v53, %s8159_s17  ;;  %3861 = vrot.lane.b32.xlu0 %v9970_v28, %s8155_s0 }
 0x331   :  { %v3598_v19 = vpop.f32.mrf.mxu1 }
 0x332   :  { %v3616_v30 = vmax.f32 %v3597_v27, 0.0 }
 0x333   :  { %v3599_v2 = vpop.f32.mrf.mxu1 }
 0x334   :  { %v10118_v47 = vpack.c.bf16 %v3616_v30, %v3616_v30  ;;  %v3600_v4 = vadd.f32 %v3599_v2, %v9945_v48  ;;  %4007 = vrot.lane.b32.xlu1 %v9973_v46, %s8158_s16  ;;  %4053 = vrot.lane.b32.xlu0 %v9983_v11, %s8156_s2 }
 0x335   :  { %v3601_v18 = vpop.f32.mrf.mxu1 }
 0x336   :  { %4370 = vst.msk [vmem:[#allocation4 + $0x2a0] sm:$0xf] %vm3645_vm3, %v10118_v47  ;;  %v3623_v24 = vmax.f32 %v3600_v4, 0.0 }
 0x337   :  { %v3604_v17 = vpop.f32.mrf.mxu1 }
 0x338   :  { %v10127_v28 = vpack.c.bf16 %v3623_v24, %v3623_v24  ;;  %v3605_v55 = vadd.f32 %v3604_v17, %v9949_v23  ;;  %4091 = vrot.lane.b32.xlu1 %v9997_v63, %s8158_s16  ;;  %4033 = vrot.lane.b32.xlu0 %v10011_v53, %s8155_s0 }
 0x339   :  { %v3606_v48 = vpop.f32.mrf.mxu1 }
 0x33a   :  { %4371 = vst.msk [vmem:[#allocation4 + $0x2a4] sm:$0xf] %vm3645_vm3, %v10127_v28  ;;  %v3630_v40 = vmax.f32 %v3605_v55, 0.0 }
 0x33b   :  { %v3607_v32 = vpop.f32.mrf.mxu1 }
 0x33c   :  { %v10136_v62 = vpack.c.bf16 %v3630_v40, %v3630_v40  ;;  %3995 = vrot.lane.b32.xlu1 %v9973_v46, %s8160_s18  ;;  %4081 = vrot.lane.b32.xlu0 %v10011_v53, %s8160_s18 }
 0x33d   :  { %v3608_v23 = vpop.f32.mrf.mxu1 }
 0x33e   :  { %4372 = vst.msk [vmem:[#allocation4 + $0x2a8] sm:$0x3] %vm3855_vm4, %v10136_v62 }
 0x340   :  { %4043 = vrot.lane.b32.xlu1 %v9997_v63, %s8159_s17  ;;  %4069 = vrot.lane.b32.xlu0 %v10011_v53, %s8157_s15 }
 0x342   :  { %v3882_v61 = vpop.permute.xlu1 %3881  ;;  %v3894_v50 = vpop.permute.xlu0 %3893 }
 0x343   :  { %3890 = vst.msk [vmem:[#allocation4 + $0x30] sm:$0xf] %vm3645_vm3, %v3882_v61  ;;  %3902 = vst.msk [vmem:[#allocation4 + $0x40] sm:$0xf] %vm3645_vm3, %v3894_v50 }
 0x344   :  { %4177 = vrot.lane.b32.xlu1 %v10002_v15, %s8158_s16  ;;  %3971 = vrot.lane.b32.xlu0 %v9973_v46, %s8156_s2 }
 0x346   :  { %v3918_v34 = vpop.permute.xlu1 %3917 }
 0x347   :  { %3926 = vst.msk [vmem:[#allocation4 + $0x60] sm:$0xf] %vm3645_vm3, %v3918_v34 }
 0x348   :  { %4165 = vrot.lane.b32.xlu1 %v10002_v15, %s8160_s18  ;;  %4093 = vrot.lane.b32.xlu0 %v10011_v53, %s8158_s16 }
 0x34a   :  { %v3870_v43 = vpop.permute.xlu1 %3869 }
 0x34b   :  { %3878 = vst.msk [vmem:[#allocation4 + $0x20] sm:$0xf] %vm3645_vm3, %v3870_v43 }
 0x34c   :  { %4131 = vrot.lane.b32.xlu1 %v10019_v38, %s8159_s17  ;;  %3959 = vrot.lane.b32.xlu0 %v9973_v46, %s8159_s17 }
 0x34e   :  { %v3906_v26 = vpop.permute.xlu1 %3905 }
 0x34f   :  { %3914 = vst.msk [vmem:[#allocation4 + $0x50] sm:$0xf] %vm3645_vm3, %v3906_v26 }
 0x350   :  { %4153 = vrot.lane.b32.xlu1 %v10002_v15, %s8157_s15  ;;  %4089 = vrot.lane.b32.xlu0 %v9983_v11, %s8158_s16 }
 0x352   :  { %v3858_v63 = vpop.permute.xlu1 %3857 }
 0x353   :  { %3866 = vst.msk [vmem:[#allocation4 + $0x10] sm:$0xf] %vm3645_vm3, %v3858_v63 }
 0x354   :  { %4119 = vrot.lane.b32.xlu1 %v10019_v38, %s8155_s0  ;;  %3947 = vrot.lane.b32.xlu0 %v9973_v46, %s8155_s0 }
 0x358   :  { %4139 = vrot.lane.b32.xlu1 %v9988_v12, %s8156_s2  ;;  %4041 = vrot.lane.b32.xlu0 %v9983_v11, %s8159_s17 }
 0x35a   :  { %v4030_v49 = vpop.permute.xlu0 %4029  ;;  %v4078_v0 = vpop.permute.xlu1 %4077 }
 0x35b   :  { %4038 = vst.msk [vmem:[#allocation4 + $0xf0] sm:$0xf] %vm3645_vm3, %v4030_v49  ;;  %4086 = vst.msk [vmem:[#allocation4 + $0x130] sm:$0xf] %vm3645_vm3, %v4078_v0  ;;  %v7900_v0 = vld [vmem:[#allocation4 + $0x8] sm:$0xff]  }
 0x35c   :  { %4179 = vrot.lane.b32.xlu1 %v10019_v38, %s8158_s16  ;;  %4175 = vrot.lane.b32.xlu0 %v9988_v12, %s8158_s16 }
 0x35e   :  { %v3980_v46 = vpop.permute.xlu0 %3979  ;;  %v3968_v33 = vpop.permute.xlu1 %3967 }
 0x35f   :  { %3988 = vst.msk [vmem:[#allocation4 + $0xb0] sm:$0xf] %vm3645_vm3, %v3980_v46  ;;  %3976 = vst.msk [vmem:[#allocation4 + $0xa0] sm:$0xf] %vm3645_vm3, %v3968_v33 }
 0x360   :  { %4167 = vrot.lane.b32.xlu1 %v10019_v38, %s8160_s18  ;;  %4163 = vrot.lane.b32.xlu0 %v9988_v12, %s8160_s18 }
 0x362   :  { %v3884_v11 = vpop.permute.xlu0 %3883  ;;  %v4004_v8 = vpop.permute.xlu1 %4003 }
 0x363   :  { %3891 = vst.msk [vmem:[#allocation4 + $0x34] sm:$0xf] %vm3645_vm3, %v3884_v11  ;;  %4012 = vst.msk [vmem:[#allocation4 + $0xd0] sm:$0xf] %vm3645_vm3, %v4004_v8 }
 0x364   :  { %4155 = vrot.lane.b32.xlu1 %v10019_v38, %s8157_s15  ;;  %4151 = vrot.lane.b32.xlu0 %v9988_v12, %s8157_s15 }
 0x366   :  { %v3920_v25 = vpop.permute.xlu0 %3919  ;;  %v3956_v53 = vpop.permute.xlu1 %3955 }
 0x367   :  { %3927 = vst.msk [vmem:[#allocation4 + $0x64] sm:$0xf] %vm3645_vm3, %v3920_v25  ;;  %3964 = vst.msk [vmem:[#allocation4 + $0x90] sm:$0xf] %vm3645_vm3, %v3956_v53  ;;  %v7905_v53 = vld [vmem:[#allocation4] sm:$0xff]  }
 0x368   :  { %4227 = vrot.lane.b32.xlu1 %v10075_v5, %s8156_s2  ;;  %4143 = vrot.lane.b32.xlu0 %v10019_v38, %s8156_s2 }
 0x36a   :  { %v3872_v6 = vpop.permute.xlu0 %3871  ;;  %v3992_v37 = vpop.permute.xlu1 %3991  ;;  %v7890_v2 = vld [vmem:[#allocation4 + $0x30] sm:$0xff]  }
 0x36b   :  { %3879 = vst.msk [vmem:[#allocation4 + $0x24] sm:$0xf] %vm3645_vm3, %v3872_v6  ;;  %4000 = vst.msk [vmem:[#allocation4 + $0xc0] sm:$0xf] %vm3645_vm3, %v3992_v37  ;;  %v7907_v37 = vld [vmem:[%s11013_s4] ss:$52 sps:$4 sm:$0xff]  }
 0x36c   :  { %4215 = vrot.lane.b32.xlu1 %v10075_v5, %s8159_s17  ;;  %4225 = vrot.lane.b32.xlu0 %v10061_v10, %s8156_s2 }
 0x36e   :  { %v3908_v12 = vpop.permute.xlu0 %3907  ;;  %v3944_v39 = vpop.permute.xlu1 %3943 }
 0x36f   :  { %3915 = vst.msk [vmem:[#allocation4 + $0x54] sm:$0xf] %vm3645_vm3, %v3908_v12  ;;  %3952 = vst.msk [vmem:[#allocation4 + $0x80] sm:$0xf] %vm3645_vm3, %v3944_v39  ;;  %v7910_v12 = vld [vmem:[#allocation4 + $0xe8] sm:$0xff]  }
 0x370   :  { %4203 = vrot.lane.b32.xlu1 %v10075_v5, %s8155_s0  ;;  %4213 = vrot.lane.b32.xlu0 %v10061_v10, %s8159_s17  ;;  %v7913_v39 = vld [vmem:[%s11013_s4 + $0x6c] ss:$52 sps:$4 sm:$0xff]  }
 0x372   :  { %v3860_v38 = vpop.permute.xlu0 %3859  ;;  %v4128_v22 = vpop.permute.xlu1 %4127  ;;  %v7894_v40 = vld [vmem:[#allocation4 + $0x20] sm:$0xff]  }
 0x373   :  { %3867 = vst.msk [vmem:[#allocation4 + $0x14] sm:$0xf] %vm3645_vm3, %v3860_v38  ;;  %4136 = vst.msk [vmem:[#allocation4 + $0x170] sm:$0xf] %vm3645_vm3, %v4128_v22 }
 0x374   :  { %4325 = vrot.lane.b32.xlu1 %v10080_v56, %s8157_s15  ;;  %4201 = vrot.lane.b32.xlu0 %v10061_v10, %s8155_s0 }
 0x376   :  { %v4080_v21 = vpop.permute.xlu0 %4079  ;;  %v4116_v16 = vpop.permute.xlu1 %4115  ;;  %v7897_v61 = vld [vmem:[#allocation4 + $0x50] sm:$0xff]  }
 0x377   :  { %4087 = vst.msk [vmem:[#allocation4 + $0x134] sm:$0xf] %vm3645_vm3, %v4080_v21  ;;  %4124 = vst.msk [vmem:[#allocation4 + $0x160] sm:$0xf] %vm3645_vm3, %v4116_v16 }
 0x378   :  { %4313 = vrot.lane.b32.xlu1 %v10080_v56, %s8156_s2  ;;  %4229 = vrot.lane.b32.xlu0 %v10089_v20, %s8156_s2 }
 0x37a   :  { %v3970_v14 = vpop.permute.xlu0 %3969  ;;  %v3896_v51 = vpop.permute.xlu1 %3895  ;;  %v7898_v43 = vld [vmem:[#allocation4 + $0x10] sm:$0xff]  }
 0x37b   :  { %3977 = vst.msk [vmem:[#allocation4 + $0xa4] sm:$0xf] %vm3645_vm3, %v3970_v14  ;;  %3903 = vst.msk [vmem:[#allocation4 + $0x44] sm:$0xf] %vm3645_vm3, %v3896_v51  ;;  %v7912_v51 = vld [vmem:[#allocation4 + $0xe0] sm:$0xff]  }
 0x37c   :  { %4263 = vrot.lane.b32.xlu1 %v10075_v5, %s8158_s16  ;;  %4141 = vrot.lane.b32.xlu0 %v10002_v15, %s8156_s2 }
 0x37e   :  { %v4006_v41 = vpop.permute.xlu0 %4005  ;;  %v4032_v42 = vpop.permute.xlu1 %4031 }
 0x37f   :  { %4013 = vst.msk [vmem:[#allocation4 + $0xd4] sm:$0xf] %vm3645_vm3, %v4006_v41  ;;  %4039 = vst.msk [vmem:[#allocation4 + $0xf4] sm:$0xf] %vm3645_vm3, %v4032_v42  ;;  %v7915_v41 = vld [vmem:[%s11013_s4 + $0x68] ss:$52 sps:$4 sm:$0xff]  }
 0x380   :  { %4301 = vrot.lane.b32.xlu1 %v10080_v56, %s8159_s17  ;;  %4217 = vrot.lane.b32.xlu0 %v10089_v20, %s8159_s17 }
 0x382   :  { %v3958_v58 = vpop.permute.xlu0 %3957  ;;  %v3982_v60 = vpop.permute.xlu1 %3981  ;;  %v7902_v46 = vld [vmem:[#allocation4 + $0x40] sm:$0xff]  }
 0x383   :  { %3965 = vst.msk [vmem:[#allocation4 + $0x94] sm:$0xf] %vm3645_vm3, %v3958_v58  ;;  %3989 = vst.msk [vmem:[#allocation4 + $0xb4] sm:$0xf] %vm3645_vm3, %v3982_v60  ;;  %v7922_v60 = vld [vmem:[%s11013_s4 + $0xd4] ss:$52 sps:$4 sm:$0xff]  }
 0x384   :  { %4265 = vrot.lane.b32.xlu1 %v10089_v20, %s8158_s16  ;;  %4323 = vrot.lane.b32.xlu0 %v10066_v45, %s8157_s15 }
 0x386   :  { %v3994_v15 = vpop.permute.xlu0 %3993  ;;  %v3922_v59 = vpop.permute.xlu1 %3921  ;;  %v7904_v11 = vld [vmem:[#allocation4 + $0xf0] sm:$0xff]  }
 0x387   :  { %4001 = vst.msk [vmem:[#allocation4 + $0xc4] sm:$0xf] %vm3645_vm3, %v3994_v15  ;;  %v7916_v15 = vld [vmem:[#allocation4 + $0xa0] sm:$0xff]  }
 0x388   :  { %3928 = vst.msk [vmem:[#allocation4 + $0x68] sm:$0x3] %vm3855_vm4, %v3922_v59  ;;  %4253 = vrot.lane.b32.xlu1 %v10089_v20, %s8160_s18  ;;  %4205 = vrot.lane.b32.xlu0 %v10089_v20, %s8155_s0 }
 0x38a   :  { %v3946_v3 = vpop.permute.xlu0 %3945  ;;  %v4066_v13 = vpop.permute.xlu1 %4065  ;;  %v7906_v6 = vld [vmem:[#allocation4 + $0xb0] sm:$0xff]  }
 0x38b   :  { %3953 = vst.msk [vmem:[#allocation4 + $0x84] sm:$0xf] %vm3645_vm3, %v3946_v3  ;;  %4074 = vst.msk [vmem:[#allocation4 + $0x120] sm:$0xf] %vm3645_vm3, %v4066_v13 }
 0x38c   :  { %4327 = vrot.lane.b32.xlu1 %v10093_v54, %s8157_s15  ;;  %4311 = vrot.lane.b32.xlu0 %v10066_v45, %s8156_s2 }
 0x38e   :  { %v4130_v52 = vpop.permute.xlu0 %4129  ;;  %v3910_v36 = vpop.permute.xlu1 %3909 }
 0x38f   :  { %4137 = vst.msk [vmem:[#allocation4 + $0x174] sm:$0xf] %vm3645_vm3, %v4130_v52  ;;  %v7891_v4 = vld [vmem:[#allocation4 + $0x68] sm:$0xff]  }
 0x390   :  { %3916 = vst.msk [vmem:[#allocation4 + $0x58] sm:$0x3] %vm3855_vm4, %v3910_v36  ;;  %4251 = vrot.lane.b32.xlu1 %v10075_v5, %s8160_s18  ;;  %4261 = vrot.lane.b32.xlu0 %v10061_v10, %s8158_s16 }
 0x392   :  { %v3886_v57 = vpop.permute.xlu0 %3885  ;;  %v3898_v35 = vpop.permute.xlu1 %3897 }
 0x393   :  { %3892 = vst.msk [vmem:[#allocation4 + $0x38] sm:$0x3] %vm3855_vm4, %v3886_v57  ;;  %3904 = vst.msk [vmem:[#allocation4 + $0x48] sm:$0x3] %vm3855_vm4, %v3898_v35  ;;  %v7921_v57 = vld [vmem:[#allocation4 + $0xd0] sm:$0xff]  }
 0x394   :  { %4241 = vrot.lane.b32.xlu1 %v10089_v20, %s8157_s15  ;;  %4299 = vrot.lane.b32.xlu0 %v10066_v45, %s8159_s17  ;;  %v7889_v20 = vld [vmem:[#allocation4 + $0x70] sm:$0xff]  }
 0x396   :  { %v4118_v9 = vpop.permute.xlu0 %4117  ;;  %v4058_v31 = vpop.permute.xlu1 %4057 }
 0x397   :  { %4125 = vst.msk [vmem:[#allocation4 + $0x164] sm:$0xf] %vm3645_vm3, %v4118_v9  ;;  %v7933_v9 = vld [vmem:[%s11013_s4 + $0x13c] ss:$52 sps:$4 sm:$0xff]  }
 0x398   :  { %4064 = vst.msk [vmem:[#allocation4 + $0x118] sm:$0x3] %vm3855_vm4, %v4058_v31  ;;  %4249 = vrot.lane.b32.xlu0 %v10061_v10, %s8160_s18  ;;  %4377 = vrot.lane.b32.xlu1 %v10136_v62, %s8155_s0 }
 0x39a   :  { %v3874_v1 = vpop.permute.xlu0 %3873  ;;  %v3984_v44 = vpop.permute.xlu1 %3983  ;;  %v7888_v27 = vld [vmem:[#allocation4 + $0x38] sm:$0xff]   ;;  %v7899_v26 = vld [vmem:[#allocation4 + $0x48] sm:$0xff]  }
 0x39b   :  { %3880 = vst.msk [vmem:[#allocation4 + $0x28] sm:$0x3] %vm3855_vm4, %v3874_v1  ;;  %3990 = vst.msk [vmem:[#allocation4 + $0xb8] sm:$0x3] %vm3855_vm4, %v3984_v44  ;;  %7351 = vmatpush3.bf16.msra.mxu0 %v7888_v27  ;;  %v7924_v44 = vld [vmem:[#allocation4 + $0x170] sm:$0xff]  }
 0x39c   :  { %4289 = vrot.lane.b32.xlu1 %v10080_v56, %s8155_s0  ;;  %4425 = vrot.lane.b32.xlu0 %v10136_v62, %s8160_s18  ;;  %v7927_v27 = vld [vmem:[#allocation4 + $0x130] sm:$0xff]  }
 0x39d   :  { %7352 = vmatprep.subr.bf16.mxu0 %v7889_v20 }
 0x39e   :  { %v4068_v19 = vpop.permute.xlu0 %4067  ;;  %v4056_v30 = vpop.permute.xlu1 %4055 }
 0x39f   :  { %4075 = vst.msk [vmem:[#allocation4 + $0x124] sm:$0xf] %vm3645_vm3, %v4068_v19  ;;  %4063 = vst.msk [vmem:[#allocation4 + $0x114] sm:$0xf] %vm3645_vm3, %v4056_v30  ;;  %7353 = vmatpush3.bf16.msra.mxu0 %v7890_v2  ;;  %v4768_v19 = vld [vmem:[%s11014_s5 + $0x78] sm:$0xff] }
 0x3a0   :  { %4239 = vrot.lane.b32.xlu1 %v10075_v5, %s8157_s15  ;;  %4287 = vrot.lane.b32.xlu0 %v10066_v45, %s8155_s0  ;;  %v7893_v5 = vld [vmem:[#allocation4 + $0x60] sm:$0xff]  }
 0x3a1   :  { %7354 = vmatprep.subr.bf16.mxu0 %v7891_v4 }
 0x3a2   :  { %v3862_v18 = vpop.permute.xlu0 %3861  ;;  %v4046_v24 = vpop.permute.xlu1 %4045  ;;  %v7892_v17 = vld [vmem:[#allocation4 + $0x28] sm:$0xff]   ;;  %v7903_v33 = vld [vmem:[#allocation4 + $0xb8] sm:$0xff]  }
 0x3a3   :  { %3868 = vst.msk [vmem:[#allocation4 + $0x18] sm:$0x3] %vm3855_vm4, %v3862_v18  ;;  %4052 = vst.msk [vmem:[#allocation4 + $0x108] sm:$0x3] %vm3855_vm4, %v4046_v24  ;;  %7355 = vmatpush3.bf16.msra.mxu0 %v7892_v17  ;;  %v7936_v24 = vld [vmem:[%s11013_s4 + $0x138] ss:$52 sps:$4 sm:$0xff]  }
 0x3a4   :  { %4237 = vrot.lane.b32.xlu0 %v10061_v10, %s8157_s15  ;;  %4423 = vrot.lane.b32.xlu1 %v10127_v28, %s8160_s18  ;;  %v7895_v10 = vld [vmem:[#allocation4 + $0x58] sm:$0xff]  }
 0x3a5   :  { %7356 = vmatprep.subr.bf16.mxu0 %v7893_v5  ;;  %v4766_v17 = vld [vmem:[%s11014_s5 + $0x68] sm:$0xff] }
 0x3a6   :  { %v4054_v55 = vpop.permute.xlu0 %4053  ;;  %v4008_v48 = vpop.permute.xlu1 %4007 }
 0x3a7   :  { %4062 = vst.msk [vmem:[#allocation4 + $0x110] sm:$0xf] %vm3645_vm3, %v4054_v55  ;;  %7357 = vmatpush3.bf16.msra.mxu0 %v7894_v40  ;;  %v7932_v55 = vld [vmem:[#allocation4 + $0xc0] sm:$0xff]  }
 0x3a8   :  { %4014 = vst.msk [vmem:[#allocation4 + $0xd8] sm:$0x3] %vm3855_vm4, %v4008_v48  ;;  %4315 = vrot.lane.b32.xlu0 %v10093_v54, %s8156_s2  ;;  %4375 = vrot.lane.b32.xlu1 %v10127_v28, %s8155_s0  ;;  %v7944_v48 = vld [vmem:[%s11013_s4 + $0x1a4] ss:$52 sps:$4 sm:$0xff]  }
 0x3a9   :  { %7358 = vmatprep.subr.bf16.mxu0 %v7895_v10 }
 0x3aa   :  { %v4034_v32 = vpop.permute.xlu0 %4033  ;;  %v4092_v23 = vpop.permute.xlu1 %4091  ;;  %v7896_v7 = vld [vmem:[#allocation4 + $0x18] sm:$0xff]  }
 0x3ab   :  { %4040 = vst.msk [vmem:[#allocation4 + $0xf8] sm:$0x3] %vm3855_vm4, %v4034_v32  ;;  %7359 = vmatpush3.bf16.msra.mxu0 %v7896_v7  ;;  %v7935_v32 = vld [vmem:[#allocation4 + $0x160] sm:$0xff]  }
 0x3ac   :  { %4099 = vst.msk [vmem:[#allocation4 + $0x144] sm:$0xf] %vm3645_vm3, %v4092_v23  ;;  %4409 = vrot.lane.b32.xlu1 %v10118_v47, %s8157_s15  ;;  %4421 = vrot.lane.b32.xlu0 %v10118_v47, %s8160_s18  ;;  %v7942_v23 = vld [vmem:[#allocation4 + $0x158] sm:$0xff]   ;;  %v7938_v7 = vld [vmem:[#allocation4 + $0x120] sm:$0xff]  }
 0x3ad   :  { %7360 = vmatprep.subr.bf16.mxu0 %v7897_v61  ;;  %v7939_v61 = vld [vmem:[%s11013_s4 + $0x8] ss:$52 sps:$4 sm:$0xff]  }
 0x3ae   :  { %v4082_v50 = vpop.permute.xlu0 %4081  ;;  %v3996_v34 = vpop.permute.xlu1 %3995 }
 0x3af   :  { %4088 = vst.msk [vmem:[#allocation4 + $0x138] sm:$0x3] %vm3855_vm4, %v4082_v50  ;;  %4002 = vst.msk [vmem:[#allocation4 + $0xc8] sm:$0x3] %vm3855_vm4, %v3996_v34  ;;  %7361 = vmatpush3.bf16.msra.mxu0 %v7898_v43  ;;  %v7917_v59 = vld [vmem:[#allocation4 + $0xd8] sm:$0xff]   ;;  %v4764_v50 = vld [vmem:[%s11014_s5 + $0x58] sm:$0xff] }
 0x3b0   :  { %4401 = vrot.lane.b32.xlu1 %v10136_v62, %s8156_s2  ;;  %4303 = vrot.lane.b32.xlu0 %v10093_v54, %s8159_s17 }
 0x3b1   :  { %7362 = vmatprep.subr.bf16.mxu0 %v7899_v26  ;;  %v7949_v26 = vld [vmem:[%s11013_s4 + $0x74] ss:$52 sps:$4 sm:$0xff]  }
 0x3b2   :  { %v4070_v63 = vpop.permute.xlu0 %4069  ;;  %v4044_v29 = vpop.permute.xlu1 %4043  ;;  %v7901_v49 = vld [vmem:[#allocation4 + $0xf8] sm:$0xff]  }
 0x3b3   :  { %4076 = vst.msk [vmem:[#allocation4 + $0x128] sm:$0x3] %vm3855_vm4, %v4070_v63  ;;  %7363 = vmatpush3.bf16.msra.mxu0 %v7900_v0  ;;  %7414 = vmatprep.subr.bf16.mxu1 %v7901_v49  ;;  %v7943_v63 = vld [vmem:[#allocation4 + $0x118] sm:$0xff]  }
 0x3b4   :  { %4051 = vst.msk [vmem:[#allocation4 + $0x104] sm:$0xf] %vm3645_vm3, %v4044_v29  ;;  %4397 = vrot.lane.b32.xlu1 %v10118_v47, %s8156_s2  ;;  %4373 = vrot.lane.b32.xlu0 %v10118_v47, %s8155_s0  ;;  %v7946_v29 = vld [vmem:[#allocation4 + $0x150] sm:$0xff]  }
 0x3b5   :  { %7364 = vmatprep.subr.bf16.mxu0 %v7902_v46  ;;  %7415 = vmatpush3.bf16.msra.mxu1 %v7903_v33  ;;  %v7954_v49 = vld [vmem:[%s11013_s4 + $0x20c] ss:$52 sps:$4 sm:$0xff]  }
 0x3b6   :  { %v3972_v8 = vpop.permute.xlu0 %3971  ;;  %v4178_v25 = vpop.permute.xlu1 %4177  ;;  %7416 = vmatprep.subr.bf16.mxu1 %v7904_v11  ;;  %v7920_v35 = vld [vmem:[#allocation4 + $0x138] sm:$0xff]   ;;  %v7928_v20 = vld [vmem:[#allocation4 + $0xc8] sm:$0xff]   ;;  %v7952_v11 = vld [vmem:[%s11013_s4 + $0x70] ss:$52 sps:$4 sm:$0xff]  }
 0x3b7   :  { %3978 = vst.msk [vmem:[#allocation4 + $0xa8] sm:$0x3] %vm3855_vm4, %v3972_v8  ;;  %7365 = vmatpush3.bf16.msra.mxu0 %v7905_v53  ;;  %v4762_v33 = vld [vmem:[%s11014_s5 + $0x48] sm:$0xff]  ;;  %v4760_v8 = vld [vmem:[%s11014_s5 + $0x38] sm:$0xff] }
 0x3b8   :  { %4185 = vst.msk [vmem:[#allocation4 + $0x1b4] sm:$0xf] %vm3645_vm3, %v4178_v25  ;;  %4347 = vrot.lane.b32.xlu1 %v10066_v45, %s8158_s16  ;;  %4291 = vrot.lane.b32.xlu0 %v10093_v54, %s8155_s0  ;;  %v7959_v25 = vld [vmem:[%s11013_s4 + $0xdc] ss:$52 sps:$4 sm:$0xff]  }
 0x3b9   :  { %7417 = vmatpush3.bf16.msra.mxu1 %v7906_v6 }
 0x3ba   :  { %v4094_v38 = vpop.permute.xlu0 %4093  ;;  %v4166_v22 = vpop.permute.xlu1 %4165  ;;  %7418 = vmatprep.subr.bf16.mxu1 %v7910_v12  ;;  %6015 = vmatmul.mubr.bf16.vlgmr.msra.gmra.mxu0 %v7907_v37  ;;  %v7931_v5 = vld [vmem:[#allocation4 + $0x128] sm:$0xff]   ;;  %v4767_v12 = vld [vmem:[%s11014_s5 + $0x70] sm:$0xff] }
 0x3bb   :  { %4100 = vst.msk [vmem:[#allocation4 + $0x148] sm:$0x3] %vm3855_vm4, %v4094_v38  ;;  %6022 = vmatprep.mubr.bf16.mxu0 %v7913_v39  ;;  %v7957_v39 = vld [vmem:[%s11013_s4 + $0x208] ss:$52 sps:$4 sm:$0xff]  }
 0x3bc   :  { %4173 = vst.msk [vmem:[#allocation4 + $0x1a4] sm:$0xf] %vm3645_vm3, %v4166_v22  ;;  %4389 = vrot.lane.b32.xlu1 %v10136_v62, %s8159_s17  ;;  %4413 = vrot.lane.b32.xlu0 %v10136_v62, %s8157_s15  ;;  %v4758_v38 = vld [vmem:[%s11014_s5 + $0x28] sm:$0xff] }
 0x3bd   :  { %v7962_v22 = vld [vmem:[%s11013_s4 + $0x274] ss:$52 sps:$4 sm:$0xff]  }
 0x3be   :  { %v3960_v21 = vpop.permute.xlu0 %3959  ;;  %v4132_v16 = vpop.permute.xlu1 %4131  ;;  %v7911_v14 = vld [vmem:[#allocation4 + $0xa8] sm:$0xff]  }
 0x3bf   :  { %3966 = vst.msk [vmem:[#allocation4 + $0x98] sm:$0x3] %vm3855_vm4, %v3960_v21  ;;  %4138 = vst.msk [vmem:[#allocation4 + $0x178] sm:$0x3] %vm3855_vm4, %v4132_v16  ;;  %7419 = vmatpush3.bf16.msra.mxu1 %v7911_v14 }
 0x3c0   :  { %4385 = vrot.lane.b32.xlu1 %v10118_v47, %s8159_s17  ;;  %4411 = vrot.lane.b32.xlu0 %v10127_v28, %s8157_s15 }
 0x3c1   :  { %7420 = vmatprep.subr.bf16.mxu1 %v7912_v51  ;;  %v4765_v51 = vld [vmem:[%s11014_s5 + $0x60] sm:$0xff] }
 0x3c2   :  { %v4090_v42 = vpop.permute.xlu0 %4089  ;;  %v4154_v58 = vpop.permute.xlu1 %4153  ;;  %6023 = vmatmul.mubr.bf16.gmra.mxu0 %v7915_v41  ;;  %v7951_v37 = vld [vmem:[#allocation4 + $0x148] sm:$0xff]  }
 0x3c3   :  { %4098 = vst.msk [vmem:[#allocation4 + $0x140] sm:$0xf] %vm3645_vm3, %v4090_v42  ;;  %4161 = vst.msk [vmem:[#allocation4 + $0x194] sm:$0xf] %vm3645_vm3, %v4154_v58  ;;  %7421 = vmatpush3.bf16.msra.mxu1 %v7916_v15  ;;  %6030 = vmatprep.mubr.bf16.mxu0 %v7922_v60  ;;  %v7961_v42 = vld [vmem:[%s11013_s4 + $0xd8] ss:$52 sps:$4 sm:$0xff]  }
 0x3c4   :  { %4335 = vrot.lane.b32.xlu1 %v10066_v45, %s8160_s18  ;;  %4399 = vrot.lane.b32.xlu0 %v10127_v28, %s8156_s2  ;;  %v7925_v45 = vld [vmem:[%s11013_s4 + $0xd0] ss:$52 sps:$4 sm:$0xff]   ;;  %v4756_v58 = vld [vmem:[%s11014_s5 + $0x18] sm:$0xff] }
 0x3c5   :  { %7422 = vmatprep.subr.bf16.mxu1 %v7917_v59  ;;  %v7965_v59 = vld [vmem:[%s11013_s4 + $0x144] ss:$52 sps:$4 sm:$0xff]  }
 0x3c6   :  { %v3948_v3 = vpop.permute.xlu0 %3947  ;;  %v4120_v13 = vpop.permute.xlu1 %4119  ;;  %v7918_v52 = vld [vmem:[#allocation4 + $0x98] sm:$0xff]  }
 0x3c7   :  { %3954 = vst.msk [vmem:[#allocation4 + $0x88] sm:$0x3] %vm3855_vm4, %v3948_v3  ;;  %4126 = vst.msk [vmem:[#allocation4 + $0x168] sm:$0x3] %vm3855_vm4, %v4120_v13  ;;  %v7919_v36 = vld [vmem:[#allocation4 + $0x178] sm:$0xff]   ;;  %7423 = vmatpush3.bf16.msra.mxu1 %v7918_v52  ;;  %v4763_v3 = vld [vmem:[%s11014_s5 + $0x50] sm:$0xff] }
 0x3c8   :  { %4437 = vrot.lane.b32.xlu1 %v10136_v62, %s8158_s16  ;;  %4349 = vrot.lane.b32.xlu0 %v10080_v56, %s8158_s16  ;;  %v7926_v62 = vld [vmem:[#allocation4 + $0x90] sm:$0xff]   ;;  %v7968_v52 = vld [vmem:[%s11013_s4 + $0x2dc] ss:$52 sps:$4 sm:$0xff]  }
 0x3c9   :  { %7478 = vmatprep.subr.bf16.mxu0 %v7919_v36  ;;  %7424 = vmatprep.subr.bf16.mxu1 %v7921_v57  ;;  %v7964_v13 = vld [vmem:[%s11013_s4 + $0x270] ss:$52 sps:$4 sm:$0xff]  }
 0x3ca   :  { %v4042_v31 = vpop.permute.xlu0 %4041  ;;  %v4140_v1 = vpop.permute.xlu1 %4139  ;;  %7479 = vmatpush3.bf16.msra.mxu0 %v7920_v35  ;;  %v7956_v14 = vld [vmem:[#allocation4 + $0x140] sm:$0xff]   ;;  %v4761_v35 = vld [vmem:[%s11014_s5 + $0x40] sm:$0xff] }
 0x3cb   :  { %4050 = vst.msk [vmem:[#allocation4 + $0x100] sm:$0xf] %vm3645_vm3, %v4042_v31  ;;  %4148 = vst.msk [vmem:[#allocation4 + $0x180] sm:$0xf] %vm3645_vm3, %v4140_v1  ;;  %7480 = vmatprep.subr.bf16.mxu0 %v7924_v44  ;;  %6031 = vmatmul.mubr.bf16.gmra.mxu0 %v7925_v45  ;;  %v4754_v45 = vld [vmem:[%s11014_s5 + $0x8] sm:$0xff] }
 0x3cc   :  { %4435 = vrot.lane.b32.xlu1 %v10127_v28, %s8158_s16  ;;  %4351 = vrot.lane.b32.xlu0 %v10093_v54, %s8158_s16  ;;  %v6688_v31 = vld [vmem:[%s11015_s7 + $0x8] sm:$0xff] }
 0x3cd   :  { %7425 = vmatpush3.bf16.msra.mxu1 %v7926_v62  ;;  %6038 = vmatprep.mubr.bf16.mxu0 %v7933_v9  ;;  %v7967_v9 = vld [vmem:[%s11013_s4 + $0x140] ss:$52 sps:$4 sm:$0xff]  }
 0x3ce   :  { %v4176_v30 = vpop.permute.xlu0 %4175  ;;  %v4180_v2 = vpop.permute.xlu1 %4179  ;;  %v7929_v4 = vld [vmem:[#allocation4 + $0x88] sm:$0xff]   ;;  %7481 = vmatpush3.bf16.msra.mxu0 %v7927_v27  ;;  %7426 = vmatprep.subr.bf16.mxu1 %v7928_v20  ;;  %v7973_v62 = vld [vmem:[%s11013_s4 + $0x1ac] ss:$52 sps:$4 sm:$0xff]   ;;  %v4759_v27 = vld [vmem:[%s11014_s5 + $0x30] sm:$0xff] }
 0x3cf   :  { %4184 = vst.msk [vmem:[#allocation4 + $0x1b0] sm:$0xf] %vm3645_vm3, %v4176_v30  ;;  %v7930_v18 = vld [vmem:[#allocation4 + $0x168] sm:$0xff]  }
 0x3d0   :  { %4186 = vst.msk [vmem:[#allocation4 + $0x1b8] sm:$0x3] %vm3855_vm4, %v4180_v2  ;;  %4846 = vperm.xlu1 %7813, %v4768_v19   ;;  %4387 = vrot.lane.b32.xlu0 %v10127_v28, %s8159_s17  ;;  %v7937_v28 = vld [vmem:[#allocation4 + $0x80] sm:$0xff]   ;;  %v7970_v20 = vld [vmem:[%s11013_s4 + $0x2d8] ss:$52 sps:$4 sm:$0xff]  }
 0x3d1   :  { %7427 = vmatpush3.bf16.msra.mxu1 %v7929_v4  ;;  %7482 = vmatprep.subr.bf16.mxu0 %v7930_v18  ;;  %v7980_v19 = vld [vmem:[%s11013_s4 + $0x14] ss:$52 sps:$4 sm:$0xff]   ;;  %v4757_v18 = vld [vmem:[%s11014_s5 + $0x20] sm:$0xff] }
 0x3d2   :  { %v4164_v40 = vpop.permute.xlu0 %4163  ;;  %v4168_v10 = vpop.permute.xlu1 %4167  ;;  %7483 = vmatpush3.bf16.msra.mxu0 %v7931_v5  ;;  %7428 = vmatprep.subr.bf16.mxu1 %v7932_v55  ;;  %v7958_v41 = vld [vmem:[#allocation4 + $0x100] sm:$0xff]   ;;  %v7976_v5 = vld [vmem:[%s11013_s4 + $0x1a8] ss:$52 sps:$4 sm:$0xff]  }
 0x3d3   :  { %4172 = vst.msk [vmem:[#allocation4 + $0x1a0] sm:$0xf] %vm3645_vm3, %v4164_v40  ;;  %7484 = vmatprep.subr.bf16.mxu0 %v7935_v32  ;;  %6039 = vmatmul.mubr.bf16.gmra.mxu0 %v7936_v24  ;;  %v4755_v40 = vld [vmem:[%s11014_s5 + $0x10] sm:$0xff] }
 0x3d4   :  { %4174 = vst.msk [vmem:[#allocation4 + $0x1a8] sm:$0x3] %vm3855_vm4, %v4168_v10  ;;  %4836 = vperm.xlu1 %7813, %v4766_v17   ;;  %4339 = vrot.lane.b32.xlu0 %v10093_v54, %s8160_s18  ;;  %v7947_v54 = vld [vmem:[%s11013_s4 + $0x1a0] ss:$52 sps:$4 sm:$0xff]  }
 0x3d5   :  { %7429 = vmatpush3.bf16.msra.mxu1 %v7937_v28  ;;  %6046 = vmatprep.mubr.bf16.mxu0 %v7944_v48  ;;  %v7983_v10 = vld [vmem:[%s11013_s4 + $0x214] ss:$52 sps:$4 sm:$0xff]   ;;  %v7978_v28 = vld [vmem:[%s11013_s4 + $0x10] ss:$52 sps:$4 sm:$0xff]  }
 0x3d6   :  { %v4152_v34 = vpop.permute.xlu0 %4151  ;;  %v4156_v43 = vpop.permute.xlu1 %4155  ;;  %7485 = vmatpush3.bf16.msra.mxu0 %v7938_v7  ;;  %v7977_v32 = vld [vmem:[#allocation4 + $0x1b0] sm:$0xff]  }
 0x3d7   :  { %4160 = vst.msk [vmem:[#allocation4 + $0x190] sm:$0xf] %vm3645_vm3, %v4152_v34  ;;  %7486 = vmatprep.subr.bf16.mxu0 %v7942_v23  ;;  %v7972_v24 = vld [vmem:[#allocation4 + $0x1b8] sm:$0xff]   ;;  %v7988_v23 = vld [vmem:[%s11013_s4 + $0x7c] ss:$52 sps:$4 sm:$0xff]   ;;  %v4753_v34 = vld [vmem:[%s11014_s5] sm:$0xff] }
 0x3d8   :  { %4162 = vst.msk [vmem:[#allocation4 + $0x198] sm:$0x3] %vm3855_vm4, %v4156_v43  ;;  %6112 = vmatmul.mubr.bf16.vlgmr.msra.gmra.mxu1 %v7939_v61  ;;  %4826 = vperm.xlu1 %7813, %v4764_v50  }
 0x3d9   :  { %4337 = vrot.lane.b32.xlu0 %v10080_v56, %s8160_s18  ;;  %6119 = vmatprep.mubr.bf16.mxu1 %v7949_v26  ;;  %v7948_v56 = vld [vmem:[#allocation4 + $0x110] sm:$0xff]  }
 0x3da   :  { %v4144_v0 = vpop.permute.xlu0 %4143  ;;  %v4228_v46 = vpop.permute.xlu1 %4227  ;;  %7487 = vmatpush3.bf16.msra.mxu0 %v7943_v63 }
 0x3db   :  { %4150 = vst.msk [vmem:[#allocation4 + $0x188] sm:$0x3] %vm3855_vm4, %v4144_v0  ;;  %7488 = vmatprep.subr.bf16.mxu0 %v7946_v29  ;;  %6047 = vmatmul.mubr.bf16.gmra.mxu0 %v7947_v54  ;;  %v7982_v43 = vld [vmem:[#allocation4 + $0x1a8] sm:$0xff]   ;;  %v7986_v54 = vld [vmem:[%s11013_s4 + $0x210] ss:$52 sps:$4 sm:$0xff]  }
 0x3dc   :  { %4235 = vst.msk [vmem:[#allocation4 + $0x1f4] sm:$0xf] %vm3645_vm3, %v4228_v46  ;;  %4816 = vperm.xlu1 %7813, %v4762_v33   ;;  %6054 = vmatprep.mubr.bf16.mxu0 %v7954_v49  ;;  %v6687_v49 = vld [vmem:[%s11015_s7] sm:$0xff]  ;;  %v7993_v0 = vld [vmem:[%s11013_s4 + $0x27c] ss:$52 sps:$4 sm:$0xff]  }
 0x3dd   :  { %4433 = vrot.lane.b32.xlu0 %v10118_v47, %s8158_s16  ;;  %v7953_v47 = vld [vmem:[#allocation4 + $0x108] sm:$0xff]   ;;  %v7987_v46 = vld [vmem:[#allocation4 + $0x1a0] sm:$0xff]  }
 0x3de   :  { %v4226_v53 = vpop.permute.xlu0 %4225  ;;  %v4216_v6 = vpop.permute.xlu1 %4215  ;;  %7489 = vmatpush3.bf16.msra.mxu0 %v7948_v56  ;;  %v7990_v33 = vld [vmem:[%s11013_s4 + $0x78] ss:$52 sps:$4 sm:$0xff]  }
 0x3df   :  { %4234 = vst.msk [vmem:[#allocation4 + $0x1f0] sm:$0xf] %vm3645_vm3, %v4226_v53  ;;  %4223 = vst.msk [vmem:[#allocation4 + $0x1e4] sm:$0xf] %vm3645_vm3, %v4216_v6  ;;  %7490 = vmatprep.subr.bf16.mxu0 %v7951_v37  ;;  %v7992_v53 = vld [vmem:[#allocation4 + $0x198] sm:$0xff]  }
 0x3e0   :  { %6120 = vmatmul.mubr.bf16.gmra.mxu1 %v7952_v11  ;;  %4806 = vperm.xlu1 %7813, %v4760_v8   ;;  %v8000_v11 = vld [vmem:[%s11013_s4 + $0xe4] ss:$52 sps:$4 sm:$0xff]  }
 0x3e1   :  { %4841 = vperm.xlu0 %7812, %v4767_v12   ;;  %6127 = vmatprep.mubr.bf16.mxu1 %v7959_v25  ;;  %v7996_v37 = vld [vmem:[%s11013_s4 + $0x278] ss:$52 sps:$4 sm:$0xff]  }
 0x3e2   :  { %v4214_v21 = vpop.permute.xlu0 %4213  ;;  %v4204_v16 = vpop.permute.xlu1 %4203  ;;  %7491 = vmatpush3.bf16.msra.mxu0 %v7953_v47 }
 0x3e3   :  { %4222 = vst.msk [vmem:[#allocation4 + $0x1e0] sm:$0xf] %vm3645_vm3, %v4214_v21  ;;  %4211 = vst.msk [vmem:[#allocation4 + $0x1d4] sm:$0xf] %vm3645_vm3, %v4204_v16  ;;  %7492 = vmatprep.subr.bf16.mxu0 %v7956_v14  ;;  %6055 = vmatmul.mubr.bf16.gmra.mxu0 %v7957_v39  ;;  %v7998_v21 = vld [vmem:[#allocation4 + $0x190] sm:$0xff]  }
 0x3e4   :  { %4796 = vperm.xlu1 %7813, %v4758_v38   ;;  %6062 = vmatprep.mubr.bf16.mxu0 %v7962_v22  ;;  %v7999_v38 = vld [vmem:[#allocation4 + $0x238] sm:$0xff]   ;;  %v8007_v22 = vld [vmem:[%s11013_s4 + $0x2e4] ss:$52 sps:$4 sm:$0xff]   ;;  %v8004_v14 = vld [vmem:[%s11013_s4 + $0xe0] ss:$52 sps:$4 sm:$0xff]  }
 0x3e5   :  { %4831 = vperm.xlu0 %7812, %v4765_v51   ;;  %v8002_v51 = vld [vmem:[#allocation4 + $0x1c8] sm:$0xff]  }
 0x3e6   :  { %v4202_v60 = vpop.permute.xlu0 %4201  ;;  %v4326_v15 = vpop.permute.xlu1 %4325  ;;  %7493 = vmatpush3.bf16.msra.mxu0 %v7958_v41  ;;  %v7975_v17 = vld [vmem:[#allocation4 + $0x1f0] sm:$0xff]  }
 0x3e7   :  { %4210 = vst.msk [vmem:[#allocation4 + $0x1d0] sm:$0xf] %vm3645_vm3, %v4202_v60  ;;  %4333 = vst.msk [vmem:[#allocation4 + $0x274] sm:$0xf] %vm3645_vm3, %v4326_v15  ;;  %v8012_v41 = vld [vmem:[%s11013_s4 + $0x14c] ss:$52 sps:$4 sm:$0xff]  }
 0x3e8   :  { %6128 = vmatmul.mubr.bf16.gmra.mxu1 %v7961_v42  ;;  %4786 = vperm.xlu1 %7813, %v4756_v58   ;;  %v8006_v60 = vld [vmem:[#allocation4 + $0x230] sm:$0xff]   ;;  %v8005_v15 = vld [vmem:[#allocation4 + $0x188] sm:$0xff]  }
 0x3e9   :  { %4821 = vperm.xlu0 %7812, %v4763_v3   ;;  %6135 = vmatprep.mubr.bf16.mxu1 %v7965_v59  ;;  %v8009_v59 = vld [vmem:[#allocation4 + $0x1c0] sm:$0xff]  }
 0x3ea   :  { %v4230_v36 = vpop.permute.xlu0 %4229  ;;  %v4314_v57 = vpop.permute.xlu1 %4313  ;;  %v7985_v26 = vld [vmem:[#allocation4 + $0x1e0] sm:$0xff]  }
 0x3eb   :  { %4236 = vst.msk [vmem:[#allocation4 + $0x1f8] sm:$0x3] %vm3855_vm4, %v4230_v36  ;;  %6063 = vmatmul.mubr.bf16.gmra.mxu0 %v7964_v13  ;;  %v8010_v3 = vld [vmem:[%s11013_s4 + $0x2e0] ss:$52 sps:$4 sm:$0xff]   ;;  %v8017_v36 = vld [vmem:[%s11013_s4 + $0x1c] ss:$52 sps:$4 sm:$0xff]  }
 0x3ec   :  { %4321 = vst.msk [vmem:[#allocation4 + $0x264] sm:$0xf] %vm3645_vm3, %v4314_v57  ;;  %4776 = vperm.xlu1 %7813, %v4754_v45   ;;  %6070 = vmatprep.mubr.bf16.mxu0 %v7968_v52  ;;  %v8014_v45 = vld [vmem:[%s11013_s4 + $0x148] ss:$52 sps:$4 sm:$0xff]  }
 0x3ed   :  { %4811 = vperm.xlu0 %7812, %v4761_v35   ;;  %v8020_v35 = vld [vmem:[%s11013_s4 + $0x1b4] ss:$52 sps:$4 sm:$0xff]  }
 0x3ee   :  { %v4142_v1 = vpop.permute.xlu0 %4141  ;;  %v4264_v44 = vpop.permute.xlu1 %4263  ;;  %v7995_v6 = vld [vmem:[#allocation4 + $0x1d0] sm:$0xff]  }
 0x3ef   :  { %4149 = vst.msk [vmem:[#allocation4 + $0x184] sm:$0xf] %vm3645_vm3, %v4142_v1  ;;  %4271 = vst.msk [vmem:[#allocation4 + $0x224] sm:$0xf] %vm3645_vm3, %v4264_v44  ;;  %v8015_v1 = vld [vmem:[%s11013_s4 + $0x18] ss:$52 sps:$4 sm:$0xff]  }
 0x3f0   :  { %6136 = vmatmul.mubr.bf16.gmra.mxu1 %v7967_v9  ;;  %6696 = vperm.xlu1 %7813, %v6688_v31   ;;  %v8023_v44 = vld [vmem:[%s11013_s4 + $0x84] ss:$52 sps:$4 sm:$0xff]  }
 0x3f1   :  { %4801 = vperm.xlu0 %7812, %v4759_v27   ;;  %6143 = vmatprep.mubr.bf16.mxu1 %v7973_v62 }
 0x3f2   :  { %v4218_v30 = vpop.permute.xlu0 %4217  ;;  %v4302_v2 = vpop.permute.xlu1 %4301  ;;  %v7971_v4 = vld [vmem:[#allocation4 + $0x1f8] sm:$0xff]  }
 0x3f3   :  { %4224 = vst.msk [vmem:[#allocation4 + $0x1e8] sm:$0x3] %vm3855_vm4, %v4218_v30  ;;  %6071 = vmatmul.mubr.bf16.gmra.mxu0 %v7970_v20  ;;  %7542 = vmatprep.subr.bf16.mxu1 %v7971_v4  ;;  %v8022_v30 = vld [vmem:[%s11013_s4 + $0x1b0] ss:$52 sps:$4 sm:$0xff]  }
 0x3f4   :  { %4309 = vst.msk [vmem:[#allocation4 + $0x254] sm:$0xf] %vm3645_vm3, %v4302_v2  ;;  %7543 = vmatpush3.bf16.msra.mxu1 %v7972_v24  ;;  %6208 = vmatprep.mubr.bf16.mxu0 %v7980_v19  ;;  %v8026_v2 = vld [vmem:[%s11013_s4 + $0x21c] ss:$52 sps:$4 sm:$0xff]   ;;  %v8025_v24 = vld [vmem:[%s11013_s4 + $0x80] ss:$52 sps:$4 sm:$0xff]  }
 0x3f5   :  { %4791 = vperm.xlu0 %7812, %v4757_v18   ;;  %7544 = vmatprep.subr.bf16.mxu1 %v7975_v17 }
 0x3f6   :  { %v4324_v55 = vpop.permute.xlu0 %4323  ;;  %v4266_v48 = vpop.permute.xlu1 %4265  ;;  %v8011_v57 = vld [vmem:[#allocation4 + $0x180] sm:$0xff]  }
 0x3f7   :  { %4332 = vst.msk [vmem:[#allocation4 + $0x270] sm:$0xf] %vm3645_vm3, %v4324_v55  ;;  %v8031_v55 = vld [vmem:[%s11013_s4 + $0xec] ss:$52 sps:$4 sm:$0xff]  }
 0x3f8   :  { %4272 = vst.msk [vmem:[#allocation4 + $0x228] sm:$0x3] %vm3855_vm4, %v4266_v48  ;;  %6144 = vmatmul.mubr.bf16.gmra.mxu1 %v7976_v5  ;;  %v8028_v48 = vld [vmem:[%s11013_s4 + $0x218] ss:$52 sps:$4 sm:$0xff]  }
 0x3f9   :  { %4781 = vperm.xlu0 %7812, %v4755_v40   ;;  %7545 = vmatpush3.bf16.msra.mxu1 %v7977_v32  ;;  %v8037_v40 = vld [vmem:[%s11013_s4 + $0x284] ss:$52 sps:$4 sm:$0xff]  }
 0x3fa   :  { %v4206_v7 = vpop.permute.xlu0 %4205  ;;  %v4254_v61 = vpop.permute.xlu1 %4253  ;;  %v7981_v50 = vld [vmem:[#allocation4 + $0x1e8] sm:$0xff]   ;;  %6151 = vmatprep.mubr.bf16.mxu1 %v7983_v10 }
 0x3fb   :  { %4212 = vst.msk [vmem:[#allocation4 + $0x1d8] sm:$0x3] %vm3855_vm4, %v4206_v7  ;;  %4260 = vst.msk [vmem:[#allocation4 + $0x218] sm:$0x3] %vm3855_vm4, %v4254_v61  ;;  %6209 = vmatmul.mubr.bf16.vlgmr.msra.gmra.mxu0 %v7978_v28  ;;  %7546 = vmatprep.subr.bf16.mxu1 %v7981_v50  ;;  %v8034_v61 = vld [vmem:[%s11013_s4 + $0xe8] ss:$52 sps:$4 sm:$0xff]  }
 0x3fc   :  { %6216 = vmatprep.mubr.bf16.mxu0 %v7988_v23  ;;  %v8042_v50 = vld [vmem:[%s11013_s4 + $0x154] ss:$52 sps:$4 sm:$0xff]  }
 0x3fd   :  { %4771 = vperm.xlu0 %7812, %v4753_v34   ;;  %7547 = vmatpush3.bf16.msra.mxu1 %v7982_v43 }
 0x3fe   :  { %v4312_v63 = vpop.permute.xlu0 %4311  ;;  %v4328_v29 = vpop.permute.xlu1 %4327  ;;  %7548 = vmatprep.subr.bf16.mxu1 %v7985_v26  ;;  %v8003_v16 = vld [vmem:[#allocation4 + $0x270] sm:$0xff]  }
 0x3ff   :  { %4320 = vst.msk [vmem:[#allocation4 + $0x260] sm:$0xf] %vm3645_vm3, %v4312_v63  ;;  %v8030_v23 = vld [vmem:[#allocation4 + $0x228] sm:$0xff]   ;;  %v8039_v63 = vld [vmem:[%s11013_s4 + $0x280] ss:$52 sps:$4 sm:$0xff]  }
 0x400   :  { %4334 = vst.msk [vmem:[#allocation4 + $0x278] sm:$0x3] %vm3855_vm4, %v4328_v29  ;;  %6152 = vmatmul.mubr.bf16.gmra.mxu1 %v7986_v54  ;;  %v8048_v29 = vld [vmem:[%s11013_s4 + $0x2ec] ss:$52 sps:$4 sm:$0xff]  }
 0x401   :  { %6691 = vperm.xlu0 %7812, %v6687_v49   ;;  %7549 = vmatpush3.bf16.msra.mxu1 %v7987_v46 }
 0x402   :  { %v4262_v56 = vpop.permute.xlu0 %4261  ;;  %v4252_v8 = vpop.permute.xlu1 %4251  ;;  %v7991_v25 = vld [vmem:[#allocation4 + $0x1d8] sm:$0xff]   ;;  %6159 = vmatprep.mubr.bf16.mxu1 %v7993_v0 }
 0x403   :  { %4270 = vst.msk [vmem:[#allocation4 + $0x220] sm:$0xf] %vm3645_vm3, %v4262_v56  ;;  %4259 = vst.msk [vmem:[#allocation4 + $0x214] sm:$0xf] %vm3645_vm3, %v4252_v8  ;;  %6217 = vmatmul.mubr.bf16.gmra.mxu0 %v7990_v33  ;;  %7550 = vmatprep.subr.bf16.mxu1 %v7991_v25  ;;  %v8041_v33 = vld [vmem:[#allocation4 + $0x218] sm:$0xff]  }
 0x404   :  { %6224 = vmatprep.mubr.bf16.mxu0 %v8000_v11  ;;  %v8045_v56 = vld [vmem:[%s11013_s4 + $0x150] ss:$52 sps:$4 sm:$0xff]  }
 0x405   :  { %7551 = vmatpush3.bf16.msra.mxu1 %v7992_v53  ;;  %v8053_v8 = vld [vmem:[%s11013_s4 + $0x1bc] ss:$52 sps:$4 sm:$0xff]  }
 0x406   :  { %v4300_v12 = vpop.permute.xlu0 %4299  ;;  %v4242_v39 = vpop.permute.xlu1 %4241  ;;  %7552 = vmatprep.subr.bf16.mxu1 %v7995_v6  ;;  %v8033_v7 = vld [vmem:[#allocation4 + $0x260] sm:$0xff]  }
 0x407   :  { %v7997_v47 = vld [vmem:[#allocation4 + $0x278] sm:$0xff]   ;;  %4308 = vst.msk [vmem:[#allocation4 + $0x250] sm:$0xf] %vm3645_vm3, %v4300_v12 }
 0x408   :  { %4248 = vst.msk [vmem:[#allocation4 + $0x208] sm:$0x3] %vm3855_vm4, %v4242_v39  ;;  %7606 = vmatprep.subr.bf16.mxu0 %v7997_v47  ;;  %6160 = vmatmul.mubr.bf16.gmra.mxu1 %v7996_v37  ;;  %v8050_v12 = vld [vmem:[%s11013_s4 + $0x2e8] ss:$52 sps:$4 sm:$0xff]   ;;  %v8062_v39 = vld [vmem:[%s11013_s4 + $0x24] ss:$52 sps:$4 sm:$0xff]  }
 0x409   :  { %7607 = vmatpush3.bf16.msra.mxu0 %v7999_v38  ;;  %7553 = vmatpush3.bf16.msra.mxu1 %v7998_v21 }
 0x40a   :  { %v4250_v42 = vpop.permute.xlu0 %4249  ;;  %v4378_v58 = vpop.permute.xlu1 %4377  ;;  %7608 = vmatprep.subr.bf16.mxu0 %v8003_v16  ;;  %7554 = vmatprep.subr.bf16.mxu1 %v8002_v51  ;;  %v8036_v54 = vld [vmem:[#allocation4 + $0x220] sm:$0xff]  }
 0x40b   :  { %4258 = vst.msk [vmem:[#allocation4 + $0x210] sm:$0xf] %vm3645_vm3, %v4250_v42  ;;  %6167 = vmatprep.mubr.bf16.mxu1 %v8007_v22  ;;  %6225 = vmatmul.mubr.bf16.gmra.mxu0 %v8004_v14  ;;  %v8056_v14 = vld [vmem:[%s11013_s4 + $0x1b8] ss:$52 sps:$4 sm:$0xff]  }
 0x40c   :  { %4384 = vst.msk [vmem:[#allocation4 + $0x2b8] sm:$0x3] %vm3855_vm4, %v4378_v58  ;;  %6232 = vmatprep.mubr.bf16.mxu0 %v8012_v41  ;;  %v8065_v58 = vld [vmem:[%s11013_s4 + $0x224] ss:$52 sps:$4 sm:$0xff]  }
 0x40d   :  { %7609 = vmatpush3.bf16.msra.mxu0 %v8006_v60  ;;  %7555 = vmatpush3.bf16.msra.mxu1 %v8005_v15  ;;  %v8059_v15 = vld [vmem:[#allocation4 + $0x2a8] sm:$0xff]  }
 0x40e   :  { %v4290_v13 = vpop.permute.xlu1 %4289  ;;  %v4426_v52 = vpop.permute.xlu0 %4425  ;;  %7556 = vmatprep.subr.bf16.mxu1 %v8009_v59  ;;  %v8044_v11 = vld [vmem:[#allocation4 + $0x250] sm:$0xff]  }
 0x40f   :  { %4297 = vst.msk [vmem:[#allocation4 + $0x244] sm:$0xf] %vm3645_vm3, %v4290_v13  ;;  %v8052_v21 = vld [vmem:[#allocation4 + $0x208] sm:$0xff]   ;;  %v8060_v59 = vld [vmem:[%s11013_s4 + $0x20] ss:$52 sps:$4 sm:$0xff]  }
 0x410   :  { %4432 = vst.msk [vmem:[#allocation4 + $0x2f8] sm:$0x3] %vm3855_vm4, %v4426_v52  ;;  %6168 = vmatmul.mubr.bf16.gmra.mxu1 %v8010_v3  ;;  %v8071_v13 = vld [vmem:[%s11013_s4 + $0x8c] ss:$52 sps:$4 sm:$0xff]  }
 0x411   :  { %7557 = vmatpush3.bf16.msra.mxu1 %v8011_v57  ;;  %6305 = vmatprep.mubr.bf16.mxu1 %v8017_v36  ;;  %v8064_v57 = vld [vmem:[#allocation4 + $0x2a0] sm:$0xff]  }
 0x412   :  { %v4240_v9 = vpop.permute.xlu1 %4239  ;;  %v4288_v31 = vpop.permute.xlu0 %4287  ;;  %v8047_v37 = vld [vmem:[#allocation4 + $0x210] sm:$0xff]  }
 0x413   :  { %4247 = vst.msk [vmem:[#allocation4 + $0x204] sm:$0xf] %vm3645_vm3, %v4240_v9  ;;  %4296 = vst.msk [vmem:[#allocation4 + $0x240] sm:$0xf] %vm3645_vm3, %v4288_v31  ;;  %6233 = vmatmul.mubr.bf16.gmra.mxu0 %v8014_v45  ;;  %v8019_v19 = vld [vmem:[#allocation4 + $0x2b8] sm:$0xff]  }
 0x414   :  { %6240 = vmatprep.mubr.bf16.mxu0 %v8020_v35  ;;  %v8068_v35 = vld [vmem:[%s11013_s4 + $0x220] ss:$52 sps:$4 sm:$0xff]  }
 0x415   :  { %v8073_v9 = vld [vmem:[%s11013_s4 + $0x28c] ss:$52 sps:$4 sm:$0xff]  }
 0x416   :  { %v4238_v62 = vpop.permute.xlu0 %4237  ;;  %v4424_v27 = vpop.permute.xlu1 %4423 }
 0x417   :  { %v8018_v20 = vld [vmem:[#allocation4 + $0x2f8] sm:$0xff]   ;;  %4246 = vst.msk [vmem:[#allocation4 + $0x200] sm:$0xf] %vm3645_vm3, %v4238_v62  ;;  %4431 = vst.msk [vmem:[#allocation4 + $0x2f4] sm:$0xf] %vm3645_vm3, %v4424_v27 }
 0x418   :  { %7670 = vmatprep.subr.bf16.mxu1 %v8018_v20  ;;  %6306 = vmatmul.mubr.bf16.vlgmr.msra.gmra.mxu1 %v8015_v1  ;;  %v8080_v27 = vld [vmem:[%s11013_s4 + $0xf4] ss:$52 sps:$4 sm:$0xff]  }
 0x419   :  { %7671 = vmatpush3.bf16.msra.mxu1 %v8019_v19  ;;  %6313 = vmatprep.mubr.bf16.mxu1 %v8023_v44  ;;  %v8069_v44 = vld [vmem:[%s11013_s4 + $0x88] ss:$52 sps:$4 sm:$0xff]  }
 0x41a   :  { %v4316_v4 = vpop.permute.xlu0 %4315  ;;  %v4376_v18 = vpop.permute.xlu1 %4375  ;;  %v8055_v16 = vld [vmem:[#allocation4 + $0x240] sm:$0xff]   ;;  %v8075_v19 = vld [vmem:[%s11013_s4 + $0x288] ss:$52 sps:$4 sm:$0xff]  }
 0x41b   :  { %4322 = vst.msk [vmem:[#allocation4 + $0x268] sm:$0x3] %vm3855_vm4, %v4316_v4  ;;  %6241 = vmatmul.mubr.bf16.gmra.mxu0 %v8022_v30  ;;  %v8085_v30 = vld [vmem:[%s11013_s4 + $0x2f4] ss:$52 sps:$4 sm:$0xff]  }
 0x41c   :  { %4383 = vst.msk [vmem:[#allocation4 + $0x2b4] sm:$0xf] %vm3645_vm3, %v4376_v18  ;;  %6248 = vmatprep.mubr.bf16.mxu0 %v8026_v2 }
 0x41e   :  { %v4410_v17 = vpop.permute.xlu1 %4409  ;;  %v4422_v5 = vpop.permute.xlu0 %4421  ;;  %v8058_v60 = vld [vmem:[#allocation4 + $0x200] sm:$0xff]  }
 0x41f   :  { %4418 = vst.msk [vmem:[#allocation4 + $0x2e0] sm:$0xf] %vm3645_vm3, %v4410_v17  ;;  %4430 = vst.msk [vmem:[#allocation4 + $0x2f0] sm:$0xf] %vm3645_vm3, %v4422_v5  ;;  %v8090_v17 = vld [vmem:[%s11013_s4 + $0x15c] ss:$52 sps:$4 sm:$0xff]  }
 0x420   :  { %6314 = vmatmul.mubr.bf16.gmra.mxu1 %v8025_v24  ;;  %v8078_v24 = vld [vmem:[%s11013_s4 + $0xf0] ss:$52 sps:$4 sm:$0xff]  }
 0x421   :  { %6321 = vmatprep.mubr.bf16.mxu1 %v8031_v55 }
 0x422   :  { %v4402_v10 = vpop.permute.xlu1 %4401  ;;  %v4304_v32 = vpop.permute.xlu0 %4303  ;;  %v8029_v28 = vld [vmem:[#allocation4 + $0x268] sm:$0xff]  }
 0x423   :  { %4408 = vst.msk [vmem:[#allocation4 + $0x2d8] sm:$0x3] %vm3855_vm4, %v4402_v10  ;;  %4310 = vst.msk [vmem:[#allocation4 + $0x258] sm:$0x3] %vm3855_vm4, %v4304_v32  ;;  %6249 = vmatmul.mubr.bf16.gmra.mxu0 %v8028_v48  ;;  %7610 = vmatprep.subr.bf16.mxu0 %v8029_v28  ;;  %v8094_v10 = vld [vmem:[%s11013_s4 + $0x2c] ss:$52 sps:$4 sm:$0xff]  }
 0x424   :  { %7611 = vmatpush3.bf16.msra.mxu0 %v8030_v23  ;;  %6256 = vmatprep.mubr.bf16.mxu0 %v8037_v40  ;;  %v8083_v40 = vld [vmem:[%s11013_s4 + $0x2f0] ss:$52 sps:$4 sm:$0xff]  }
 0x425   :  { %7612 = vmatprep.subr.bf16.mxu0 %v8033_v7  ;;  %v8088_v7 = vld [vmem:[%s11013_s4 + $0x158] ss:$52 sps:$4 sm:$0xff]  }
 0x426   :  { %v4398_v34 = vpop.permute.xlu1 %4397  ;;  %v4374_v43 = vpop.permute.xlu0 %4373  ;;  %v8035_v26 = vld [vmem:[#allocation4 + $0x2f0] sm:$0xff]  }
 0x427   :  { %4406 = vst.msk [vmem:[#allocation4 + $0x2d0] sm:$0xf] %vm3645_vm3, %v4398_v34  ;;  %4382 = vst.msk [vmem:[#allocation4 + $0x2b0] sm:$0xf] %vm3645_vm3, %v4374_v43  ;;  %7672 = vmatprep.subr.bf16.mxu1 %v8035_v26  ;;  %v8092_v34 = vld [vmem:[%s11013_s4 + $0x28] ss:$52 sps:$4 sm:$0xff]  }
 0x428   :  { %6322 = vmatmul.mubr.bf16.gmra.mxu1 %v8034_v61  ;;  %7613 = vmatpush3.bf16.msra.mxu0 %v8036_v54  ;;  %v8098_v61 = vld [vmem:[%s11013_s4 + $0x1c4] ss:$52 sps:$4 sm:$0xff]   ;;  %v8101_v43 = vld [vmem:[%s11013_s4 + $0x94] ss:$52 sps:$4 sm:$0xff]  }
 0x429   :  { %6329 = vmatprep.mubr.bf16.mxu1 %v8042_v50  ;;  %v8096_v54 = vld [vmem:[%s11013_s4 + $0x1c0] ss:$52 sps:$4 sm:$0xff]  }
 0x42a   :  { %v4348_v49 = vpop.permute.xlu1 %4347  ;;  %v4292_v0 = vpop.permute.xlu0 %4291  ;;  %v8040_v46 = vld [vmem:[#allocation4 + $0x258] sm:$0xff]  }
 0x42b   :  { %4356 = vst.msk [vmem:[#allocation4 + $0x290] sm:$0xf] %vm3645_vm3, %v4348_v49  ;;  %6257 = vmatmul.mubr.bf16.gmra.mxu0 %v8039_v63  ;;  %7614 = vmatprep.subr.bf16.mxu0 %v8040_v46  ;;  %v8067_v45 = vld [vmem:[#allocation4 + $0x2d8] sm:$0xff]   ;;  %v8107_v49 = vld [vmem:[%s11013_s4 + $0xfc] ss:$52 sps:$4 sm:$0xff]  }
 0x42c   :  { %4298 = vst.msk [vmem:[#allocation4 + $0x248] sm:$0x3] %vm3855_vm4, %v4292_v0  ;;  %7615 = vmatpush3.bf16.msra.mxu0 %v8041_v33  ;;  %6264 = vmatprep.mubr.bf16.mxu0 %v8048_v29  ;;  %v8104_v63 = vld [vmem:[%s11013_s4 + $0x22c] ss:$52 sps:$4 sm:$0xff]   ;;  %v8099_v29 = vld [vmem:[%s11013_s4 + $0x90] ss:$52 sps:$4 sm:$0xff]  }
 0x42d   :  { %7616 = vmatprep.subr.bf16.mxu0 %v8044_v11  ;;  %v8102_v0 = vld [vmem:[%s11013_s4 + $0x228] ss:$52 sps:$4 sm:$0xff]   ;;  %v8105_v33 = vld [vmem:[%s11013_s4 + $0xf8] ss:$52 sps:$4 sm:$0xff]  }
 0x42e   :  { %v4390_v25 = vpop.permute.xlu1 %4389  ;;  %v8046_v53 = vld [vmem:[#allocation4 + $0x2b0] sm:$0xff]   ;;  %v4414_v6 = vpop.permute.xlu0 %4413  ;;  %v8110_v46 = vld [vmem:[%s11013_s4 + $0x294] ss:$52 sps:$4 sm:$0xff]  }
 0x42f   :  { %4396 = vst.msk [vmem:[#allocation4 + $0x2c8] sm:$0x3] %vm3855_vm4, %v4390_v25  ;;  %4420 = vst.msk [vmem:[#allocation4 + $0x2e8] sm:$0x3] %vm3855_vm4, %v4414_v6  ;;  %7673 = vmatpush3.bf16.msra.mxu1 %v8046_v53  ;;  %v8113_v11 = vld [vmem:[%s11013_s4 + $0x164] ss:$52 sps:$4 sm:$0xff]  }
 0x430   :  { %6330 = vmatmul.mubr.bf16.gmra.mxu1 %v8045_v56  ;;  %7617 = vmatpush3.bf16.msra.mxu0 %v8047_v37  ;;  %v8108_v56 = vld [vmem:[%s11013_s4 + $0x290] ss:$52 sps:$4 sm:$0xff]   ;;  %v8111_v25 = vld [vmem:[%s11013_s4 + $0x160] ss:$52 sps:$4 sm:$0xff]   ;;  %v8114_v37 = vld [vmem:[%s11013_s4 + $0x2f8] ss:$52 sps:$4 sm:$0xff]  }
 0x431   :  { %6337 = vmatprep.mubr.bf16.mxu1 %v8053_v8  ;;  %v8116_v8 = vld [vmem:[%s11013_s4 + $0x2fc] ss:$52 sps:$4 sm:$0xff]   ;;  %v8119_v53 = vld [vmem:[%s11013_s4 + $0x1cc] ss:$52 sps:$4 sm:$0xff]  }
 0x432   :  { %v4386_v47 = vpop.permute.xlu1 %4385  ;;  %v4412_v22 = vpop.permute.xlu0 %4411 }
 0x433   :  { %v8051_v38 = vld [vmem:[#allocation4 + $0x248] sm:$0xff]   ;;  %4394 = vst.msk [vmem:[#allocation4 + $0x2c0] sm:$0xf] %vm3645_vm3, %v4386_v47  ;;  %4419 = vst.msk [vmem:[#allocation4 + $0x2e4] sm:$0xf] %vm3645_vm3, %v4412_v22  ;;  %6265 = vmatmul.mubr.bf16.gmra.mxu0 %v8050_v12 }
 0x434   :  { %7618 = vmatprep.subr.bf16.mxu0 %v8051_v38  ;;  %6402 = vmatprep.mubr.bf16.mxu0 %v8062_v39  ;;  %v8120_v12 = vld [vmem:[%s11013_s4 + $0x30] ss:$52 sps:$4 sm:$0xff]   ;;  %v8117_v47 = vld [vmem:[%s11013_s4 + $0x1c8] ss:$52 sps:$4 sm:$0xff]  }
 0x435   :  { %7619 = vmatpush3.bf16.msra.mxu0 %v8052_v21  ;;  %v8124_v38 = vld [vmem:[%s11013_s4 + $0x234] ss:$52 sps:$4 sm:$0xff]   ;;  %v8121_v21 = vld [vmem:[%s11013_s4 + $0x98] ss:$52 sps:$4 sm:$0xff]  }
 0x436   :  { %v4336_v51 = vpop.permute.xlu1 %4335  ;;  %7620 = vmatprep.subr.bf16.mxu0 %v8055_v16  ;;  %v4400_v41 = vpop.permute.xlu0 %4399  ;;  %v8057_v42 = vld [vmem:[#allocation4 + $0x2e8] sm:$0xff]   ;;  %v8125_v16 = vld [vmem:[%s11013_s4 + $0x100] ss:$52 sps:$4 sm:$0xff]  }
 0x437   :  { %4344 = vst.msk [vmem:[#allocation4 + $0x280] sm:$0xf] %vm3645_vm3, %v4336_v51  ;;  %4407 = vst.msk [vmem:[#allocation4 + $0x2d4] sm:$0xf] %vm3645_vm3, %v4400_v41  ;;  %7674 = vmatprep.subr.bf16.mxu1 %v8057_v42  ;;  %v8082_v48 = vld [vmem:[#allocation4 + $0x2c8] sm:$0xff]  }
 0x438   :  { %6338 = vmatmul.mubr.bf16.gmra.mxu1 %v8056_v14  ;;  %v8122_v42 = vld [vmem:[%s11013_s4 + $0x230] ss:$52 sps:$4 sm:$0xff]  }
 0x439   :  { %7621 = vmatpush3.bf16.msra.mxu0 %v8058_v60  ;;  %7675 = vmatpush3.bf16.msra.mxu1 %v8059_v15  ;;  %v8129_v60 = vld [vmem:[%s11013_s4 + $0x29c] ss:$52 sps:$4 sm:$0xff]  }
 0x43a   :  { %v4438_v3 = vpop.permute.xlu1 %4437  ;;  %v4350_v52 = vpop.permute.xlu0 %4349  ;;  %v8063_v36 = vld [vmem:[#allocation4 + $0x2e0] sm:$0xff]   ;;  %6345 = vmatprep.mubr.bf16.mxu1 %v8065_v58 }
 0x43b   :  { %4444 = vst.msk [vmem:[#allocation4 + $0x308] sm:$0x3] %vm3855_vm4, %v4438_v3  ;;  %7676 = vmatprep.subr.bf16.mxu1 %v8063_v36  ;;  %v8130_v36 = vld [vmem:[%s11013_s4 + $0x1d0] ss:$52 sps:$4 sm:$0xff]  }
 0x43c   :  { %4357 = vst.msk [vmem:[#allocation4 + $0x294] sm:$0xf] %vm3645_vm3, %v4350_v52  ;;  %6403 = vmatmul.mubr.bf16.vlgmr.msra.gmra.mxu0 %v8060_v59 }
 0x43d   :  { %7677 = vmatpush3.bf16.msra.mxu1 %v8064_v57  ;;  %6410 = vmatprep.mubr.bf16.mxu0 %v8071_v13  ;;  %v8126_v13 = vld [vmem:[%s11013_s4 + $0x168] ss:$52 sps:$4 sm:$0xff]  }
 0x43e   :  { %v4436_v31 = vpop.permute.xlu1 %4435  ;;  %v4352_v1 = vpop.permute.xlu0 %4351  ;;  %7678 = vmatprep.subr.bf16.mxu1 %v8067_v45  ;;  %v8077_v18 = vld [vmem:[#allocation4 + $0x2d0] sm:$0xff]  }
 0x43f   :  { %4443 = vst.msk [vmem:[#allocation4 + $0x304] sm:$0xf] %vm3645_vm3, %v4436_v31 }
 0x440   :  { %4358 = vst.msk [vmem:[#allocation4 + $0x298] sm:$0x3] %vm3855_vm4, %v4352_v1  ;;  %6346 = vmatmul.mubr.bf16.gmra.mxu1 %v8068_v35  ;;  %v8134_v1 = vld [vmem:[%s11013_s4 + $0x304] ss:$52 sps:$4 sm:$0xff]  }
 0x441   :  { %6353 = vmatprep.mubr.bf16.mxu1 %v8073_v9  ;;  %v8127_v9 = vld [vmem:[%s11013_s4 + $0x298] ss:$52 sps:$4 sm:$0xff]  }
 0x442   :  { %v8072_v62 = vld [vmem:[#allocation4 + $0x308] sm:$0xff]   ;;  %v4388_v20 = vpop.permute.xlu0 %4387 }
 0x443   :  { %4395 = vst.msk [vmem:[#allocation4 + $0x2c4] sm:$0xf] %vm3645_vm3, %v4388_v20  ;;  %7753 = vmatprep.subr.bf16.mxu0 %v8072_v62  ;;  %v8081_v55 = vld [vmem:[#allocation4 + $0x290] sm:$0xff]  }
 0x444   :  { %6411 = vmatmul.mubr.bf16.gmra.mxu0 %v8069_v44 }
 0x445   :  { %7754 = vmatpush3.bf16.msra.mxu0 %v8072_v62  ;;  %6418 = vmatprep.mubr.bf16.mxu0 %v8080_v27 }
 0x446   :  { %v4340_v2 = vpop.permute.xlu0 %4339 }
 0x447   :  { %v8076_v4 = vld [vmem:[#allocation4 + $0x298] sm:$0xff]   ;;  %4346 = vst.msk [vmem:[#allocation4 + $0x288] sm:$0x3] %vm3855_vm4, %v4340_v2  ;;  %v8135_v2 = vld [vmem:[%s11013_s4 + $0x2a0] ss:$52 sps:$4 sm:$0xff]  }
 0x448   :  { %6354 = vmatmul.mubr.bf16.gmra.mxu1 %v8075_v19  ;;  %v8131_v19 = vld [vmem:[%s11013_s4 + $0x238] ss:$52 sps:$4 sm:$0xff]  }
 0x449   :  { %7679 = vmatpush3.bf16.msra.mxu1 %v8076_v4  ;;  %6361 = vmatprep.mubr.bf16.mxu1 %v8085_v30 }
 0x44a   :  { %7680 = vmatprep.subr.bf16.mxu1 %v8077_v18  ;;  %v8087_v23 = vld [vmem:[#allocation4 + $0x2c0] sm:$0xff]  }
 0x44b   :  { %v4338_v5 = vpop.permute.xlu0 %4337  ;;  %v10748_v39 = vpop.permute.xlu1 %4846 }
 0x44c   :  { %4345 = vst.msk [vmem:[#allocation4 + $0x284] sm:$0xf] %vm3645_vm3, %v4338_v5  ;;  %6419 = vmatmul.mubr.bf16.gmra.mxu0 %v8078_v24 }
 0x44d   :  { %7681 = vmatpush3.bf16.msra.mxu1 %v8081_v55  ;;  %6426 = vmatprep.mubr.bf16.mxu0 %v8090_v17  ;;  %v8132_v17 = vld [vmem:[%s11013_s4 + $0x300] ss:$52 sps:$4 sm:$0xff]  }
 0x44e   :  { %7682 = vmatprep.subr.bf16.mxu1 %v8082_v48  ;;  %v8086_v32 = vld [vmem:[#allocation4 + $0x288] sm:$0xff]  }
 0x44f   :  { %v4434_v28 = vpop.permute.xlu0 %4433  ;;  %v10765_v14 = vpop.permute.xlu1 %4836 }
 0x450   :  { %4442 = vst.msk [vmem:[#allocation4 + $0x300] sm:$0xf] %vm3645_vm3, %v4434_v28  ;;  %6362 = vmatmul.mubr.bf16.gmra.mxu1 %v8083_v40 }
 0x451   :  { %7683 = vmatpush3.bf16.msra.mxu1 %v8086_v32  ;;  %6499 = vmatprep.mubr.bf16.mxu1 %v8094_v10  ;;  %v8136_v10 = vld [vmem:[%s11013_s4 + $0x308] ss:$52 sps:$4 sm:$0xff]  }
 0x452   :  { %7684 = vmatprep.subr.bf16.mxu1 %v8087_v23 }
 0x453   :  { %v8091_v50 = vld [vmem:[#allocation4 + $0x280] sm:$0xff]   ;;  %v10777_v3 = vpop.permute.xlu1 %4826 }
 0x454   :  { %6427 = vmatmul.mubr.bf16.gmra.mxu0 %v8088_v7 }
 0x455   :  { %7685 = vmatpush3.bf16.msra.mxu1 %v8091_v50  ;;  %6434 = vmatprep.mubr.bf16.mxu0 %v8098_v61 }
 0x457   :  { %v8095_v26 = vld [vmem:[#allocation4 + $0x300] sm:$0xff]   ;;  %v10795_v44 = vpop.permute.xlu1 %4816 }
 0x458   :  { %6500 = vmatmul.mubr.bf16.vlgmr.msra.gmra.mxu1 %v8092_v34  ;;  %7755 = vmatprep.subr.bf16.mxu0 %v8095_v26 }
 0x459   :  { %6507 = vmatprep.mubr.bf16.mxu1 %v8101_v43  ;;  %7756 = vmatpush3.bf16.msra.mxu0 %v8095_v26 }
 0x45b   :  { %v10805_v24 = vpop.permute.xlu1 %4806 }
 0x45c   :  { %6435 = vmatmul.mubr.bf16.gmra.mxu0 %v8096_v54  ;;  %v10740_v6 = vpop.permute.xlu0 %4841 }
 0x45d   :  { %6442 = vmatprep.mubr.bf16.mxu0 %v8104_v63 }
 0x45f   :  { %v4797_v28 = vpop.permute.xlu1 %4796 }
 0x460   :  { %6508 = vmatmul.mubr.bf16.gmra.mxu1 %v8099_v29  ;;  %v10757_v22 = vpop.permute.xlu0 %4831 }
 0x461   :  { %6515 = vmatprep.mubr.bf16.mxu1 %v8107_v49 }
 0x463   :  { %v4787_v26 = vpop.permute.xlu1 %4786 }
 0x464   :  { %6443 = vmatmul.mubr.bf16.gmra.mxu0 %v8102_v0  ;;  %v10767_v41 = vpop.permute.xlu0 %4821 }
 0x465   :  { %6450 = vmatprep.mubr.bf16.mxu0 %v8110_v46 }
 0x468   :  { %6516 = vmatmul.mubr.bf16.gmra.mxu1 %v8105_v33  ;;  %v10785_v57 = vpop.permute.xlu0 %4811 }
 0x469   :  { %6523 = vmatprep.mubr.bf16.mxu1 %v8113_v11 }
 0x46c   :  { %6451 = vmatmul.mubr.bf16.gmra.mxu0 %v8108_v56  ;;  %v10797_v20 = vpop.permute.xlu0 %4801 }
 0x46d   :  { %6458 = vmatprep.mubr.bf16.mxu0 %v8116_v8 }
 0x470   :  { %6524 = vmatmul.mubr.bf16.gmra.mxu1 %v8111_v25  ;;  %v4792_v55 = vpop.permute.xlu0 %4791 }
 0x471   :  { %6531 = vmatprep.mubr.bf16.mxu1 %v8119_v53  ;;  %v4777_v53 = vpop.permute.xlu1 %4776 }
 0x474   :  { %6459 = vmatmul.mubr.bf16.gmra.mxu0 %v8114_v37  ;;  %v4782_v61 = vpop.permute.xlu0 %4781 }
 0x475   :  { %7757 = vmatprep.mubr.msk.bf16.mxu0 %vm5957_vm5, %v8120_v12 }
 0x478   :  { %6532 = vmatmul.mubr.bf16.gmra.mxu1 %v8117_v47  ;;  %v4772_v29 = vpop.permute.xlu0 %4771 }
 0x479   :  { %6539 = vmatprep.mubr.bf16.mxu1 %v8124_v38 }
 0x47a   :  { %v7366_v51 = vpop.f32.mrf.mxu0 }
 0x47c   :  { %7758 = vmatmul.mubr.msk.bf16.vlgmr.msra.gmra.mxu0 %vm5957_vm5, %v8121_v21  ;;  %v7367_v58 = vpop.f32.mrf.mxu0 }
 0x47d   :  { %7761 = vmatprep.mubr.msk.bf16.mxu0 %vm5957_vm5, %v8125_v16  ;;  %v7368_v15 = vadd.f32 %v7367_v58, %v7366_v51 }
 0x47e   :  { %v7369_v59 = vpop.f32.mrf.mxu0 }
 0x47f   :  { %v6017_v46 = vadd.f32 %v7368_v15, %v4772_v29 }
 0x480   :  { %6540 = vmatmul.mubr.bf16.gmra.mxu1 %v8122_v42  ;;  %v7370_v52 = vpop.f32.mrf.mxu0 }
 0x481   :  { %6547 = vmatprep.mubr.bf16.mxu1 %v8129_v60  ;;  %v7371_v45 = vadd.f32 %v7370_v52, %v7369_v59 }
 0x482   :  { %v7372_v35 = vpop.f32.mrf.mxu0 }
 0x483   :  { %v6020_v47 = vadd.f32 %v7371_v45, %v4777_v53 }
 0x484   :  { %7762 = vmatmul.mubr.msk.bf16.gmra.mxu0 %vm5957_vm5, %v8126_v13  ;;  %v7373_v31 = vpop.f32.mrf.mxu0 }
 0x485   :  { %7765 = vmatprep.mubr.msk.bf16.mxu0 %vm5957_vm5, %v8130_v36  ;;  %v7374_v62 = vadd.f32 %v7373_v31, %v7372_v35 }
 0x486   :  { %v7375_v27 = vpop.f32.mrf.mxu0 }
 0x487   :  { %v6025_v59 = vadd.f32 %v7374_v62, %v4782_v61 }
 0x488   :  { %6548 = vmatmul.mubr.bf16.gmra.mxu1 %v8127_v9  ;;  %v7376_v30 = vpop.f32.mrf.mxu0 }
 0x489   :  { %6555 = vmatprep.mubr.bf16.mxu1 %v8134_v1  ;;  %v7377_v4 = vadd.f32 %v7376_v30, %v7375_v27 }
 0x48b   :  { %v7378_v18 = vpop.f32.mrf.mxu0  ;;  %v6028_v1 = vadd.f32 %v7377_v4, %v4787_v26 }
 0x48c   :  { %7766 = vmatmul.mubr.msk.bf16.gmra.mxu0 %vm5957_vm5, %v8131_v19 }
 0x48d   :  { %v7379_v5 = vpop.f32.mrf.mxu0  ;;  %7769 = vmatprep.mubr.msk.bf16.mxu0 %vm5957_vm5, %v8135_v2 }
 0x48e   :  { %v7380_v48 = vadd.f32 %v7379_v5, %v7378_v18 }
 0x48f   :  { %v7381_v40 = vpop.f32.mrf.mxu0 }
 0x490   :  { %6556 = vmatmul.mubr.bf16.gmra.mxu1 %v8132_v17  ;;  %v6033_v5 = vadd.f32 %v7380_v48, %v4792_v55 }
 0x491   :  { %v7382_v32 = vpop.f32.mrf.mxu0 }
 0x492   :  { %v7383_v23 = vadd.f32 %v7382_v32, %v7381_v40 }
 0x493   :  { %v7384_v7 = vpop.f32.mrf.mxu0 }
 0x494   :  { %7770 = vmatmul.mubr.msk.bf16.gmra.mxu0 %vm5957_vm5, %v8136_v10 }
 0x495   :  { %v7385_v50 = vpop.f32.mrf.mxu0 }
 0x496   :  { %v7386_v34 = vadd.f32 %v7385_v50, %v7384_v7 }
 0x497   :  { %v7387_v43 = vpop.f32.mrf.mxu0 }
 0x498   :  { %v7430_v54 = vpop.f32.mrf.mxu1 }
 0x499   :  { %v7388_v63 = vpop.f32.mrf.mxu0 }
 0x49a   :  { %v7389_v49 = vadd.f32 %v7388_v63, %v7387_v43  ;;  %v7431_v0 = vpop.f32.mrf.mxu1  ;;  %v6036_v43 = vadd.f32 %v7383_v23, %v4797_v28 }
 0x49b   :  { %v7432_v33 = vadd.f32 %v7431_v0, %v7430_v54  ;;  %v7390_v11 = vpop.f32.mrf.mxu0 }
 0x49c   :  { %v7433_v56 = vpop.f32.mrf.mxu1  ;;  %v6044_v28 = vadd.f32 %v7389_v49, %v10805_v24 }
 0x49d   :  { %v10816_v8 = vadd.f32 %v7432_v33, %v6017_v46  ;;  %v7391_v25 = vpop.f32.mrf.mxu0  ;;  %v6041_v33 = vadd.f32 %v7386_v34, %v10797_v20 }
 0x49e   :  { %v7392_v37 = vadd.f32 %v7391_v25, %v7390_v11  ;;  %v7434_v12 = vpop.f32.mrf.mxu1 }
 0x49f   :  { %v7435_v38 = vadd.f32 %v7434_v12, %v7433_v56  ;;  %v7393_v21 = vpop.f32.mrf.mxu0 }
 0x4a0   :  { %v7436_v16 = vpop.f32.mrf.mxu1  ;;  %v6049_v34 = vadd.f32 %v7392_v37, %v10785_v57 }
 0x4a1   :  { %v10818_v51 = vadd.f32 %v7435_v38, %v6020_v47  ;;  %v7394_v42 = vpop.f32.mrf.mxu0 }
 0x4a2   :  { %v7395_v58 = vadd.f32 %v7394_v42, %v7393_v21  ;;  %v7437_v60 = vpop.f32.mrf.mxu1 }
 0x4a3   :  { %v7438_v15 = vadd.f32 %v7437_v60, %v7436_v16  ;;  %v7396_v13 = vpop.f32.mrf.mxu0 }
 0x4a4   :  { %v7439_v52 = vpop.f32.mrf.mxu1  ;;  %v6052_v24 = vadd.f32 %v7395_v58, %v10795_v44 }
 0x4a5   :  { %v10820_v36 = vadd.f32 %v7438_v15, %v6025_v59  ;;  %v7397_v35 = vpop.f32.mrf.mxu0 }
 0x4a6   :  { %v7398_v9 = vadd.f32 %v7397_v35, %v7396_v13  ;;  %v7440_v31 = vpop.f32.mrf.mxu1 }
 0x4a7   :  { %v7441_v27 = vadd.f32 %v7440_v31, %v7439_v52  ;;  %v7399_v45 = vpop.f32.mrf.mxu0 }
 0x4a8   :  { %v7442_v19 = vpop.f32.mrf.mxu1 }
 0x4a9   :  { %v10822_v30 = vadd.f32 %v7441_v27, %v6028_v1  ;;  %v7400_v2 = vpop.f32.mrf.mxu0 }
 0x4aa   :  { %v7401_v18 = vadd.f32 %v7400_v2, %v7399_v45  ;;  %v7443_v17 = vpop.f32.mrf.mxu1 }
 0x4ab   :  { %v7444_v40 = vadd.f32 %v7443_v17, %v7442_v19  ;;  %v7402_v62 = vpop.f32.mrf.mxu0  ;;  %v6057_v17 = vadd.f32 %v7398_v9, %v10767_v41 }
 0x4ac   :  { %v7445_v10 = vpop.f32.mrf.mxu1 }
 0x4ad   :  { %v10824_v32 = vadd.f32 %v7444_v40, %v6033_v5  ;;  %v7403_v7 = vpop.f32.mrf.mxu0 }
 0x4ae   :  { %v7404_v61 = vadd.f32 %v7403_v7, %v7402_v62  ;;  %v7446_v50 = vpop.f32.mrf.mxu1 }
 0x4af   :  { %v7447_v54 = vadd.f32 %v7446_v50, %v7445_v10  ;;  %v7405_v4 = vpop.f32.mrf.mxu0  ;;  %v6060_v50 = vadd.f32 %v7401_v18, %v10777_v3 }
 0x4b0   :  { %v7448_v26 = vpop.f32.mrf.mxu1 }
 0x4b1   :  { %v10826_v63 = vadd.f32 %v7447_v54, %v6036_v43  ;;  %v7406_v29 = vpop.f32.mrf.mxu0 }
 0x4b2   :  { %v7407_v0 = vadd.f32 %v7406_v29, %v7405_v4  ;;  %v7449_v46 = vpop.f32.mrf.mxu1 }
 0x4b3   :  { %v7450_v55 = vadd.f32 %v7449_v46, %v7448_v26  ;;  %v7408_v48 = vpop.f32.mrf.mxu0  ;;  %v6065_v46 = vadd.f32 %v7404_v61, %v10757_v22 }
 0x4b4   :  { %v7451_v11 = vpop.f32.mrf.mxu1 }
 0x4b5   :  { %v10829_v56 = vadd.f32 %v7450_v55, %v6041_v33  ;;  %v7409_v25 = vpop.f32.mrf.mxu0 }
 0x4b6   :  { %v10831_v53 = vadd.f32 %v7409_v25, %v7408_v48  ;;  %v7452_v12 = vpop.f32.mrf.mxu1 }
 0x4b7   :  { %v7453_v23 = vadd.f32 %v7452_v12, %v7451_v11  ;;  %v7411_v47 = vpop.f32.mrf.mxu0  ;;  %v6068_v12 = vadd.f32 %v7407_v0, %v10765_v14 }
 0x4b8   :  { %v7454_v38 = vpop.f32.mrf.mxu1 }
 0x4b9   :  { %v10834_v21 = vadd.f32 %v7453_v23, %v6044_v28  ;;  %v7412_v16 = vpop.f32.mrf.mxu0 }
 0x4ba   :  { %v10836_v42 = vadd.f32 %v7412_v16, %v7411_v47  ;;  %v7455_v20 = vpop.f32.mrf.mxu1 }
 0x4bb   :  { %v7456_v60 = vadd.f32 %v7455_v20, %v7454_v38  ;;  %v7494_v59 = vpop.f32.mrf.mxu0 }
 0x4bc   :  { %v7457_v15 = vpop.f32.mrf.mxu1 }
 0x4bd   :  { %v10839_v13 = vadd.f32 %v7456_v60, %v6049_v34  ;;  %v7495_v52 = vpop.f32.mrf.mxu0 }
 0x4be   :  { %v7458_v35 = vpop.f32.mrf.mxu1  ;;  %v7496_v31 = vadd.f32 %v7495_v52, %v7494_v59 }
 0x4bf   :  { %v7459_v49 = vadd.f32 %v7458_v35, %v7457_v15  ;;  %v7497_v1 = vpop.f32.mrf.mxu0 }
 0x4c0   :  { %v10843_v27 = vadd.f32 %v7496_v31, %v10816_v8  ;;  %v7460_v45 = vpop.f32.mrf.mxu1 }
 0x4c1   :  { %v10845_v19 = vadd.f32 %v7459_v49, %v6052_v24  ;;  %v7498_v2 = vpop.f32.mrf.mxu0 }
 0x4c2   :  { %v7461_v57 = vpop.f32.mrf.mxu1  ;;  %v7499_v37 = vadd.f32 %v7498_v2, %v7497_v1 }
 0x4c3   :  { %v7462_v5 = vadd.f32 %v7461_v57, %v7460_v45  ;;  %v7500_v40 = vpop.f32.mrf.mxu0 }
 0x4c4   :  { %v10849_v62 = vadd.f32 %v7499_v37, %v10818_v51  ;;  %v7463_v10 = vpop.f32.mrf.mxu1 }
 0x4c5   :  { %v10851_v44 = vadd.f32 %v7462_v5, %v6057_v17  ;;  %v7501_v58 = vpop.f32.mrf.mxu0 }
 0x4c6   :  { %v7464_v7 = vpop.f32.mrf.mxu1  ;;  %v7502_v8 = vadd.f32 %v7501_v58, %v7500_v40 }
 0x4c7   :  { %v7465_v43 = vadd.f32 %v7464_v7, %v7463_v10  ;;  %v7503_v54 = vpop.f32.mrf.mxu0 }
 0x4c8   :  { %v10855_v4 = vadd.f32 %v7502_v8, %v10820_v36  ;;  %v7466_v26 = vpop.f32.mrf.mxu1  ;;  %v8161_v8 = vmov 0.0  }
 0x4c9   :  { %v10857_v41 = vadd.f32 %v7465_v43, %v6060_v50  ;;  %v7504_v9 = vpop.f32.mrf.mxu0  ;;  %7773 = vmatprep.subr.bf16.mxu1 %v8161_v8  ;;  %7789 = vmatprep.mubr.msk.bf16.mxu1 %vm8162_vm6, %v8161_v8 }
 0x4ca   :  { %v7467_v29 = vpop.f32.mrf.mxu1  ;;  %v7505_v51 = vadd.f32 %v7504_v9, %v7503_v54 }
 0x4cb   :  { %v7468_v33 = vadd.f32 %v7467_v29, %v7466_v26  ;;  %v7506_v55 = vpop.f32.mrf.mxu0 }
 0x4cc   :  { %v10861_v48 = vadd.f32 %v7505_v51, %v10822_v30  ;;  %v7469_v11 = vpop.f32.mrf.mxu1  ;;  %v6073_v30 = vadd.f32 %v10831_v53, %v10740_v6 }
 0x4cd   :  { %v10863_v3 = vadd.f32 %v7468_v33, %v6065_v46  ;;  %v7507_v18 = vpop.f32.mrf.mxu0 }
 0x4ce   :  { %v7470_v25 = vpop.f32.mrf.mxu1  ;;  %v7508_v36 = vadd.f32 %v7507_v18, %v7506_v55 }
 0x4cf   :  { %v7471_v28 = vadd.f32 %v7470_v25, %v7469_v11  ;;  %v7509_v23 = vpop.f32.mrf.mxu0 }
 0x4d0   :  { %v6227_v47 = vadd.f32 %v7508_v36, %v10824_v32  ;;  %v7472_v38 = vpop.f32.mrf.mxu1  ;;  %v6076_v32 = vadd.f32 %v10836_v42, %v10748_v39 }
 0x4d1   :  { %v10867_v16 = vadd.f32 %v7471_v28, %v6068_v12  ;;  %v7510_v22 = vpop.f32.mrf.mxu0 }
 0x4d2   :  { %v7473_v61 = vpop.f32.mrf.mxu1  ;;  %v7511_v20 = vadd.f32 %v7510_v22, %v7509_v23 }
 0x4d3   :  { %v7474_v34 = vadd.f32 %v7473_v61, %v7472_v38  ;;  %v7512_v60 = vpop.f32.mrf.mxu0 }
 0x4d4   :  { %v6230_v59 = vadd.f32 %v7511_v20, %v10826_v63  ;;  %v7475_v15 = vpop.f32.mrf.mxu1 }
 0x4d5   :  { %v10872_v52 = vadd.f32 %v7474_v34, %v6073_v30  ;;  %v7513_v14 = vpop.f32.mrf.mxu0 }
 0x4d6   :  { %v7476_v0 = vpop.f32.mrf.mxu1  ;;  %v7514_v35 = vadd.f32 %v7513_v14, %v7512_v60 }
 0x4d7   :  { %v7477_v31 = vadd.f32 %v7476_v0, %v7475_v15  ;;  %v7515_v24 = vpop.f32.mrf.mxu0 }
 0x4d8   :  { %v6235_v49 = vadd.f32 %v7514_v35, %v10829_v56  ;;  %v7558_v1 = vpop.f32.mrf.mxu1 }
 0x4d9   :  { %v10877_v45 = vadd.f32 %v7477_v31, %v6076_v32  ;;  %v7516_v6 = vpop.f32.mrf.mxu0 }
 0x4da   :  { %v7517_v53 = vadd.f32 %v7516_v6, %v7515_v24  ;;  %v7559_v2 = vpop.f32.mrf.mxu1 }
 0x4db   :  { %v7560_v63 = vadd.f32 %v7559_v2, %v7558_v1  ;;  %v7518_v57 = vpop.f32.mrf.mxu0 }
 0x4dc   :  { %v6238_v37 = vadd.f32 %v7517_v53, %v10834_v21  ;;  %v7561_v17 = vpop.f32.mrf.mxu1 }
 0x4dd   :  { %v10881_v5 = vadd.f32 %v7560_v63, %v10843_v27  ;;  %v7519_v40 = vpop.f32.mrf.mxu0 }
 0x4de   :  { %v7520_v39 = vadd.f32 %v7519_v40, %v7518_v57  ;;  %v7562_v42 = vpop.f32.mrf.mxu1 }
 0x4df   :  { %v7563_v10 = vadd.f32 %v7562_v42, %v7561_v17  ;;  %v7521_v58 = vpop.f32.mrf.mxu0 }
 0x4e0   :  { %v6243_v56 = vadd.f32 %v7520_v39, %v10839_v13  ;;  %v7564_v7 = vpop.f32.mrf.mxu1 }
 0x4e1   :  { %v10886_v50 = vadd.f32 %v7563_v10, %v10849_v62  ;;  %v7522_v43 = vpop.f32.mrf.mxu0 }
 0x4e2   :  { %v7523_v21 = vadd.f32 %v7522_v43, %v7521_v58  ;;  %v7565_v54 = vpop.f32.mrf.mxu1 }
 0x4e3   :  { %v7566_v26 = vadd.f32 %v7565_v54, %v7564_v7  ;;  %v7524_v27 = vpop.f32.mrf.mxu0 }
 0x4e4   :  { %v6246_v9 = vadd.f32 %v7523_v21, %v10845_v19  ;;  %v7567_v29 = vpop.f32.mrf.mxu1 }
 0x4e5   :  { %v10890_v51 = vadd.f32 %v7566_v26, %v10855_v4  ;;  %v7525_v46 = vpop.f32.mrf.mxu0 }
 0x4e6   :  { %v7526_v13 = vadd.f32 %v7525_v46, %v7524_v27  ;;  %v7568_v33 = vpop.f32.mrf.mxu1 }
 0x4e7   :  { %v7569_v55 = vadd.f32 %v7568_v33, %v7567_v29  ;;  %v7527_v11 = vpop.f32.mrf.mxu0 }
 0x4e8   :  { %v6251_v18 = vadd.f32 %v7526_v13, %v10851_v44  ;;  %v7570_v62 = vpop.f32.mrf.mxu1 }
 0x4e9   :  { %v10894_v25 = vadd.f32 %v7569_v55, %v10861_v48  ;;  %v7528_v36 = vpop.f32.mrf.mxu0 }
 0x4ea   :  { %v7529_v12 = vadd.f32 %v7528_v36, %v7527_v11  ;;  %v7571_v28 = vpop.f32.mrf.mxu1 }
 0x4eb   :  { %v7572_v23 = vadd.f32 %v7571_v28, %v7570_v62  ;;  %v7530_v19 = vpop.f32.mrf.mxu0 }
 0x4ec   :  { %v6254_v38 = vadd.f32 %v7529_v12, %v10857_v41  ;;  %v7573_v4 = vpop.f32.mrf.mxu1 }
 0x4ed   :  { %v10897_v22 = vadd.f32 %v7572_v23, %v6227_v47  ;;  %v7531_v61 = vpop.f32.mrf.mxu0 }
 0x4ee   :  { %v7532_v20 = vadd.f32 %v7531_v61, %v7530_v19  ;;  %v7574_v30 = vpop.f32.mrf.mxu1 }
 0x4ef   :  { %v7575_v34 = vadd.f32 %v7574_v30, %v7573_v4  ;;  %v7533_v60 = vpop.f32.mrf.mxu0 }
 0x4f0   :  { %v6259_v44 = vadd.f32 %v7532_v20, %v10863_v3  ;;  %v7576_v15 = vpop.f32.mrf.mxu1 }
 0x4f1   :  { %v10900_v48 = vadd.f32 %v7575_v34, %v6230_v59  ;;  %v7534_v14 = vpop.f32.mrf.mxu0 }
 0x4f2   :  { %v7535_v0 = vadd.f32 %v7534_v14, %v7533_v60  ;;  %v7577_v35 = vpop.f32.mrf.mxu1 }
 0x4f3   :  { %v7578_v32 = vadd.f32 %v7577_v35, %v7576_v15  ;;  %v7536_v31 = vpop.f32.mrf.mxu0 }
 0x4f4   :  { %v6262_v41 = vadd.f32 %v7535_v0, %v10867_v16  ;;  %v7579_v24 = vpop.f32.mrf.mxu1 }
 0x4f5   :  { %v10903_v47 = vadd.f32 %v7578_v32, %v6235_v49  ;;  %v7537_v1 = vpop.f32.mrf.mxu0 }
 0x4f6   :  { %v7538_v6 = vadd.f32 %v7537_v1, %v7536_v31  ;;  %v7580_v53 = vpop.f32.mrf.mxu1 }
 0x4f7   :  { %v7581_v2 = vadd.f32 %v7580_v53, %v7579_v24  ;;  %v7539_v63 = vpop.f32.mrf.mxu0 }
 0x4f8   :  { %v6267_v3 = vadd.f32 %v7538_v6, %v10872_v52  ;;  %v7582_v57 = vpop.f32.mrf.mxu1 }
 0x4f9   :  { %v10906_v59 = vadd.f32 %v7581_v2, %v6238_v37  ;;  %v7540_v17 = vpop.f32.mrf.mxu0 }
 0x4fa   :  { %v7541_v40 = vadd.f32 %v7540_v17, %v7539_v63  ;;  %v7583_v39 = vpop.f32.mrf.mxu1 }
 0x4fb   :  { %v7584_v42 = vadd.f32 %v7583_v39, %v7582_v57 }
 0x4fc   :  { %v10909_v10 = vadd.f32 %v7541_v40, %v10877_v45  ;;  %v7585_v16 = vpop.f32.mrf.mxu1  ;;  %v7622_v49 = vpop.f32.mrf.mxu0 }
 0x4fd   :  { %v10911_v58 = vadd.f32 %v7584_v42, %v6243_v56 }
 0x4fe   :  { %v7586_v7 = vpop.f32.mrf.mxu1  ;;  %v7623_v43 = vpop.f32.mrf.mxu0 }
 0x4ff   :  { %v7587_v52 = vadd.f32 %v7586_v7, %v7585_v16  ;;  %v7624_v21 = vadd.f32 %v7623_v43, %v7622_v49 }
 0x500   :  { %v7588_v37 = vpop.f32.mrf.mxu1  ;;  %v7625_v54 = vpop.f32.mrf.mxu0 }
 0x501   :  { %v10914_v26 = vadd.f32 %v7587_v52, %v6246_v9  ;;  %v6405_v27 = vadd.f32 %v7624_v21, %v10881_v5 }
 0x502   :  { %v7589_v29 = vpop.f32.mrf.mxu1  ;;  %v7626_v45 = vpop.f32.mrf.mxu0 }
 0x503   :  { %v7590_v46 = vadd.f32 %v7589_v29, %v7588_v37  ;;  %v7627_v13 = vadd.f32 %v7626_v45, %v7625_v54 }
 0x504   :  { %v7591_v33 = vpop.f32.mrf.mxu1  ;;  %v7628_v56 = vpop.f32.mrf.mxu0 }
 0x505   :  { %v10917_v55 = vadd.f32 %v7590_v46, %v6251_v18  ;;  %v6408_v11 = vadd.f32 %v7627_v13, %v10886_v50 }
 0x506   :  { %v7592_v62 = vpop.f32.mrf.mxu1  ;;  %v7629_v36 = vpop.f32.mrf.mxu0 }
 0x507   :  { %v7593_v12 = vadd.f32 %v7592_v62, %v7591_v33  ;;  %v7630_v28 = vadd.f32 %v7629_v36, %v7628_v56 }
 0x508   :  { %v7594_v23 = vpop.f32.mrf.mxu1  ;;  %v7631_v19 = vpop.f32.mrf.mxu0 }
 0x509   :  { %v10920_v9 = vadd.f32 %v7593_v12, %v6254_v38  ;;  %v6413_v5 = vadd.f32 %v7630_v28, %v10890_v51 }
 0x50a   :  { %v7595_v4 = vpop.f32.mrf.mxu1  ;;  %v7632_v61 = vpop.f32.mrf.mxu0 }
 0x50b   :  { %v7596_v20 = vadd.f32 %v7595_v4, %v7594_v23  ;;  %v7633_v30 = vadd.f32 %v7632_v61, %v7631_v19 }
 0x50c   :  { %v7597_v34 = vpop.f32.mrf.mxu1  ;;  %v7634_v60 = vpop.f32.mrf.mxu0 }
 0x50d   :  { %v10923_v18 = vadd.f32 %v7596_v20, %v6259_v44  ;;  %v6416_v50 = vadd.f32 %v7633_v30, %v10894_v25 }
 0x50e   :  { %v7598_v15 = vpop.f32.mrf.mxu1  ;;  %v7635_v14 = vpop.f32.mrf.mxu0 }
 0x50f   :  { %v7599_v0 = vadd.f32 %v7598_v15, %v7597_v34  ;;  %v7636_v35 = vadd.f32 %v7635_v14, %v7634_v60 }
 0x510   :  { %v7600_v32 = vpop.f32.mrf.mxu1  ;;  %v7637_v31 = vpop.f32.mrf.mxu0 }
 0x511   :  { %v10926_v38 = vadd.f32 %v7599_v0, %v6262_v41  ;;  %v6421_v51 = vadd.f32 %v7636_v35, %v10897_v22 }
 0x512   :  { %v7601_v24 = vpop.f32.mrf.mxu1  ;;  %v7638_v1 = vpop.f32.mrf.mxu0 }
 0x513   :  { %v7602_v6 = vadd.f32 %v7601_v24, %v7600_v32  ;;  %v7639_v53 = vadd.f32 %v7638_v1, %v7637_v31 }
 0x514   :  { %v10929_v2 = vpop.f32.mrf.mxu1  ;;  %v7640_v44 = vpop.f32.mrf.mxu0 }
 0x515   :  { %v10931_v63 = vadd.f32 %v7602_v6, %v6267_v3  ;;  %v10934_v25 = vadd.f32 %v7639_v53, %v10900_v48 }
 0x516   :  { %v10936_v57 = vpop.f32.mrf.mxu1  ;;  %v7641_v17 = vpop.f32.mrf.mxu0 }
 0x517   :  { %v7642_v40 = vadd.f32 %v7641_v17, %v7640_v44 }
 0x518   :  { %v7686_v41 = vpop.f32.mrf.mxu1  ;;  %v7643_v39 = vpop.f32.mrf.mxu0 }
 0x519   :  { %v10939_v22 = vadd.f32 %v7642_v40, %v10903_v47 }
 0x51a   :  { %v7687_v42 = vpop.f32.mrf.mxu1  ;;  %v7644_v16 = vpop.f32.mrf.mxu0 }
 0x51b   :  { %v7688_v49 = vadd.f32 %v7687_v42, %v7686_v41  ;;  %v7645_v7 = vadd.f32 %v7644_v16, %v7643_v39 }
 0x51c   :  { %v7689_v43 = vpop.f32.mrf.mxu1  ;;  %v7646_v52 = vpop.f32.mrf.mxu0 }
 0x51d   :  { %v10942_v3 = vadd.f32 %v7645_v7, %v10906_v59  ;;  %v6502_v48 = vadd.f32 %v7688_v49, %v6405_v27 }
 0x51e   :  { %v7690_v21 = vpop.f32.mrf.mxu1  ;;  %v7647_v37 = vpop.f32.mrf.mxu0 }
 0x51f   :  { %v7691_v54 = vadd.f32 %v7690_v21, %v7689_v43  ;;  %v7648_v29 = vadd.f32 %v7647_v37, %v7646_v52 }
 0x520   :  { %v7692_v45 = vpop.f32.mrf.mxu1  ;;  %v10944_v46 = vpop.f32.mrf.mxu0 }
 0x521   :  { %v10947_v47 = vadd.f32 %v7648_v29, %v10911_v58  ;;  %v6505_v13 = vadd.f32 %v7691_v54, %v6408_v11 }
 0x522   :  { %v7693_v33 = vpop.f32.mrf.mxu1  ;;  %v10949_v56 = vpop.f32.mrf.mxu0 }
 0x523   :  { %v7694_v62 = vadd.f32 %v7693_v33, %v7692_v45 }
 0x524   :  { %v7695_v36 = vpop.f32.mrf.mxu1  ;;  %v7652_v12 = vpop.f32.mrf.mxu0 }
 0x525   :  { %v6510_v59 = vadd.f32 %v7694_v62, %v6413_v5 }
 0x526   :  { %v7696_v28 = vpop.f32.mrf.mxu1  ;;  %v7653_v27 = vpop.f32.mrf.mxu0 }
 0x527   :  { %v7697_v23 = vadd.f32 %v7696_v28, %v7695_v36 }
 0x528   :  { %v7698_v19 = vpop.f32.mrf.mxu1  ;;  %v7655_v4 = vpop.f32.mrf.mxu0 }
 0x529   :  { %v6513_v61 = vadd.f32 %v7697_v23, %v6416_v50 }
 0x52a   :  { %v7699_v20 = vpop.f32.mrf.mxu1  ;;  %v7656_v30 = vpop.f32.mrf.mxu0 }
 0x52b   :  { %v7700_v34 = vadd.f32 %v7699_v20, %v7698_v19 }
 0x52c   :  { %v7701_v60 = vpop.f32.mrf.mxu1  ;;  %v10951_v58 = vpop.f32.mrf.mxu0 }
 0x52d   :  { %v6518_v11 = vadd.f32 %v7700_v34, %v6421_v51  ;;  %v7654_v34 = vadd.f32 %v7653_v27, %v7652_v12 }
 0x52e   :  { %v7702_v15 = vpop.f32.mrf.mxu1  ;;  %v10953_v14 = vpop.f32.mrf.mxu0 }
 0x52f   :  { %v7703_v62 = vadd.f32 %v7702_v15, %v7701_v60 }
 0x530   :  { %v7704_v0 = vpop.f32.mrf.mxu1  ;;  %v10955_v35 = vpop.f32.mrf.mxu0 }
 0x532   :  { %v7705_v5 = vpop.f32.mrf.mxu1  ;;  %v10957_v32 = vpop.f32.mrf.mxu0 }
 0x533   :  { %v7706_v7 = vadd.f32 %v7705_v5, %v7704_v0 }
 0x534   :  { %v7707_v31 = vpop.f32.mrf.mxu1  ;;  %v7664_v24 = vpop.f32.mrf.mxu0 }
 0x536   :  { %v7708_v1 = vpop.f32.mrf.mxu1  ;;  %v7665_v50 = vpop.f32.mrf.mxu0 }
 0x537   :  { %v7709_v54 = vadd.f32 %v7708_v1, %v7707_v31  ;;  %v7657_v31 = vadd.f32 %v7656_v30, %v7655_v4 }
 0x538   :  { %v7710_v6 = vpop.f32.mrf.mxu1  ;;  %v10959_v53 = vpop.f32.mrf.mxu0 }
 0x539   :  { %v6529_v5 = vadd.f32 %v7709_v54, %v10942_v3  ;;  %v6448_v4 = vadd.f32 %v7657_v31, %v10920_v9  ;;  %v7605_v9 = vadd.f32 %v10936_v57, %v10929_v2 }
 0x53a   :  { %v7711_v44 = vpop.f32.mrf.mxu1  ;;  %v10961_v17 = vpop.f32.mrf.mxu0 }
 0x53b   :  { %v7712_v12 = vadd.f32 %v7711_v44, %v7710_v6 }
 0x53c   :  { %v7713_v51 = vpop.f32.mrf.mxu1  ;;  %v7759_v40 = vpop.f32.mrf.mxu0 }
 0x53d   :  { %v6607_v42 = vadd.f32 %v7759_v40, %v6510_v59  ;;  %v6526_v59 = vadd.f32 %v7706_v7, %v10939_v22  ;;  %v6445_v22 = vadd.f32 %v7654_v34, %v10917_v55  ;;  %v7666_v55 = vadd.f32 %v7665_v50, %v7664_v24 }
 0x53e   :  { %v7714_v41 = vpop.f32.mrf.mxu1  ;;  %v6598_v39 = vpop.f32.mrf.mxu0 }
 0x53f   :  { %v6599_v43 = vadd.f32 %v6598_v39, %v6502_v48  ;;  %v6663_v29 = vmax.f32 %v6607_v42, 0.0  ;;  %v6521_v42 = vadd.f32 %v7703_v62, %v10934_v25  ;;  %v7715_v30 = vadd.f32 %v7714_v41, %v7713_v51 }
 0x540   :  { %v7716_v16 = vpop.f32.mrf.mxu1  ;;  %v7760_v49 = vpop.f32.mrf.mxu0  ;;  %v7660_v51 = vadd.f32 %v10953_v14, %v10951_v58  ;;  %v6461_v24 = vadd.f32 %v7666_v55, %v10931_v63  ;;  %v6367_v14 = vadd.f32 %v7605_v9, %v10909_v10 }
 0x541   :  { %v6610_v52 = vadd.f32 %v7760_v49, %v6513_v61  ;;  %v6661_v23 = vmax.f32 %v6599_v43, 0.0  ;;  %v7651_v49 = vadd.f32 %v10949_v56, %v10944_v46 }
 0x542   :  { %v7717_v21 = vpop.f32.mrf.mxu1  ;;  %v6601_v37 = vpop.f32.mrf.mxu0 }
 0x543   :  { %v6664_v45 = vmax.f32 %v6610_v52, 0.0  ;;  %v6602_v33 = vadd.f32 %v6601_v37, %v6505_v13  ;;  %v7718_v60 = vadd.f32 %v7717_v21, %v7716_v16  ;;  %v6440_v46 = vadd.f32 %v7651_v49, %v10914_v26 }
 0x544   :  { %v7719_v36 = vpop.f32.mrf.mxu1  ;;  %v7763_v28 = vpop.f32.mrf.mxu0  ;;  %v7663_v26 = vadd.f32 %v10957_v32, %v10955_v35 }
 0x545   :  { %v10963_v19 = vpack.c.bf16 %v6664_v45, %v6663_v29  ;;  %v6662_v20 = vmax.f32 %v6602_v33, 0.0  ;;  %v6623_v61 = vadd.f32 %v7763_v28, %v6526_v59  ;;  %v6542_v29 = vadd.f32 %v7718_v60, %v6445_v22 }
 0x546   :  { %v7720_v40 = vpop.f32.mrf.mxu1  ;;  %v6614_v0 = vpop.f32.mrf.mxu0  ;;  %v6534_v33 = vadd.f32 %v7712_v12, %v10947_v47  ;;  %v7669_v47 = vadd.f32 %v10961_v17, %v10959_v53  ;;  %v6456_v53 = vadd.f32 %v7663_v26, %v10926_v38 }
 0x547   :  { %v10966_v48 = vpack.c.bf16 %v6662_v20, %v6661_v23  ;;  %v6615_v15 = vadd.f32 %v6614_v0, %v6518_v11  ;;  %v6667_v43 = vmax.f32 %v6623_v61, 0.0  ;;  %v7721_v52 = vadd.f32 %v7720_v40, %v7719_v36 }
 0x548   :  { %v7722_v1 = vpop.f32.mrf.mxu1  ;;  %v7764_v13 = vpop.f32.mrf.mxu0  ;;  %v6537_v20 = vadd.f32 %v7715_v30, %v6440_v46  ;;  %v6453_v0 = vadd.f32 %v7660_v51, %v10923_v18  ;;  %v6464_v60 = vadd.f32 %v7669_v47, %v6367_v14 }
 0x549   :  { %v6626_v39 = vadd.f32 %v7764_v13, %v6529_v5  ;;  %v6665_v21 = vmax.f32 %v6615_v15, 0.0  ;;  %v6545_v62 = vadd.f32 %v7721_v52, %v6448_v4 }
 0x54a   :  { %v7723_v27 = vpop.f32.mrf.mxu1  ;;  %v6617_v7 = vpop.f32.mrf.mxu0 }
 0x54b   :  { %v6668_v37 = vmax.f32 %v6626_v39, 0.0  ;;  %v6618_v3 = vadd.f32 %v6617_v7, %v6521_v42  ;;  %v7724_v50 = vadd.f32 %v7723_v27, %v7722_v1 }
 0x54c   :  { %v7725_v16 = vpop.f32.mrf.mxu1  ;;  %v7767_v11 = vpop.f32.mrf.mxu0 }
 0x54d   :  { %v10974_v54 = vpack.c.bf16 %v6668_v37, %v6667_v43  ;;  %v6666_v25 = vmax.f32 %v6618_v3, 0.0  ;;  %v6639_v45 = vadd.f32 %v7767_v11, %v6542_v29  ;;  %v6550_v42 = vadd.f32 %v7724_v50, %v6453_v0  ;;  %v6692_v11 = vpop.permute.xlu0 %6691  ;;  %v6697_v29 = vpop.permute.xlu1 %6696 }
 0x54e   :  { %v7726_v56 = vpop.f32.mrf.mxu1  ;;  %v6630_v6 = vpop.f32.mrf.mxu0 }
 0x54f   :  { %v6679_v44 = vpack.c.bf16 %v6666_v25, %v6665_v21  ;;  %v6631_v28 = vadd.f32 %v6630_v6, %v6534_v33  ;;  %v6671_v2 = vmax.f32 %v6639_v45, 0.0  ;;  %v7727_v61 = vadd.f32 %v7726_v56, %v7725_v16  ;;  %v8137_v16 = vld [vmem:[%s11016_s6] sm:$0xff]  }
 0x550   :  { %v7728_v41 = vpop.f32.mrf.mxu1  ;;  %v7768_v36 = vpop.f32.mrf.mxu0 }
 0x551   :  { %v6642_v23 = vadd.f32 %v7768_v36, %v6545_v62  ;;  %v6669_v35 = vmax.f32 %v6631_v28, 0.0  ;;  %v6553_v18 = vadd.f32 %v7727_v61, %v6456_v53 }
 0x552   :  { %v7729_v59 = vpop.f32.mrf.mxu1  ;;  %v6633_v34 = vpop.f32.mrf.mxu0 }
 0x553   :  { %v6672_v57 = vmax.f32 %v6642_v23, 0.0  ;;  %v7730_v40 = vadd.f32 %v7729_v59, %v7728_v41  ;;  %v6634_v58 = vadd.f32 %v6633_v34, %v6537_v20 }
 0x554   :  { %v7731_v5 = vpop.f32.mrf.mxu1  ;;  %v7771_v31 = vpop.f32.mrf.mxu0 }
 0x555   :  { %v6682_v32 = vpack.c.bf16 %v6672_v57, %v6671_v2  ;;  %v6670_v63 = vmax.f32 %v6634_v58, 0.0  ;;  %v6558_v13 = vadd.f32 %v7730_v40, %v6461_v24 }
 0x556   :  { %v7732_v17 = vpop.f32.mrf.mxu1  ;;  %v6646_v1 = vpop.f32.mrf.mxu0 }
 0x557   :  { %v6681_v15 = vpack.c.bf16 %v6670_v63, %v6669_v35  ;;  %v7733_v39 = vadd.f32 %v7732_v17, %v7731_v5  ;;  %v6655_v22 = vadd.f32 %v7771_v31, %v6558_v13  ;;  %v6647_v10 = vadd.f32 %v6646_v1, %v6550_v42 }
 0x558   :  { %v7772_v49 = vpop.f32.mrf.mxu0 }
 0x559   :  { %v6561_v12 = vadd.f32 %v7733_v39, %v6464_v60  ;;  %v6675_v52 = vmax.f32 %v6655_v22, 0.0  ;;  %v6673_v37 = vmax.f32 %v6647_v10, 0.0 }
 0x55a   :  { %v6649_v27 = vpop.f32.mrf.mxu0 }
 0x55b   :  { %v6658_v7 = vadd.f32 %v7772_v49, %v6561_v12  ;;  %v6650_v43 = vadd.f32 %v6649_v27, %v6553_v18 }
 0x55d   :  { %v6676_v3 = vmax.f32 %v6658_v7, 0.0  ;;  %v6674_v4 = vmax.f32 %v6650_v43, 0.0 }
 0x55f   :  { %v6684_v30 = vpack.c.bf16 %v6676_v3, %v6675_v52  ;;  %v6683_v38 = vpack.c.bf16 %v6674_v4, %v6673_v37 }
 0x561   :  { %7774 = vmatpush3.bf16.msra.mxu1 %v6684_v30 }
 0x562   :  { %7775 = vmatprep.subr.bf16.mxu1 %v8161_v8 }
 0x565   :  { %7776 = vmatpush3.bf16.msra.mxu1 %v6683_v38 }
 0x566   :  { %7777 = vmatprep.subr.bf16.mxu1 %v8161_v8 }
 0x569   :  { %7778 = vmatpush3.bf16.msra.mxu1 %v6682_v32 }
 0x56a   :  { %7779 = vmatprep.subr.bf16.mxu1 %v8161_v8 }
 0x56d   :  { %7780 = vmatpush3.bf16.msra.mxu1 %v6681_v15 }
 0x56e   :  { %7781 = vmatprep.subr.bf16.mxu1 %v8161_v8 }
 0x571   :  { %7782 = vmatpush3.bf16.msra.mxu1 %v10974_v54 }
 0x572   :  { %7783 = vmatprep.subr.bf16.mxu1 %v8161_v8 }
 0x575   :  { %7784 = vmatpush3.bf16.msra.mxu1 %v6679_v44 }
 0x576   :  { %7785 = vmatprep.subr.bf16.mxu1 %v8161_v8 }
 0x579   :  { %7786 = vmatpush3.bf16.msra.mxu1 %v10963_v19 }
 0x57a   :  { %7787 = vmatprep.subr.bf16.mxu1 %v8161_v8 }
 0x57d   :  { %7788 = vmatpush3.bf16.msra.mxu1 %v10966_v48 }
 0x580   :  { %7790 = vmatmul.mubr.bf16.vlgmr.msra.gmra.mxu1 %v8137_v16 }
 0x640   :  { %v6739_v21 = vpop.f32.mrf.mxu1 }
 0x641   :  { %v6740_v54 = vadd.f32 %v6739_v21, %v6692_v11 }
 0x642   :  { %v7791_v25 = vpop.f32.mrf.mxu1 }
 0x643   :  { %6747 = vst.msk [vmem:[%s11017_s8] sm:$0xff] %vm6746_vm7, %v6740_v54 }
 0x644   :  { %v6742_v19 = vpop.f32.mrf.mxu1 }
 0x645   :  { %v6743_v46 = vadd.f32 %v6742_v19, %v6697_v29 }
 0x646   :  { %v7792_v8 = vpop.f32.mrf.mxu1 }
 0x647   :  { %6748 = vst.msk [vmem:[%s11017_s8 + $0x8] sm:$0xff] %vm6746_vm7, %v6743_v46 }

</bundles_post_ra>
